<compile_context>
chip_gen: v5e
topology: v5e:2x2
jax: 0.10.0
libtpu: 0.0.40
codegen_flags: <defaults>
</compile_context>

<pallas_src>
import functools

import jax
import jax.numpy as jnp
from jax.experimental import pallas as pl
from jax.experimental.pallas import tpu as pltpu

MNIST_IM_SHAPE = (28, 28)
IN_FEATURES = MNIST_IM_SHAPE[0] * MNIST_IM_SHAPE[1]   # 784
H1, H2, OUT = 1000, 100, 10                           # logical layer sizes
H1_PAD, H2_PAD, OUT_PAD = 1024, 128, 128              # lane-padded sizes
H1_CHUNK = 256                                        # layer-1 chunk (lanes)
N_H1_CHUNKS = H1_PAD // H1_CHUNK                      # 4
DEFAULT_TILE_B = 512                                  # sweep 512/1024 per chip
VMEM_LIMIT_BYTES = 32 * 1024 * 1024                   # >= v5e 16 MiB default


def _cdiv(a, b):
    return (a + b - 1) // b


def _round_up(x, m):
    return _cdiv(x, m) * m


def _mlp_kernel(x_ref, w1_ref, b1_ref, w2_ref, b2_ref, w3_ref, b3_ref, o_ref):
    """Fused 3-layer MLP on one batch tile.

    x: [TB, 784] bf16; weights bf16 (lane/row padded); biases f32 (padded).
    All matmuls accumulate in f32 on the MXU.
    """
    x = x_ref[...]                                                       # [TB, 784] bf16
    tb = x.shape[0]

    # ---- layer 1 + layer 2 matmul, chunked over the H1 axis ----------------
    # Chunking lets the EUP/VPU epilogue of chunk k overlap the MXU matmul of
    # chunk k+1 and keeps the live f32 h1 intermediate at [TB, 256].
    h2_acc = jnp.zeros((tb, H2_PAD), jnp.float32)
    for k in range(N_H1_CHUNKS):                                         # static unroll
        c0 = k * H1_CHUNK
        h1_k = jnp.dot(x, w1_ref[:, c0:c0 + H1_CHUNK],
                       preferred_element_type=jnp.float32)               # [TB, 256] f32
        # bf16 tanh: bf16 EUP path on v6e/v7x (auto-upcast on v5e); also acts
        # as the cast required for the next bf16 MXU pass.
        a1_k = jnp.tanh((h1_k + b1_ref[:, c0:c0 + H1_CHUNK]).astype(jnp.bfloat16))
        h2_acc = h2_acc + jnp.dot(a1_k, w2_ref[c0:c0 + H1_CHUNK, :],
                                  preferred_element_type=jnp.float32)    # [TB, 128] f32

    # ---- layer 2 epilogue + layer 3 ----------------------------------------
    h2 = jnp.maximum(h2_acc + b2_ref[...], 0.0)                          # relu, f32
    h3 = jnp.dot(h2.astype(jnp.bfloat16), w3_ref[...],
                 preferred_element_type=jnp.float32)                     # [TB, 128] f32
    o_ref[...] = (h3 + b3_ref[...]).astype(o_ref.dtype)                  # bf16 writeback


def _batch_tiling(B, tile_b):
    """tb ~= ceil(B / num_tiles), rounded up to a multiple of 8 sublanes, so a
    batch just over a multiple of tile_b does not pay for a nearly-empty tile."""
    num_tiles = max(1, _cdiv(B, tile_b))
    tb = _round_up(_cdiv(B, num_tiles), 8)
    return tb, num_tiles


def _dimension_semantics(num_tiles):
    """CORE_PARALLEL on the batch axis for v7x (2 TCs/chip) when the grid splits
    evenly; plain "parallel" otherwise (safe on 1-TC chips / tiny grids)."""
    try:
        kind = jax.devices()[0].device_kind.lower()
        is_v7x = ("v7" in kind) or ("7x" in kind)
    except Exception:
        is_v7x = False
    if is_v7x and num_tiles >= 2 and num_tiles % 2 == 0:
        return (pltpu.CORE_PARALLEL,)
    return ("parallel",)


@functools.partial(jax.jit, static_argnames=("tile_b",))
def fully_connected_forward(x, w1, b1, w2, b2, w3, b3, *, tile_b=DEFAULT_TILE_B):
    """x: [B, 1, 28, 28] (NCHW) or anything reshapeable to [B, 784]. Returns [B, 10] f32."""
    B = x.shape[0]
    x2d = x.reshape(B, -1).astype(jnp.bfloat16)                          # [B, 784] bf16
    assert x2d.shape[1] == IN_FEATURES

    tb, num_tiles = _batch_tiling(B, tile_b)
    b_pad = tb * num_tiles
    if b_pad != B:
        x2d = jnp.pad(x2d, ((0, b_pad - B), (0, 0)))
    grid = (num_tiles,)

    cost = pl.CostEstimate(
        flops=2 * b_pad * (IN_FEATURES * H1_PAD + H1_PAD * H2_PAD + H2_PAD * OUT_PAD),
        transcendentals=b_pad * H1_PAD,
        bytes_accessed=(x2d.size * 2
                        + (w1.size + w2.size + w3.size) * 2
                        + (b1.size + b2.size + b3.size) * 4
                        + b_pad * OUT_PAD * 2),
    )

    out = pl.pallas_call(
        _mlp_kernel,
        out_shape=jax.ShapeDtypeStruct((b_pad, OUT_PAD), jnp.bfloat16),
        grid=grid,
        in_specs=[
            pl.BlockSpec((tb, IN_FEATURES), lambda i: (i, 0)),       # x tile (pipelined)
            pl.BlockSpec((IN_FEATURES, H1_PAD), lambda i: (0, 0)),   # W1 (resident)
            pl.BlockSpec((1, H1_PAD), lambda i: (0, 0)),             # b1 (resident)
            pl.BlockSpec((H1_PAD, H2_PAD), lambda i: (0, 0)),        # W2 (resident)
            pl.BlockSpec((1, H2_PAD), lambda i: (0, 0)),             # b2 (resident)
            pl.BlockSpec((H2_PAD, OUT_PAD), lambda i: (0, 0)),       # W3 (resident)
            pl.BlockSpec((1, OUT_PAD), lambda i: (0, 0)),            # b3 (resident)
        ],
        out_specs=pl.BlockSpec((tb, OUT_PAD), lambda i: (i, 0)),
        compiler_params=pltpu.CompilerParams(
            dimension_semantics=_dimension_semantics(num_tiles),
            vmem_limit_bytes=VMEM_LIMIT_BYTES,
        ),
        cost_estimate=cost,
    )(x2d, w1, b1, w2, b2, w3, b3)

    # slice off batch/lane padding, return f32 logits like nn.Linear output
    return out[:B, :OUT].astype(jnp.float32)


def init_params(key):
    """nn.Linear-style init U(-1/sqrt(fan_in), 1/sqrt(fan_in)); weights bf16
    stored [in, out] and zero-padded to lane multiples; biases f32 [1, out_pad].
    The zero padding is part of the kernel contract."""
    def linear(key, fan_in, fan_out, fan_out_pad):
        kw, kb = jax.random.split(key)
        bound = 1.0 / jnp.sqrt(jnp.float32(fan_in))
        w = jax.random.uniform(kw, (fan_in, fan_out), jnp.float32, -bound, bound)
        b = jax.random.uniform(kb, (1, fan_out), jnp.float32, -bound, bound)
        w = jnp.pad(w, ((0, 0), (0, fan_out_pad - fan_out))).astype(jnp.bfloat16)
        b = jnp.pad(b, ((0, 0), (0, fan_out_pad - fan_out)))        # f32
        return w, b

    k1, k2, k3 = jax.random.split(key, 3)
    w1, b1 = linear(k1, IN_FEATURES, H1, H1_PAD)                     # [784, 1024]
    w2f, b2 = linear(k2, H1, H2, H2_PAD)                             # [1000, 128]
    w2 = jnp.pad(w2f, ((0, H1_PAD - H1), (0, 0)))                    # [1024, 128]
    w3f, b3 = linear(k3, H2, OUT, OUT_PAD)                           # [100, 128]
    w3 = jnp.pad(w3f, ((0, H2_PAD - H2), (0, 0)))                    # [128, 128]
    # TODO(synk): optional fp8 W1 for the v7x MXU fp8 path once MXU-bound.
    return w1, b1, w2, b2, w3, b3


if __name__ == "__main__":
    key = jax.random.PRNGKey(0)
    kx, kp = jax.random.split(key)

    # small batch of MNIST-shaped inputs, NCHW layout
    B = 8
    x = jax.random.normal(kx, (B, 1, *MNIST_IM_SHAPE), dtype=jnp.float32)

    params = init_params(kp)
    out = fully_connected_forward(x, *params)
    out = jax.block_until_ready(out)
    assert out.shape == (B, OUT)
    assert out.dtype == jnp.float32

    # plain-JAX reference mirroring the kernel's math:
    # bf16 operands, f32 MXU accumulation, bf16 tanh, bf16 output cast.
    w1, b1, w2, b2, w3, b3 = params
    xf = x.reshape(B, -1).astype(jnp.bfloat16)
    a1 = jnp.tanh((jnp.dot(xf, w1, preferred_element_type=jnp.float32)
                   + b1).astype(jnp.bfloat16))
    h2 = jnp.maximum(jnp.dot(a1, w2, preferred_element_type=jnp.float32) + b2, 0.0)
    logits = (jnp.dot(h2.astype(jnp.bfloat16), w3, preferred_element_type=jnp.float32)
              + b3)
    ref = logits.astype(jnp.bfloat16).astype(jnp.float32)[:, :OUT]
    assert jnp.allclose(out, ref, atol=5e-2, rtol=5e-2)

    print("KERNEL_OK")
</pallas_src>

<mosaic_0001>
module attributes {stable_mosaic.version = 11 : i64} {
  func.func @_mlp_kernel(%arg0: i32, %arg1: memref<8x784xbf16, #tpu.memory_space<vmem>>, %arg2: memref<784x1024xbf16, #tpu.memory_space<vmem>>, %arg3: memref<1x1024xf32, #tpu.memory_space<vmem>>, %arg4: memref<1024x128xbf16, #tpu.memory_space<vmem>>, %arg5: memref<1x128xf32, #tpu.memory_space<vmem>>, %arg6: memref<128x128xbf16, #tpu.memory_space<vmem>>, %arg7: memref<1x128xf32, #tpu.memory_space<vmem>>, %arg8: memref<8x128xbf16, #tpu.memory_space<vmem>>) attributes {dimension_semantics = [#tpu.dimension_semantics<parallel>], iteration_bounds = array<i64: 1>, scalar_prefetch = 0 : i64, scratch_operands = 0 : i64, tpu.core_type = #tpu.core_type<tc>, window_params = [{transform_indices = @transform_0, window_bounds = array<i64: 8, 784>}, {pipeline_mode = #tpu.pipeline_mode<synchronous>, transform_indices = @transform_1, window_bounds = array<i64: 784, 1024>}, {pipeline_mode = #tpu.pipeline_mode<synchronous>, transform_indices = @transform_2, window_bounds = array<i64: 1, 1024>}, {pipeline_mode = #tpu.pipeline_mode<synchronous>, transform_indices = @transform_3, window_bounds = array<i64: 1024, 128>}, {pipeline_mode = #tpu.pipeline_mode<synchronous>, transform_indices = @transform_4, window_bounds = array<i64: 1, 128>}, {pipeline_mode = #tpu.pipeline_mode<synchronous>, transform_indices = @transform_5, window_bounds = array<i64: 128, 128>}, {pipeline_mode = #tpu.pipeline_mode<synchronous>, transform_indices = @transform_6, window_bounds = array<i64: 1, 128>}, {transform_indices = @transform_7, window_bounds = array<i64: 8, 128>}]} {
    %c0 = arith.constant 0 : index
    %c0_0 = arith.constant 0 : index
    %0 = vector.load %arg1[%c0, %c0_0] : memref<8x784xbf16, #tpu.memory_space<vmem>>, vector<8x784xbf16>
    %cst = arith.constant 0.000000e+00 : f32
    %1 = vector.broadcast %cst : f32 to vector<8x128xf32>
    %c0_1 = arith.constant 0 : index
    %c0_2 = arith.constant 0 : index
    %2 = vector.load %arg2[%c0_1, %c0_2] : memref<784x1024xbf16, #tpu.memory_space<vmem>>, vector<784x256xbf16>
    %cst_3 = arith.constant dense<0.000000e+00> : vector<8x256xf32>
    %3 = tpu.matmul %0, %2, %cst_3 {dimension_numbers = #tpu.dot_dimension_numbers<[1], [0], [0], [1], [0, 0, 1, 1], [], []>} : vector<8x784xbf16>, vector<784x256xbf16>, vector<8x256xf32> -> vector<8x256xf32>
    %c0_4 = arith.constant 0 : index
    %c0_5 = arith.constant 0 : index
    %4 = vector.load %arg3[%c0_4, %c0_5] : memref<1x1024xf32, #tpu.memory_space<vmem>>, vector<1x256xf32>
    %5 = vector.broadcast %4 : vector<1x256xf32> to vector<8x256xf32>
    %6 = arith.addf %3, %5 : vector<8x256xf32>
    %7 = arith.truncf %6 : vector<8x256xf32> to vector<8x256xbf16>
    %8 = math.tanh %7 : vector<8x256xbf16>
    %c0_6 = arith.constant 0 : index
    %c0_7 = arith.constant 0 : index
    %9 = vector.load %arg4[%c0_6, %c0_7] : memref<1024x128xbf16, #tpu.memory_space<vmem>>, vector<256x128xbf16>
    %cst_8 = arith.constant dense<0.000000e+00> : vector<8x128xf32>
    %10 = tpu.matmul %8, %9, %cst_8 {dimension_numbers = #tpu.dot_dimension_numbers<[1], [0], [0], [1], [0, 0, 1, 1], [], []>} : vector<8x256xbf16>, vector<256x128xbf16>, vector<8x128xf32> -> vector<8x128xf32>
    %11 = arith.addf %1, %10 : vector<8x128xf32>
    %c0_9 = arith.constant 0 : index
    %c256 = arith.constant 256 : index
    %12 = vector.load %arg2[%c0_9, %c256] : memref<784x1024xbf16, #tpu.memory_space<vmem>>, vector<784x256xbf16>
    %cst_10 = arith.constant dense<0.000000e+00> : vector<8x256xf32>
    %13 = tpu.matmul %0, %12, %cst_10 {dimension_numbers = #tpu.dot_dimension_numbers<[1], [0], [0], [1], [0, 0, 1, 1], [], []>} : vector<8x784xbf16>, vector<784x256xbf16>, vector<8x256xf32> -> vector<8x256xf32>
    %c0_11 = arith.constant 0 : index
    %c256_12 = arith.constant 256 : index
    %14 = vector.load %arg3[%c0_11, %c256_12] : memref<1x1024xf32, #tpu.memory_space<vmem>>, vector<1x256xf32>
    %15 = vector.broadcast %14 : vector<1x256xf32> to vector<8x256xf32>
    %16 = arith.addf %13, %15 : vector<8x256xf32>
    %17 = arith.truncf %16 : vector<8x256xf32> to vector<8x256xbf16>
    %18 = math.tanh %17 : vector<8x256xbf16>
    %c256_13 = arith.constant 256 : index
    %c0_14 = arith.constant 0 : index
    %19 = vector.load %arg4[%c256_13, %c0_14] : memref<1024x128xbf16, #tpu.memory_space<vmem>>, vector<256x128xbf16>
    %cst_15 = arith.constant dense<0.000000e+00> : vector<8x128xf32>
    %20 = tpu.matmul %18, %19, %cst_15 {dimension_numbers = #tpu.dot_dimension_numbers<[1], [0], [0], [1], [0, 0, 1, 1], [], []>} : vector<8x256xbf16>, vector<256x128xbf16>, vector<8x128xf32> -> vector<8x128xf32>
    %21 = arith.addf %11, %20 : vector<8x128xf32>
    %c0_16 = arith.constant 0 : index
    %c512 = arith.constant 512 : index
    %22 = vector.load %arg2[%c0_16, %c512] : memref<784x1024xbf16, #tpu.memory_space<vmem>>, vector<784x256xbf16>
    %cst_17 = arith.constant dense<0.000000e+00> : vector<8x256xf32>
    %23 = tpu.matmul %0, %22, %cst_17 {dimension_numbers = #tpu.dot_dimension_numbers<[1], [0], [0], [1], [0, 0, 1, 1], [], []>} : vector<8x784xbf16>, vector<784x256xbf16>, vector<8x256xf32> -> vector<8x256xf32>
    %c0_18 = arith.constant 0 : index
    %c512_19 = arith.constant 512 : index
    %24 = vector.load %arg3[%c0_18, %c512_19] : memref<1x1024xf32, #tpu.memory_space<vmem>>, vector<1x256xf32>
    %25 = vector.broadcast %24 : vector<1x256xf32> to vector<8x256xf32>
    %26 = arith.addf %23, %25 : vector<8x256xf32>
    %27 = arith.truncf %26 : vector<8x256xf32> to vector<8x256xbf16>
    %28 = math.tanh %27 : vector<8x256xbf16>
    %c512_20 = arith.constant 512 : index
    %c0_21 = arith.constant 0 : index
    %29 = vector.load %arg4[%c512_20, %c0_21] : memref<1024x128xbf16, #tpu.memory_space<vmem>>, vector<256x128xbf16>
    %cst_22 = arith.constant dense<0.000000e+00> : vector<8x128xf32>
    %30 = tpu.matmul %28, %29, %cst_22 {dimension_numbers = #tpu.dot_dimension_numbers<[1], [0], [0], [1], [0, 0, 1, 1], [], []>} : vector<8x256xbf16>, vector<256x128xbf16>, vector<8x128xf32> -> vector<8x128xf32>
    %31 = arith.addf %21, %30 : vector<8x128xf32>
    %c0_23 = arith.constant 0 : index
    %c768 = arith.constant 768 : index
    %32 = vector.load %arg2[%c0_23, %c768] : memref<784x1024xbf16, #tpu.memory_space<vmem>>, vector<784x256xbf16>
    %cst_24 = arith.constant dense<0.000000e+00> : vector<8x256xf32>
    %33 = tpu.matmul %0, %32, %cst_24 {dimension_numbers = #tpu.dot_dimension_numbers<[1], [0], [0], [1], [0, 0, 1, 1], [], []>} : vector<8x784xbf16>, vector<784x256xbf16>, vector<8x256xf32> -> vector<8x256xf32>
    %c0_25 = arith.constant 0 : index
    %c768_26 = arith.constant 768 : index
    %34 = vector.load %arg3[%c0_25, %c768_26] : memref<1x1024xf32, #tpu.memory_space<vmem>>, vector<1x256xf32>
    %35 = vector.broadcast %34 : vector<1x256xf32> to vector<8x256xf32>
    %36 = arith.addf %33, %35 : vector<8x256xf32>
    %37 = arith.truncf %36 : vector<8x256xf32> to vector<8x256xbf16>
    %38 = math.tanh %37 : vector<8x256xbf16>
    %c768_27 = arith.constant 768 : index
    %c0_28 = arith.constant 0 : index
    %39 = vector.load %arg4[%c768_27, %c0_28] : memref<1024x128xbf16, #tpu.memory_space<vmem>>, vector<256x128xbf16>
    %cst_29 = arith.constant dense<0.000000e+00> : vector<8x128xf32>
    %40 = tpu.matmul %38, %39, %cst_29 {dimension_numbers = #tpu.dot_dimension_numbers<[1], [0], [0], [1], [0, 0, 1, 1], [], []>} : vector<8x256xbf16>, vector<256x128xbf16>, vector<8x128xf32> -> vector<8x128xf32>
    %41 = arith.addf %31, %40 : vector<8x128xf32>
    %c0_30 = arith.constant 0 : index
    %c0_31 = arith.constant 0 : index
    %42 = vector.load %arg5[%c0_30, %c0_31] : memref<1x128xf32, #tpu.memory_space<vmem>>, vector<1x128xf32>
    %43 = vector.broadcast %42 : vector<1x128xf32> to vector<8x128xf32>
    %44 = arith.addf %41, %43 : vector<8x128xf32>
    %cst_32 = arith.constant 0.000000e+00 : f32
    %45 = vector.broadcast %cst_32 : f32 to vector<8x128xf32>
    %46 = arith.maximumf %44, %45 : vector<8x128xf32>
    %47 = arith.truncf %46 : vector<8x128xf32> to vector<8x128xbf16>
    %c0_33 = arith.constant 0 : index
    %c0_34 = arith.constant 0 : index
    %48 = vector.load %arg6[%c0_33, %c0_34] : memref<128x128xbf16, #tpu.memory_space<vmem>>, vector<128x128xbf16>
    %cst_35 = arith.constant dense<0.000000e+00> : vector<8x128xf32>
    %49 = tpu.matmul %47, %48, %cst_35 {dimension_numbers = #tpu.dot_dimension_numbers<[1], [0], [0], [1], [0, 0, 1, 1], [], []>} : vector<8x128xbf16>, vector<128x128xbf16>, vector<8x128xf32> -> vector<8x128xf32>
    %c0_36 = arith.constant 0 : index
    %c0_37 = arith.constant 0 : index
    %50 = vector.load %arg7[%c0_36, %c0_37] : memref<1x128xf32, #tpu.memory_space<vmem>>, vector<1x128xf32>
    %51 = vector.broadcast %50 : vector<1x128xf32> to vector<8x128xf32>
    %52 = arith.addf %49, %51 : vector<8x128xf32>
    %53 = arith.truncf %52 : vector<8x128xf32> to vector<8x128xbf16>
    %c0_38 = arith.constant 0 : index
    %c0_39 = arith.constant 0 : index
    %54 = vector.load %arg8[%c0_38, %c0_39] : memref<8x128xbf16, #tpu.memory_space<vmem>>, vector<8x128xbf16>
    tpu.vector_store %arg8[%c0_38, %c0_39], %53 {strides = array<i32>} : memref<8x128xbf16, #tpu.memory_space<vmem>>, vector<8x128xbf16>,
    return
  }
  func.func @transform_0(%arg0: i32) -> (i32, i32) {
    %c0_i32 = arith.constant 0 : i32
    %c0_i32_0 = arith.constant 0 : i32
    return %arg0, %c0_i32 : i32, i32
  }
  func.func @transform_1(%arg0: i32) -> (i32, i32) {
    %c0_i32 = arith.constant 0 : i32
    %c0_i32_0 = arith.constant 0 : i32
    %c0_i32_1 = arith.constant 0 : i32
    return %c0_i32, %c0_i32_0 : i32, i32
  }
  func.func @transform_2(%arg0: i32) -> (i32, i32) {
    %c0_i32 = arith.constant 0 : i32
    %c0_i32_0 = arith.constant 0 : i32
    %c0_i32_1 = arith.constant 0 : i32
    return %c0_i32, %c0_i32_0 : i32, i32
  }
  func.func @transform_3(%arg0: i32) -> (i32, i32) {
    %c0_i32 = arith.constant 0 : i32
    %c0_i32_0 = arith.constant 0 : i32
    %c0_i32_1 = arith.constant 0 : i32
    return %c0_i32, %c0_i32_0 : i32, i32
  }
  func.func @transform_4(%arg0: i32) -> (i32, i32) {
    %c0_i32 = arith.constant 0 : i32
    %c0_i32_0 = arith.constant 0 : i32
    %c0_i32_1 = arith.constant 0 : i32
    return %c0_i32, %c0_i32_0 : i32, i32
  }
  func.func @transform_5(%arg0: i32) -> (i32, i32) {
    %c0_i32 = arith.constant 0 : i32
    %c0_i32_0 = arith.constant 0 : i32
    %c0_i32_1 = arith.constant 0 : i32
    return %c0_i32, %c0_i32_0 : i32, i32
  }
  func.func @transform_6(%arg0: i32) -> (i32, i32) {
    %c0_i32 = arith.constant 0 : i32
    %c0_i32_0 = arith.constant 0 : i32
    %c0_i32_1 = arith.constant 0 : i32
    return %c0_i32, %c0_i32_0 : i32, i32
  }
  func.func @transform_7(%arg0: i32) -> (i32, i32) {
    %c0_i32 = arith.constant 0 : i32
    %c0_i32_0 = arith.constant 0 : i32
    return %arg0, %c0_i32 : i32, i32
  }
}

</mosaic_0001>

<bundles_post_ra>
// kernel: fully_connected_forward.1
= control target key start
LH: loop header
LB: loop body
LE: loop exit
PB: predicated region body
PF: predicated region fallthrough
CT: control target
= control target key end

     0   :  { %12 = vsyncpa [#allocation3], 0  ;;  %s6752_s0 = inlined_call_operand.vmem [shape: bf16[8,784], index: 0, kind: input, shape index: {}]   ;;  %s6753_s1 = inlined_call_operand.hbm [shape: bf16[784,1024], index: 1, kind: input, shape index: {}]   ;;  %s6754_s2 = inlined_call_operand.hbm [shape: f32[1,1024], index: 2, kind: input, shape index: {}]   ;;  %s6755_s3 = inlined_call_operand.hbm [shape: bf16[1024,128], index: 3, kind: input, shape index: {}]   ;;  %s6756_s4 = inlined_call_operand.hbm [shape: f32[1,128], index: 4, kind: input, shape index: {}]   ;;  %s6757_s5 = inlined_call_operand.hbm [shape: bf16[128,128], index: 5, kind: input, shape index: {}]   ;;  %s6758_s6 = inlined_call_operand.hbm [shape: f32[1,128], index: 6, kind: input, shape index: {}]   ;;  %s6759_s7 = inlined_call_operand.vmem [shape: bf16[8,128], index: 7, kind: output, shape index: {}]  }
   0x1   :  { %13 = vsyncpa [#allocation5], 0 }
   0x2   :  { %14 = vsyncpa [#allocation8], 0  ;;  %s36_s26 = sshll.u32 %s6754_s2, 4  ;;  %s37_s26 = int_to_ptr.hbm [resolvable:$true] %s36_s26 }
   0x3   :  { %15 = vsyncpa [#allocation11], 0  ;;  %s6507_s27 = smov [#allocation4]   ;;  %s60_s8 = sshll.u32 %s6756_s4, 4  ;;  %s61_s8 = int_to_ptr.hbm [resolvable:$true] %s60_s8 }
   0x4   :  { %s38_s28 = sshll.u32 %s6507_s27, 4  ;;  %s6508_s9 = smov [#allocation7]   ;;  %s39_s28 = int_to_ptr.vmem [resolvable:$true] %s38_s28 }
   0x5   :  { %41 = dma.hbm_to_vmem [thread:$0]  %s37_s26, 128, %s39_s28, [#allocation5]  }
   0x6   :  { %s62_s10 = sshll.u32 %s6508_s9, 4  ;;  %s22_s13 = sshll.u32 %s6753_s1, 4  ;;  %s63_s10 = int_to_ptr.vmem [resolvable:$true] %s62_s10  ;;  %s23_s13 = int_to_ptr.hbm [resolvable:$true] %s22_s13 }
   0x7   :  { %65 = dma.hbm_to_vmem [thread:$0]  %s61_s8, 16, %s63_s10, [#allocation8]  }
   0x8   :  { %s6509_s2 = smov [#allocation2]   ;;  %s46_s17 = sshll.u32 %s6755_s3, 4  ;;  %s47_s17 = int_to_ptr.hbm [resolvable:$true] %s46_s17 }
   0x9   :  { %s24_s14 = sshll.u32 %s6509_s2, 4  ;;  %s6510_s18 = smov 512   ;;  %s25_s14 = int_to_ptr.vmem [resolvable:$true] %s24_s14 }
   0xa   :  { %s6511_s4 = smov 32   ;;  %s6512_s19 = smov [#allocation6]  }
   0xb   :  { %30 = dma.hbm_to_vmem [thread:$0]  %s23_s13, 50176, %s25_s14, [#allocation3], %s6510_s18, %s6510_s18, %s6511_s4  }
   0xc   :  { %s48_s20 = sshll.u32 %s6512_s19, 4  ;;  %s6513_s21 = smov 64   ;;  %s49_s20 = int_to_ptr.vmem [resolvable:$true] %s48_s20 }
   0xd   :  { %s6514_s22 = smov 4   ;;  %s70_s24 = sshll.u32 %s6757_s5, 4  ;;  %s71_s24 = int_to_ptr.hbm [resolvable:$true] %s70_s24 }
   0xe   :  { %54 = dma.hbm_to_vmem [thread:$0]  %s47_s17, 8192, %s49_s20, [#allocation5], %s6513_s21, %s6513_s21, %s6514_s22  }
   0xf   :  { %s6515_s25 = smov [#allocation9]   ;;  %s84_s28 = sshll.u32 %s6758_s6, 4  ;;  %s85_s28 = int_to_ptr.hbm [resolvable:$true] %s84_s28 }
  0x10   :  { %s72_s26 = sshll.u32 %s6515_s25, 4  ;;  %s6516_s29 = smov [#allocation10]   ;;  %s73_s26 = int_to_ptr.vmem [resolvable:$true] %s72_s26 }
  0x11   :  { %78 = dma.hbm_to_vmem [thread:$0]  %s71_s24, 1024, %s73_s26, [#allocation8], %s6513_s21, %s6513_s21, %s6514_s22  }
  0x12   :  { %s86_s30 = sshll.u32 %s6516_s29, 4  ;;  %s87_s30 = int_to_ptr.vmem [resolvable:$true] %s86_s30 }
  0x13   :  { %89 = dma.hbm_to_vmem [thread:$0]  %s85_s28, 16, %s87_s30, [#allocation11]  }
  0x14   :  { %6499 = dma.done.wait [#allocation3], 50176  }
  0x15   :  { %6500 = vsyncadd [#allocation3], 4294917120 }
  0x16   :  { %6501 = dma.done.wait [#allocation5], 8320  }
  0x17   :  { %6502 = vsyncadd [#allocation5], 4294958976 }
  0x18   :  { %6503 = dma.done.wait [#allocation8], 1040  }
  0x19   :  { %6504 = vsyncadd [#allocation8], 4294966256 }
  0x1a   :  { %6505 = dma.done.wait [#allocation11], 16  }
  0x1b   :  { %6506 = vsyncadd [#allocation11], 4294967280  ;;  %v4057_v0 = vld [vmem:[#allocation2 + $0x1c0] sm:$0xf]  ;;  %vm737_vm0 = vcmask 130048  }
  0x1c   :  { %v5878_v1 = vld [vmem:[#allocation2 + $0x1dc] sm:$0xf0] }
  0x1d   :  { %v4121_v2 = vld [vmem:[#allocation2 + $0x3c0] sm:$0xf]  ;;  %v4058_v3 = vor.u32 %v5878_v1, %v4057_v0 }
  0x1e   :  { %v5894_v4 = vld [vmem:[#allocation2 + $0x3dc] sm:$0xf0] }
  0x1f   :  { %v4185_v5 = vld [vmem:[#allocation2 + $0x5c0] sm:$0xf]  ;;  %v4122_v7 = vor.u32 %v5894_v4, %v4121_v2  ;;  %741 = vmatpush.bf16.msra.mxu0 %v4058_v3 }
  0x20   :  { %v5910_v6 = vld [vmem:[#allocation2 + $0x5dc] sm:$0xf0] }
  0x21   :  { %v4186_v8 = vor.u32 %v5910_v6, %v4185_v5  ;;  %v4249_v9 = vld [vmem:[#allocation2 + $0x7c0] sm:$0xf]  ;;  %754 = vmatpush.bf16.msra.mxu1 %v4122_v7 }
  0x22   :  { %v5926_v10 = vld [vmem:[#allocation2 + $0x7dc] sm:$0xf0] }
  0x23   :  { %v4049_v11 = vld [vmem:[#allocation2 + $0x180] sm:$0xf]  ;;  %v4250_v12 = vor.u32 %v5926_v10, %v4249_v9  ;;  %767 = vmatpush.bf16.msra.mxu2 %v4186_v8 }
  0x24   :  { %v5876_v13 = vld [vmem:[#allocation2 + $0x19c] sm:$0xf0] }
  0x25   :  { %v4113_v14 = vld [vmem:[#allocation2 + $0x380] sm:$0xf]  ;;  %v4050_v16 = vor.u32 %v5876_v13, %v4049_v11  ;;  %780 = vmatpush.bf16.msra.mxu3 %v4250_v12 }
  0x26   :  { %v5892_v15 = vld [vmem:[#allocation2 + $0x39c] sm:$0xf0] }
  0x27   :  { %v4114_v17 = vor.u32 %v5892_v15, %v4113_v14  ;;  %v4177_v18 = vld [vmem:[#allocation2 + $0x580] sm:$0xf]  ;;  %742 = vmatpush.bf16.msra.mxu0 %v4050_v16 }
  0x28   :  { %v5908_v19 = vld [vmem:[#allocation2 + $0x59c] sm:$0xf0] }
  0x29   :  { %v4241_v20 = vld [vmem:[#allocation2 + $0x780] sm:$0xf]  ;;  %v4178_v21 = vor.u32 %v5908_v19, %v4177_v18  ;;  %755 = vmatpush.bf16.msra.mxu1 %v4114_v17 }
  0x2a   :  { %v5924_v22 = vld [vmem:[#allocation2 + $0x79c] sm:$0xf0] }
  0x2b   :  { %v4041_v23 = vld [vmem:[#allocation2 + $0x140] sm:$0xf]  ;;  %v4242_v25 = vor.u32 %v5924_v22, %v4241_v20  ;;  %768 = vmatpush.bf16.msra.mxu2 %v4178_v21 }
  0x2c   :  { %v5874_v24 = vld [vmem:[#allocation2 + $0x15c] sm:$0xf0] }
  0x2d   :  { %v4105_v26 = vld [vmem:[#allocation2 + $0x340] sm:$0xf]  ;;  %v4042_v29 = vor.u32 %v5874_v24, %v4041_v23  ;;  %781 = vmatpush.bf16.msra.mxu3 %v4242_v25  ;;  %v116_v25 = vld [vmem:[%s6752_s0 + $0x8] sm:$0xff] }
  0x2e   :  { %v5890_v27 = vld [vmem:[#allocation2 + $0x35c] sm:$0xf0] }
  0x2f   :  { %v4169_v28 = vld [vmem:[#allocation2 + $0x540] sm:$0xf]  ;;  %v4106_v33 = vor.u32 %v5890_v27, %v4105_v26  ;;  %743 = vmatpush.bf16.msra.mxu0 %v4042_v29 }
  0x30   :  { %v5906_v30 = vld [vmem:[#allocation2 + $0x55c] sm:$0xf0] }
  0x31   :  { %v4233_v31 = vld [vmem:[#allocation2 + $0x740] sm:$0xf]  ;;  %v4170_v34 = vor.u32 %v5906_v30, %v4169_v28  ;;  %756 = vmatpush.bf16.msra.mxu1 %v4106_v33 }
  0x32   :  { %v5922_v32 = vld [vmem:[#allocation2 + $0x75c] sm:$0xf0] }
  0x33   :  { %v4033_v35 = vld [vmem:[#allocation2 + $0x100] sm:$0xf]  ;;  %v4234_v38 = vor.u32 %v5922_v32, %v4233_v31  ;;  %769 = vmatpush.bf16.msra.mxu2 %v4170_v34  ;;  %v5877_v34 = vld [vmem:[#allocation2 + $0x1c4] sm:$0xf] }
  0x34   :  { %v5872_v36 = vld [vmem:[#allocation2 + $0x11c] sm:$0xf0] }
  0x35   :  { %v4097_v37 = vld [vmem:[#allocation2 + $0x300] sm:$0xf]  ;;  %v4034_v44 = vor.u32 %v5872_v36, %v4033_v35  ;;  %782 = vmatpush.bf16.msra.mxu3 %v4234_v38  ;;  %v4059_v35 = vld [vmem:[#allocation2 + $0x1e0] sm:$0xf0]  ;;  %v229_v36 = vunpack.c.l.b16 %v116_v25 }
  0x36   :  { %v5888_v39 = vld [vmem:[#allocation2 + $0x31c] sm:$0xf0] }
  0x37   :  { %v4161_v40 = vld [vmem:[#allocation2 + $0x500] sm:$0xf]  ;;  %v4098_v45 = vor.u32 %v5888_v39, %v4097_v37  ;;  %744 = vmatpush.bf16.msra.mxu0 %v4034_v44 }
  0x38   :  { %v5904_v41 = vld [vmem:[#allocation2 + $0x51c] sm:$0xf0] }
  0x39   :  { %v4225_v42 = vld [vmem:[#allocation2 + $0x700] sm:$0xf]  ;;  %v4162_v46 = vor.u32 %v5904_v41, %v4161_v40  ;;  %757 = vmatpush.bf16.msra.mxu1 %v4098_v45 }
  0x3a   :  { %v5920_v43 = vld [vmem:[#allocation2 + $0x71c] sm:$0xf0] }
  0x3b   :  { %v4025_v47 = vld [vmem:[#allocation2 + $0xc0] sm:$0xf]  ;;  %v4226_v50 = vor.u32 %v5920_v43, %v4225_v42  ;;  %770 = vmatpush.bf16.msra.mxu2 %v4162_v46  ;;  %v230_v42 = vunpack.c.h.b16 %v116_v25  ;;  %v5893_v46 = vld [vmem:[#allocation2 + $0x3c4] sm:$0xf] }
  0x3c   :  { %v5870_v48 = vld [vmem:[#allocation2 + $0xdc] sm:$0xf0]  ;;  %v5887_v25 = vld [vmem:[#allocation2 + $0x304] sm:$0xf] }
  0x3d   :  { %v4089_v49 = vld [vmem:[#allocation2 + $0x2c0] sm:$0xf]  ;;  %v4026_v56 = vor.u32 %v5870_v48, %v4025_v47  ;;  %783 = vmatpush.bf16.msra.mxu3 %v4226_v50  ;;  %v4123_v47 = vld [vmem:[#allocation2 + $0x3e0] sm:$0xf0] }
  0x3e   :  { %v5886_v51 = vld [vmem:[#allocation2 + $0x2dc] sm:$0xf0] }
  0x3f   :  { %v4153_v52 = vld [vmem:[#allocation2 + $0x4c0] sm:$0xf]  ;;  %v4090_v57 = vor.u32 %v5886_v51, %v4089_v49  ;;  %745 = vmatpush.bf16.msra.mxu0 %v4026_v56  ;;  %v4062_v49 = vor.u32 %v5877_v34, %v4059_v35  ;;  %v4051_v56 = vld [vmem:[#allocation2 + $0x1a0] sm:$0xf0] }
  0x40   :  { %v5902_v53 = vld [vmem:[#allocation2 + $0x4dc] sm:$0xf0]  ;;  %v4027_v34 = vld [vmem:[#allocation2 + $0xe0] sm:$0xf0] }
  0x41   :  { %v4217_v54 = vld [vmem:[#allocation2 + $0x6c0] sm:$0xf]  ;;  %v4154_v58 = vor.u32 %v5902_v53, %v4153_v52  ;;  %758 = vmatpush.bf16.msra.mxu1 %v4090_v57  ;;  %v6581_v53 = vpack.c.b16 %v229_v36, %v229_v36 }
  0x42   :  { %v5918_v55 = vld [vmem:[#allocation2 + $0x6dc] sm:$0xf0] }
  0x43   :  { %v4017_v59 = vld [vmem:[#allocation2 + $0x80] sm:$0xf]  ;;  %v4218_v62 = vor.u32 %v5918_v55, %v4217_v54  ;;  %771 = vmatpush.bf16.msra.mxu2 %v4154_v58  ;;  %v5875_v55 = vld [vmem:[#allocation2 + $0x184] sm:$0xf] }
  0x44   :  { %v5868_v60 = vld [vmem:[#allocation2 + $0x9c] sm:$0xf0] }
  0x45   :  { %v4081_v61 = vld [vmem:[#allocation2 + $0x280] sm:$0xf]  ;;  %v4018_v4 = vor.u32 %v5868_v60, %v4017_v59  ;;  %784 = vmatpush.bf16.msra.mxu3 %v4218_v62  ;;  %v6585_v60 = vpack.c.b16 %v230_v42, %v230_v42 }
  0x46   :  { %v5884_v63 = vld [vmem:[#allocation2 + $0x29c] sm:$0xf0] }
  0x47   :  { %v4145_v0 = vld [vmem:[#allocation2 + $0x480] sm:$0xf]  ;;  %v4082_v5 = vor.u32 %v5884_v63, %v4081_v61  ;;  %746 = vmatpush.bf16.msra.mxu0 %v4018_v4  ;;  %v4126_v61 = vor.u32 %v5893_v46, %v4123_v47  ;;  %v5891_v63 = vld [vmem:[#allocation2 + $0x384] sm:$0xf] }
  0x48   :  { %v5900_v1 = vld [vmem:[#allocation2 + $0x49c] sm:$0xf0]  ;;  %v5867_v46 = vld [vmem:[#allocation2 + $0x84] sm:$0xf] }
  0x49   :  { %v4209_v2 = vld [vmem:[#allocation2 + $0x680] sm:$0xf]  ;;  %v4146_v6 = vor.u32 %v5900_v1, %v4145_v0  ;;  %759 = vmatpush.bf16.msra.mxu1 %v4082_v5  ;;  %v4115_v0 = vld [vmem:[#allocation2 + $0x3a0] sm:$0xf0] }
  0x4a   :  { %v5916_v3 = vld [vmem:[#allocation2 + $0x69c] sm:$0xf0]  ;;  %v4019_v47 = vld [vmem:[#allocation2 + $0xa0] sm:$0xf0] }
  0x4b   :  { %v4009_v7 = vld [vmem:[#allocation2 + $0x40] sm:$0xf]  ;;  %v4210_v10 = vor.u32 %v5916_v3, %v4209_v2  ;;  %772 = vmatpush.bf16.msra.mxu2 %v4146_v6  ;;  %v4054_v2 = vor.u32 %v5875_v55, %v4051_v56  ;;  %v4022_v55 = vor.u32 %v5867_v46, %v4019_v47  ;;  %v4371_v46 = vld [vmem:[#allocation2 + $0xba0] sm:$0xf0] }
  0x4c   :  { %v5866_v8 = vld [vmem:[#allocation2 + $0x5c] sm:$0xf0]  ;;  %v5905_v47 = vld [vmem:[#allocation2 + $0x544] sm:$0xf] }
  0x4d   :  { %v4073_v9 = vld [vmem:[#allocation2 + $0x240] sm:$0xf]  ;;  %v4010_v17 = vor.u32 %v5866_v8, %v4009_v7  ;;  %785 = vmatpush.bf16.msra.mxu3 %v4210_v10  ;;  %v5873_v7 = vld [vmem:[#allocation2 + $0x144] sm:$0xf]  ;;  %v4118_v10 = vor.u32 %v5891_v63, %v4115_v0 }
  0x4e   :  { %v5882_v11 = vld [vmem:[#allocation2 + $0x25c] sm:$0xf0]  ;;  %v4043_v8 = vld [vmem:[#allocation2 + $0x160] sm:$0xf0] }
  0x4f   :  { %v4137_v12 = vld [vmem:[#allocation2 + $0x440] sm:$0xf]  ;;  %v4074_v21 = vor.u32 %v5882_v11, %v4073_v9  ;;  %747 = vmatpush.bf16.msra.mxu0 %v4010_v17  ;;  %v4011_v63 = vld [vmem:[#allocation2 + $0x60] sm:$0xf0] }
  0x50   :  { %v5898_v13 = vld [vmem:[#allocation2 + $0x45c] sm:$0xf0]  ;;  %v5881_v0 = vld [vmem:[#allocation2 + $0x244] sm:$0xf] }
  0x51   :  { %v4201_v14 = vld [vmem:[#allocation2 + $0x640] sm:$0xf]  ;;  %v4138_v22 = vor.u32 %v5898_v13, %v4137_v12  ;;  %760 = vmatpush.bf16.msra.mxu1 %v4074_v21  ;;  %v5889_v12 = vld [vmem:[#allocation2 + $0x344] sm:$0xf] }
  0x52   :  { %v5914_v15 = vld [vmem:[#allocation2 + $0x65c] sm:$0xf0]  ;;  %v4107_v13 = vld [vmem:[#allocation2 + $0x360] sm:$0xf0] }
  0x53   :  { %v4001_v16 = vld [vmem:[#allocation2] sm:$0xf]  ;;  %v4202_v26 = vor.u32 %v5914_v15, %v4201_v14  ;;  %773 = vmatpush.bf16.msra.mxu2 %v4138_v22  ;;  %v4046_v15 = vor.u32 %v5873_v7, %v4043_v8  ;;  %v4035_v21 = vld [vmem:[#allocation2 + $0x120] sm:$0xf0]  ;;  %v118_v22 = vld [vmem:[%s6752_s0 + $0x18] sm:$0xf] }
  0x54   :  { %v5864_v18 = vld [vmem:[#allocation2 + $0x1c] sm:$0xf0]  ;;  %v233_v35 = vunpack.c.l.b16 %v118_v22  ;;  %v4315_v22 = vld [vmem:[#allocation2 + $0x9e0] sm:$0xf0] }
  0x55   :  { %v4065_v19 = vld [vmem:[#allocation2 + $0x200] sm:$0xf]  ;;  %v4002_v33 = vor.u32 %v5864_v18, %v4001_v16  ;;  %786 = vmatpush.bf16.msra.mxu3 %v4202_v26  ;;  %v4099_v26 = vld [vmem:[#allocation2 + $0x320] sm:$0xf0] }
  0x56   :  { %v5880_v20 = vld [vmem:[#allocation2 + $0x21c] sm:$0xf0]  ;;  %v4102_v36 = vor.u32 %v5887_v25, %v4099_v26  ;;  %v5879_v26 = vld [vmem:[#allocation2 + $0x204] sm:$0xf] }
  0x57   :  { %v4129_v23 = vld [vmem:[#allocation2 + $0x400] sm:$0xf]  ;;  %v4066_v38 = vor.u32 %v5880_v20, %v4065_v19  ;;  %748 = vmatpush.bf16.msra.mxu0 %v4002_v33  ;;  %v5871_v20 = vld [vmem:[#allocation2 + $0x104] sm:$0xf] }
  0x58   :  { %v5896_v24 = vld [vmem:[#allocation2 + $0x41c] sm:$0xf0]  ;;  %v5869_v33 = vld [vmem:[#allocation2 + $0xc4] sm:$0xf] }
  0x59   :  { %v4193_v27 = vld [vmem:[#allocation2 + $0x600] sm:$0xf]  ;;  %v4130_v39 = vor.u32 %v5896_v24, %v4129_v23  ;;  %761 = vmatpush.bf16.msra.mxu1 %v4066_v38  ;;  %v4110_v23 = vor.u32 %v5889_v12, %v4107_v13  ;;  %v5885_v38 = vld [vmem:[#allocation2 + $0x2c4] sm:$0xf] }
  0x5a   :  { %v5912_v28 = vld [vmem:[#allocation2 + $0x61c] sm:$0xf0]  ;;  %v5863_v12 = vld [vmem:[#allocation2 + $0x4] sm:$0xf] }
  0x5b   :  { %v4313_v29 = vld [vmem:[#allocation2 + $0x9c0] sm:$0xf]  ;;  %v4194_v43 = vor.u32 %v5912_v28, %v4193_v27  ;;  %774 = vmatpush.bf16.msra.mxu2 %v4130_v39  ;;  %v4038_v28 = vor.u32 %v5871_v20, %v4035_v21  ;;  %v4091_v39 = vld [vmem:[#allocation2 + $0x2e0] sm:$0xf0] }
  0x5c   :  { %v5942_v30 = vld [vmem:[#allocation2 + $0x9dc] sm:$0xf0]  ;;  %v4003_v13 = vld [vmem:[#allocation2 + $0x20] sm:$0xf0] }
  0x5d   :  { %v4377_v31 = vld [vmem:[#allocation2 + $0xbc0] sm:$0xf]  ;;  %v4314_v44 = vor.u32 %v5942_v30, %v4313_v29  ;;  %787 = vmatpush.bf16.msra.mxu3 %v4194_v43  ;;  %v5941_v21 = vld [vmem:[#allocation2 + $0x9c4] sm:$0xf]  ;;  %v4006_v25 = vor.u32 %v5863_v12, %v4003_v13 }
  0x5e   :  { %v5958_v32 = vld [vmem:[#allocation2 + $0xbdc] sm:$0xf0]  ;;  %775 = vmatmul.bf16.vlgmr.msra.gmra.mxu2 %v6581_v53  ;;  %v5901_v12 = vld [vmem:[#allocation2 + $0x4c4] sm:$0xf] }
  0x5f   :  { %v115_v37 = vld [vmem:[%s6752_s0] sm:$0xff]  ;;  %v4378_v48 = vor.u32 %v5958_v32, %v4377_v31  ;;  %793 = vmatpush.bf16.msrb.mxu0 %v4314_v44 }
  0x60   :  { %v4385_v40 = vld [vmem:[#allocation2 + $0xc00] sm:$0xf]  ;;  %v227_v41 = vunpack.c.l.b16 %v115_v37  ;;  %v228_v58 = vunpack.c.h.b16 %v115_v37  ;;  %788 = vmatmul.bf16.vlgmr.msra.gmra.mxu3 %v6585_v60 }
  0x61   :  { %v5960_v45 = vld [vmem:[#allocation2 + $0xc1c] sm:$0xf0]  ;;  %806 = vmatpush.bf16.msrb.mxu1 %v4378_v48  ;;  %832 = vmatpush.bf16.msrb.mxu3 %v4062_v49  ;;  %v6596_v48 = vpack.c.b16 %v233_v35, %v233_v35  ;;  %v4094_v49 = vor.u32 %v5885_v38, %v4091_v39  ;;  %v4179_v35 = vld [vmem:[#allocation2 + $0x5a0] sm:$0xf0] }
  0x62   :  { %v4305_v50 = vld [vmem:[#allocation2 + $0x980] sm:$0xf]  ;;  %v6583_v57 = vpack.c.b16 %v227_v41, %v227_v41  ;;  %v4386_v59 = vor.u32 %v5960_v45, %v4385_v40  ;;  %v6589_v9 = vpack.c.b16 %v228_v58, %v228_v58  ;;  %v4030_v41 = vor.u32 %v5869_v33, %v4027_v34 }
  0x63   :  { %v5940_v51 = vld [vmem:[#allocation2 + $0x99c] sm:$0xf0]  ;;  %v4318_v33 = vor.u32 %v5941_v21, %v4315_v22  ;;  %v5949_v22 = vld [vmem:[#allocation2 + $0xac4] sm:$0xf] }
  0x64   :  { %v4369_v52 = vld [vmem:[#allocation2 + $0xb80] sm:$0xf]  ;;  %v4306_v62 = vor.u32 %v5940_v51, %v4305_v50  ;;  %749 = vmatmul.bf16.vlgmr.msra.gmra.mxu0 %v6583_v57  ;;  %826 = vmatpush.bf16.msrb.mxu2 %v4386_v59  ;;  %v5883_v51 = vld [vmem:[#allocation2 + $0x284] sm:$0xf] }
  0x65   :  { %v5956_v54 = vld [vmem:[#allocation2 + $0xb9c] sm:$0xf0]  ;;  %833 = vmatpush.bf16.msrb.mxu3 %v4054_v2  ;;  %762 = vmatmul.bf16.vlgmr.msra.gmra.mxu1 %v6589_v9 }
  0x66   :  { %v4370_v1 = vor.u32 %v5956_v54, %v4369_v52  ;;  %v4297_v3 = vld [vmem:[#allocation2 + $0x940] sm:$0xf]  ;;  %794 = vmatpush.bf16.msrb.mxu0 %v4306_v62  ;;  %v4083_v52 = vld [vmem:[#allocation2 + $0x2a0] sm:$0xf0] }
  0x67   :  { %v5938_v4 = vld [vmem:[#allocation2 + $0x95c] sm:$0xf0]  ;;  %v5865_v62 = vld [vmem:[#allocation2 + $0x44] sm:$0xf] }
  0x68   :  { %v4361_v5 = vld [vmem:[#allocation2 + $0xb40] sm:$0xf]  ;;  %845 = vmatpush.bf16.msra.mxu2 %v4126_v61  ;;  %v4298_v11 = vor.u32 %v5938_v4, %v4297_v3  ;;  %807 = vmatpush.bf16.msrb.mxu1 %v4370_v1  ;;  %v4086_v1 = vor.u32 %v5883_v51, %v4083_v52  ;;  %v4075_v3 = vld [vmem:[#allocation2 + $0x260] sm:$0xf0]  ;;  %v4014_v7 = vor.u32 %v5865_v62, %v4011_v63 }
  0x69   :  { %v5954_v6 = vld [vmem:[#allocation2 + $0xb5c] sm:$0xf0]  ;;  %834 = vmatpush.bf16.msrb.mxu3 %v4046_v15  ;;  %v4187_v15 = vld [vmem:[#allocation2 + $0x5e0] sm:$0xf0] }
  0x6a   :  { %v4362_v14 = vor.u32 %v5954_v6, %v4361_v5  ;;  %v4289_v16 = vld [vmem:[#allocation2 + $0x900] sm:$0xf]  ;;  %795 = vmatpush.bf16.msrb.mxu0 %v4298_v11  ;;  %v117_v5 = vld [vmem:[%s6752_s0 + $0x10] sm:$0xff]  ;;  %v5921_v51 = vld [vmem:[#allocation2 + $0x744] sm:$0xf] }
  0x6b   :  { %v5936_v17 = vld [vmem:[#allocation2 + $0x91c] sm:$0xf0]  ;;  %v4235_v52 = vld [vmem:[#allocation2 + $0x760] sm:$0xf0] }
  0x6c   :  { %v4353_v18 = vld [vmem:[#allocation2 + $0xb00] sm:$0xf]  ;;  %846 = vmatpush.bf16.msra.mxu2 %v4118_v10  ;;  %v4290_v24 = vor.u32 %v5936_v17, %v4289_v16  ;;  %808 = vmatpush.bf16.msrb.mxu1 %v4362_v14  ;;  %v5909_v14 = vld [vmem:[#allocation2 + $0x5c4] sm:$0xf] }
  0x6d   :  { %v5952_v19 = vld [vmem:[#allocation2 + $0xb1c] sm:$0xf0]  ;;  %835 = vmatpush.bf16.msrb.mxu3 %v4038_v28  ;;  %v5925_v16 = vld [vmem:[#allocation2 + $0x7c4] sm:$0xf]  ;;  %v4190_v28 = vor.u32 %v5909_v14, %v4187_v15 }
  0x6e   :  { %v4354_v27 = vor.u32 %v5952_v19, %v4353_v18  ;;  %v4281_v29 = vld [vmem:[#allocation2 + $0x8c0] sm:$0xf]  ;;  %796 = vmatpush.bf16.msrb.mxu0 %v4290_v24  ;;  %4391 = vmatmul.msk.bf16.vlgmr.msrb.gmra.mxu2 %vm737_vm0, %v6596_v48  ;;  %v4251_v17 = vld [vmem:[#allocation2 + $0x7e0] sm:$0xf0]  ;;  %v231_v18 = vunpack.c.l.b16 %v117_v5  ;;  %v4078_v19 = vor.u32 %v5881_v0, %v4075_v3 }
  0x6f   :  { %v5934_v30 = vld [vmem:[#allocation2 + $0x8dc] sm:$0xf0]  ;;  %v4363_v62 = vld [vmem:[#allocation2 + $0xb60] sm:$0xf0] }
  0x70   :  { %v4345_v31 = vld [vmem:[#allocation2 + $0xac0] sm:$0xf]  ;;  %847 = vmatpush.bf16.msra.mxu2 %v4110_v23  ;;  %v4282_v37 = vor.u32 %v5934_v30, %v4281_v29  ;;  %809 = vmatpush.bf16.msrb.mxu1 %v4354_v27  ;;  %v232_v23 = vunpack.c.h.b16 %v117_v5  ;;  %v4067_v27 = vld [vmem:[#allocation2 + $0x220] sm:$0xf0]  ;;  %v4254_v29 = vor.u32 %v5925_v16, %v4251_v17  ;;  %v6603_v34 = vpack.c.b16 %v231_v18, %v231_v18 }
  0x71   :  { %v5950_v32 = vld [vmem:[#allocation2 + $0xadc] sm:$0xf0]  ;;  %836 = vmatpush.bf16.msrb.mxu3 %v4030_v41  ;;  %v5957_v30 = vld [vmem:[#allocation2 + $0xbc4] sm:$0xf]  ;;  %v4070_v38 = vor.u32 %v5879_v26, %v4067_v27 }
  0x72   :  { %v4346_v40 = vor.u32 %v5950_v32, %v4345_v31  ;;  %v4273_v42 = vld [vmem:[#allocation2 + $0x880] sm:$0xf]  ;;  %797 = vmatpush.bf16.msrb.mxu0 %v4282_v37  ;;  %v4379_v31 = vld [vmem:[#allocation2 + $0xbe0] sm:$0xf0]  ;;  %v6605_v39 = vpack.c.b16 %v232_v23, %v232_v23 }
  0x73   :  { %v5932_v43 = vld [vmem:[#allocation2 + $0x89c] sm:$0xf0]  ;;  %v5907_v32 = vld [vmem:[#allocation2 + $0x584] sm:$0xf] }
  0x74   :  { %v4337_v44 = vld [vmem:[#allocation2 + $0xa80] sm:$0xf]  ;;  %848 = vmatpush.bf16.msra.mxu2 %v4102_v36  ;;  %v4274_v50 = vor.u32 %v5932_v43, %v4273_v42  ;;  %810 = vmatpush.bf16.msrb.mxu1 %v4346_v40  ;;  %v5923_v36 = vld [vmem:[#allocation2 + $0x784] sm:$0xf]  ;;  %v4382_v42 = vor.u32 %v5957_v30, %v4379_v31  ;;  %v4182_v43 = vor.u32 %v5907_v32, %v4179_v35 }
  0x75   :  { %v5948_v45 = vld [vmem:[#allocation2 + $0xa9c] sm:$0xf0]  ;;  %837 = vmatpush.bf16.msrb.mxu3 %v4022_v55  ;;  %v4243_v37 = vld [vmem:[#allocation2 + $0x7a0] sm:$0xf0] }
  0x76   :  { %v4338_v54 = vor.u32 %v5948_v45, %v4337_v44  ;;  %v4265_v56 = vld [vmem:[#allocation2 + $0x840] sm:$0xf]  ;;  %798 = vmatpush.bf16.msrb.mxu0 %v4274_v50  ;;  %v5939_v40 = vld [vmem:[#allocation2 + $0x984] sm:$0xf]  ;;  %v4246_v44 = vor.u32 %v5923_v36, %v4243_v37 }
  0x77   :  { %v5930_v58 = vld [vmem:[#allocation2 + $0x85c] sm:$0xf0]  ;;  %v4307_v41 = vld [vmem:[#allocation2 + $0x9a0] sm:$0xf0] }
  0x78   :  { %v4329_v59 = vld [vmem:[#allocation2 + $0xa40] sm:$0xf]  ;;  %849 = vmatpush.bf16.msra.mxu2 %v4094_v49  ;;  %v4266_v2 = vor.u32 %v5930_v58, %v4265_v56  ;;  %811 = vmatpush.bf16.msrb.mxu1 %v4338_v54  ;;  %v5955_v45 = vld [vmem:[#allocation2 + $0xb84] sm:$0xf]  ;;  %v4310_v49 = vor.u32 %v5939_v40, %v4307_v41 }
  0x79   :  { %v5946_v61 = vld [vmem:[#allocation2 + $0xa5c] sm:$0xf0]  ;;  %838 = vmatpush.bf16.msrb.mxu3 %v4014_v7  ;;  %v4171_v50 = vld [vmem:[#allocation2 + $0x560] sm:$0xf0]  ;;  %v4374_v56 = vor.u32 %v5955_v45, %v4371_v46 }
  0x7a   :  { %v4257_v4 = vld [vmem:[#allocation2 + $0x800] sm:$0xf]  ;;  %v4330_v6 = vor.u32 %v5946_v61, %v4329_v59  ;;  %799 = vmatpush.bf16.msrb.mxu0 %v4266_v2  ;;  %v5937_v54 = vld [vmem:[#allocation2 + $0x944] sm:$0xf]  ;;  %v4174_v58 = vor.u32 %v5905_v47, %v4171_v50  ;;  %v4238_v59 = vor.u32 %v5921_v51, %v4235_v52 }
  0x7b   :  { %v5928_v8 = vld [vmem:[#allocation2 + $0x81c] sm:$0xf0]  ;;  %v4299_v55 = vld [vmem:[#allocation2 + $0x960] sm:$0xf0] }
  0x7c   :  { %v4321_v10 = vld [vmem:[#allocation2 + $0xa00] sm:$0xf]  ;;  %850 = vmatpush.bf16.msra.mxu2 %v4086_v1  ;;  %v4258_v20 = vor.u32 %v5928_v8, %v4257_v4  ;;  %812 = vmatpush.bf16.msrb.mxu1 %v4330_v6  ;;  %v5953_v61 = vld [vmem:[#allocation2 + $0xb44] sm:$0xf]  ;;  %v4302_v0 = vor.u32 %v5937_v54, %v4299_v55 }
  0x7d   :  { %v5944_v11 = vld [vmem:[#allocation2 + $0xa1c] sm:$0xf0]  ;;  %839 = vmatpush.bf16.msrb.mxu3 %v4006_v25  ;;  %v5903_v63 = vld [vmem:[#allocation2 + $0x504] sm:$0xf]  ;;  %v4366_v6 = vor.u32 %v5953_v61, %v4363_v62  ;;  %v4451_v61 = vld [vmem:[#allocation2 + $0x1c8] sm:$0xf] }
  0x7e   :  { %v4322_v24 = vor.u32 %v5944_v11, %v4321_v10  ;;  %800 = vmatpush.bf16.msrb.mxu0 %v4258_v20  ;;  %v4163_v1 = vld [vmem:[#allocation2 + $0x520] sm:$0xf0]  ;;  %v5992_v62 = vld [vmem:[#allocation2 + $0x1e4] sm:$0xf0] }
  0x7f   :  { %v5919_v2 = vld [vmem:[#allocation2 + $0x704] sm:$0xf]  ;;  %v4166_v7 = vor.u32 %v5903_v63, %v4163_v1  ;;  %v4515_v63 = vld [vmem:[#allocation2 + $0x3c8] sm:$0xf] }
  0x80   :  { %851 = vmatpush.bf16.msra.mxu2 %v4078_v19  ;;  %813 = vmatpush.bf16.msrb.mxu1 %v4322_v24  ;;  %v4227_v3 = vld [vmem:[#allocation2 + $0x720] sm:$0xf0]  ;;  %v6008_v1 = vld [vmem:[#allocation2 + $0x3e4] sm:$0xf0] }
  0x81   :  { %884 = vmatpush.bf16.msra.mxu3 %v4318_v33  ;;  %801 = vmatmul.bf16.vlgmr.msrb.gmra.mxu0 %v6603_v34  ;;  %v5935_v4 = vld [vmem:[#allocation2 + $0x904] sm:$0xf]  ;;  %v4230_v8 = vor.u32 %v5919_v2, %v4227_v3 }
  0x82   :  { %858 = vmatpush.bf16.msra.mxu0 %v4190_v28  ;;  %840 = vmatmul.bf16.vlgmr.msrb.gmra.mxu3 %v6583_v57  ;;  %v4291_v5 = vld [vmem:[#allocation2 + $0x920] sm:$0xf0] }
  0x83   :  { %814 = vmatmul.bf16.vlgmr.msrb.gmra.mxu1 %v6605_v39  ;;  %v5951_v10 = vld [vmem:[#allocation2 + $0xb04] sm:$0xf]  ;;  %v4294_v13 = vor.u32 %v5935_v4, %v4291_v5 }
  0x84   :  { %871 = vmatpush.bf16.msra.mxu1 %v4254_v29  ;;  %852 = vmatpush.bf16.msra.mxu2 %v4070_v38  ;;  %v4355_v11 = vld [vmem:[#allocation2 + $0xb20] sm:$0xf0] }
  0x85   :  { %885 = vmatpush.bf16.msra.mxu3 %v4310_v49  ;;  %v4155_v14 = vld [vmem:[#allocation2 + $0x4e0] sm:$0xf0]  ;;  %v4358_v19 = vor.u32 %v5951_v10, %v4355_v11  ;;  %v4452_v11 = vor.u32 %v5992_v62, %v4451_v61  ;;  %v5984_v61 = vld [vmem:[#allocation2 + $0xe4] sm:$0xf0] }
  0x86   :  { %859 = vmatpush.bf16.msra.mxu0 %v4182_v43  ;;  %v5917_v15 = vld [vmem:[#allocation2 + $0x6c4] sm:$0xf]  ;;  %v4158_v20 = vor.u32 %v5901_v12, %v4155_v14  ;;  %v6024_v12 = vld [vmem:[#allocation2 + $0x5e4] sm:$0xf0] }
  0x87   :  { %853 = vmatmul.bf16.vlgmr.msra.gmra.mxu2 %v6589_v9  ;;  %v4219_v16 = vld [vmem:[#allocation2 + $0x6e0] sm:$0xf0]  ;;  %v6040_v14 = vld [vmem:[#allocation2 + $0x7e4] sm:$0xf0] }
  0x88   :  { %897 = vmatpush.bf16.msrb.mxu2 %v4382_v42  ;;  %872 = vmatpush.bf16.msra.mxu1 %v4246_v44  ;;  %v5933_v17 = vld [vmem:[#allocation2 + $0x8c4] sm:$0xf]  ;;  %v4222_v21 = vor.u32 %v5917_v15, %v4219_v16  ;;  %v4516_v15 = vor.u32 %v6008_v1, %v4515_v63  ;;  %v4483_v62 = vld [vmem:[#allocation2 + $0x2c8] sm:$0xf] }
  0x89   :  { %886 = vmatpush.bf16.msra.mxu3 %v4302_v0  ;;  %v4283_v18 = vld [vmem:[#allocation2 + $0x8e0] sm:$0xf0]  ;;  %v6000_v63 = vld [vmem:[#allocation2 + $0x2e4] sm:$0xf0] }
  0x8a   :  { %860 = vmatpush.bf16.msra.mxu0 %v4174_v58  ;;  %v4347_v23 = vld [vmem:[#allocation2 + $0xae0] sm:$0xf0]  ;;  %v4286_v25 = vor.u32 %v5933_v17, %v4283_v18  ;;  %v4443_v17 = vld [vmem:[#allocation2 + $0x188] sm:$0xf] }
  0x8b   :  { %v5899_v24 = vld [vmem:[#allocation2 + $0x484] sm:$0xf]  ;;  %v4350_v31 = vor.u32 %v5949_v22, %v4347_v23  ;;  %v5990_v18 = vld [vmem:[#allocation2 + $0x1a4] sm:$0xf0] }
  0x8c   :  { %898 = vmatpush.bf16.msrb.mxu2 %v4374_v56  ;;  %873 = vmatpush.bf16.msra.mxu1 %v4238_v59  ;;  %v4147_v26 = vld [vmem:[#allocation2 + $0x4a0] sm:$0xf0] }
  0x8d   :  { %887 = vmatpush.bf16.msra.mxu3 %v4294_v13  ;;  %v5915_v27 = vld [vmem:[#allocation2 + $0x684] sm:$0xf]  ;;  %v4150_v32 = vor.u32 %v5899_v24, %v4147_v26  ;;  %v4643_v13 = vld [vmem:[#allocation2 + $0x7c8] sm:$0xf] }
  0x8e   :  { %861 = vmatpush.bf16.msra.mxu0 %v4166_v7  ;;  %v4211_v28 = vld [vmem:[#allocation2 + $0x6a0] sm:$0xf0]  ;;  %v4644_v23 = vor.u32 %v6040_v14, %v4643_v13  ;;  %v4571_v24 = vld [vmem:[#allocation2 + $0x588] sm:$0xf] }
  0x8f   :  { %v5931_v29 = vld [vmem:[#allocation2 + $0x884] sm:$0xf]  ;;  %v4214_v33 = vor.u32 %v5915_v27, %v4211_v28  ;;  %v6022_v26 = vld [vmem:[#allocation2 + $0x5a4] sm:$0xf0] }
  0x90   :  { %899 = vmatpush.bf16.msrb.mxu2 %v4366_v6  ;;  %874 = vmatpush.bf16.msra.mxu1 %v4230_v8  ;;  %v4275_v30 = vld [vmem:[#allocation2 + $0x8a0] sm:$0xf0]  ;;  %v4579_v8 = vld [vmem:[#allocation2 + $0x5c8] sm:$0xf] }
  0x91   :  { %v5947_v35 = vld [vmem:[#allocation2 + $0xa84] sm:$0xf]  ;;  %888 = vmatpush.bf16.msra.mxu3 %v4286_v25  ;;  %v4278_v38 = vor.u32 %v5931_v29, %v4275_v30  ;;  %v4580_v22 = vor.u32 %v6024_v12, %v4579_v8  ;;  %v4444_v25 = vor.u32 %v5990_v18, %v4443_v17  ;;  %v4635_v27 = vld [vmem:[#allocation2 + $0x788] sm:$0xf] }
  0x92   :  { %862 = vmatpush.bf16.msra.mxu0 %v4158_v20  ;;  %v4339_v36 = vld [vmem:[#allocation2 + $0xaa0] sm:$0xf0]  ;;  %v4507_v20 = vld [vmem:[#allocation2 + $0x388] sm:$0xf] }
  0x93   :  { %v5897_v37 = vld [vmem:[#allocation2 + $0x444] sm:$0xf]  ;;  %v4342_v46 = vor.u32 %v5947_v35, %v4339_v36  ;;  %v6038_v28 = vld [vmem:[#allocation2 + $0x7a4] sm:$0xf0]  ;;  %v4572_v35 = vor.u32 %v6022_v26, %v4571_v24 }
  0x94   :  { %900 = vmatpush.bf16.msrb.mxu2 %v4358_v19  ;;  %875 = vmatpush.bf16.msra.mxu1 %v4222_v21  ;;  %v4139_v40 = vld [vmem:[#allocation2 + $0x460] sm:$0xf0]  ;;  %v6006_v21 = vld [vmem:[#allocation2 + $0x3a4] sm:$0xf0]  ;;  %v4636_v36 = vor.u32 %v6038_v28, %v4635_v27 }
  0x95   :  { %v5913_v41 = vld [vmem:[#allocation2 + $0x644] sm:$0xf]  ;;  %v4142_v51 = vor.u32 %v5897_v37, %v4139_v40  ;;  %889 = vmatpush.bf16.msra.mxu3 %v4278_v38  ;;  %v4508_v29 = vor.u32 %v6006_v21, %v4507_v20  ;;  %v4435_v30 = vld [vmem:[#allocation2 + $0x148] sm:$0xf] }
  0x96   :  { %v4203_v42 = vld [vmem:[#allocation2 + $0x660] sm:$0xf0]  ;;  %863 = vmatpush.bf16.msra.mxu0 %v4150_v32  ;;  %v4499_v32 = vld [vmem:[#allocation2 + $0x348] sm:$0xf] }
  0x97   :  { %v5929_v43 = vld [vmem:[#allocation2 + $0x844] sm:$0xf]  ;;  %v4206_v52 = vor.u32 %v5913_v41, %v4203_v42  ;;  %v4563_v37 = vld [vmem:[#allocation2 + $0x548] sm:$0xf] }
  0x98   :  { %v4267_v44 = vld [vmem:[#allocation2 + $0x860] sm:$0xf0]  ;;  %901 = vmatpush.bf16.msrb.mxu2 %v4350_v31  ;;  %876 = vmatpush.bf16.msra.mxu1 %v4214_v33  ;;  %v5988_v31 = vld [vmem:[#allocation2 + $0x164] sm:$0xf0] }
  0x99   :  { %v5945_v45 = vld [vmem:[#allocation2 + $0xa44] sm:$0xf]  ;;  %v4270_v58 = vor.u32 %v5929_v43, %v4267_v44  ;;  %v6004_v33 = vld [vmem:[#allocation2 + $0x364] sm:$0xf0]  ;;  %v4436_v38 = vor.u32 %v5988_v31, %v4435_v30 }
  0x9a   :  { %v4331_v47 = vld [vmem:[#allocation2 + $0xa60] sm:$0xf0]  ;;  %864 = vmatpush.bf16.msra.mxu0 %v4142_v51  ;;  %v6020_v40 = vld [vmem:[#allocation2 + $0x564] sm:$0xf0]  ;;  %v4500_v43 = vor.u32 %v6004_v33, %v4499_v32 }
  0x9b   :  { %v5895_v49 = vld [vmem:[#allocation2 + $0x404] sm:$0xf]  ;;  %v4334_v0 = vor.u32 %v5945_v45, %v4331_v47  ;;  %890 = vmatpush.bf16.msra.mxu3 %v4270_v58  ;;  %v4627_v41 = vld [vmem:[#allocation2 + $0x748] sm:$0xf] }
  0x9c   :  { %v4131_v50 = vld [vmem:[#allocation2 + $0x420] sm:$0xf0]  ;;  %902 = vmatpush.bf16.msrb.mxu2 %v4342_v46  ;;  %877 = vmatpush.bf16.msra.mxu1 %v4206_v52  ;;  %v6036_v42 = vld [vmem:[#allocation2 + $0x764] sm:$0xf0] }
  0x9d   :  { %v5911_v54 = vld [vmem:[#allocation2 + $0x604] sm:$0xf]  ;;  %v4134_v4 = vor.u32 %v5895_v49, %v4131_v50  ;;  %v4427_v44 = vld [vmem:[#allocation2 + $0x108] sm:$0xf]  ;;  %v4564_v49 = vor.u32 %v6020_v40, %v4563_v37  ;;  %v4628_v50 = vor.u32 %v6036_v42, %v4627_v41 }
  0x9e   :  { %v4195_v55 = vld [vmem:[#allocation2 + $0x620] sm:$0xf0]  ;;  %v5986_v45 = vld [vmem:[#allocation2 + $0x124] sm:$0xf0] }
  0x9f   :  { %v5927_v56 = vld [vmem:[#allocation2 + $0x804] sm:$0xf]  ;;  %v4198_v5 = vor.u32 %v5911_v54, %v4195_v55  ;;  %865 = vmatpush.bf16.msra.mxu0 %v4134_v4  ;;  %v4491_v46 = vld [vmem:[#allocation2 + $0x308] sm:$0xf]  ;;  %v4428_v52 = vor.u32 %v5986_v45, %v4427_v44 }
  0xa0   :  { %v4259_v59 = vld [vmem:[#allocation2 + $0x820] sm:$0xf0]  ;;  %903 = vmatpush.bf16.msrb.mxu2 %v4334_v0  ;;  %v6002_v47 = vld [vmem:[#allocation2 + $0x324] sm:$0xf0] }
  0xa1   :  { %v5959_v2 = vld [vmem:[#allocation2 + $0xc04] sm:$0xf]  ;;  %v4262_v10 = vor.u32 %v5927_v56, %v4259_v59  ;;  %878 = vmatpush.bf16.msra.mxu1 %v4198_v5  ;;  %v4555_v51 = vld [vmem:[#allocation2 + $0x508] sm:$0xf]  ;;  %v4492_v58 = vor.u32 %v6002_v47, %v4491_v46 }
  0xa2   :  { %v4387_v3 = vld [vmem:[#allocation2 + $0xc20] sm:$0xf0]  ;;  %866 = vmatmul.bf16.vlgmr.msra.gmra.mxu0 %v6581_v53  ;;  %v6018_v54 = vld [vmem:[#allocation2 + $0x524] sm:$0xf0] }
  0xa3   :  { %v5943_v6 = vld [vmem:[#allocation2 + $0xa04] sm:$0xf]  ;;  %v4390_v16 = vor.u32 %v5959_v2, %v4387_v3  ;;  %891 = vmatpush.bf16.msra.mxu3 %v4262_v10  ;;  %v4619_v55 = vld [vmem:[#allocation2 + $0x708] sm:$0xf]  ;;  %v4556_v0 = vor.u32 %v6018_v54, %v4555_v51  ;;  %v5991_v51 = vld [vmem:[#allocation2 + $0x1cc] sm:$0xf] }
  0xa4   :  { %v4323_v7 = vld [vmem:[#allocation2 + $0xa20] sm:$0xf0]  ;;  %879 = vmatmul.bf16.vlgmr.msra.gmra.mxu1 %v6585_v60  ;;  %v6034_v56 = vld [vmem:[#allocation2 + $0x724] sm:$0xf0] }
  0xa5   :  { %v4326_v19 = vor.u32 %v5943_v6, %v4323_v7  ;;  %1557 = vmatpush.bf16.msrb.mxu1 %v4452_v11  ;;  %917 = vmatpush.bf16.msrb.mxu0 %v4390_v16  ;;  %v4419_v59 = vld [vmem:[#allocation2 + $0xc8] sm:$0xf]  ;;  %v4620_v1 = vor.u32 %v6034_v56, %v4619_v55  ;;  %v4484_v7 = vor.u32 %v6000_v63, %v4483_v62  ;;  %v4453_v55 = vld [vmem:[#allocation2 + $0x1e8] sm:$0xf0] }
  0xa6   :  { %892 = vmatmul.bf16.vlgmr.msra.gmra.mxu3 %v6603_v34  ;;  %v4547_v2 = vld [vmem:[#allocation2 + $0x4c8] sm:$0xf]  ;;  %v4420_v3 = vor.u32 %v5984_v61, %v4419_v59 }
  0xa7   :  { %1570 = vmatpush.bf16.msrb.mxu3 %v4516_v15  ;;  %904 = vmatpush.bf16.msrb.mxu2 %v4326_v19  ;;  %v6016_v4 = vld [vmem:[#allocation2 + $0x4e4] sm:$0xf0] }
  0xa8   :  { %v4611_v5 = vld [vmem:[#allocation2 + $0x6c8] sm:$0xf]  ;;  %v4548_v13 = vor.u32 %v6016_v4, %v4547_v2 }
  0xa9   :  { %1583 = vmatpush.bf16.msra.mxu0 %v4580_v22  ;;  %1558 = vmatpush.bf16.msrb.mxu1 %v4444_v25  ;;  %v6032_v6 = vld [vmem:[#allocation2 + $0x6e4] sm:$0xf0] }
  0xaa   :  { %905 = vmatmul.bf16.vlgmr.msrb.gmra.mxu2 %v6605_v39  ;;  %v4411_v8 = vld [vmem:[#allocation2 + $0x88] sm:$0xf]  ;;  %v4612_v14 = vor.u32 %v6032_v6, %v4611_v5  ;;  %v6007_v5 = vld [vmem:[#allocation2 + $0x3cc] sm:$0xf] }
  0xab   :  { %1596 = vmatpush.bf16.msra.mxu2 %v4644_v23  ;;  %1571 = vmatpush.bf16.msrb.mxu3 %v4508_v29  ;;  %v5982_v10 = vld [vmem:[#allocation2 + $0xa4] sm:$0xf0]  ;;  %v4517_v6 = vld [vmem:[#allocation2 + $0x3e8] sm:$0xf0] }
  0xac   :  { %v4475_v11 = vld [vmem:[#allocation2 + $0x288] sm:$0xf]  ;;  %v4412_v16 = vor.u32 %v5982_v10, %v4411_v8  ;;  %v5989_v8 = vld [vmem:[#allocation2 + $0x18c] sm:$0xf] }
  0xad   :  { %1584 = vmatpush.bf16.msra.mxu0 %v4572_v35  ;;  %1559 = vmatpush.bf16.msrb.mxu1 %v4436_v38  ;;  %v5998_v12 = vld [vmem:[#allocation2 + $0x2a4] sm:$0xf0]  ;;  %v4445_v10 = vld [vmem:[#allocation2 + $0x1a8] sm:$0xf0] }
  0xae   :  { %v4539_v15 = vld [vmem:[#allocation2 + $0x488] sm:$0xf]  ;;  %v4476_v20 = vor.u32 %v5998_v12, %v4475_v11 }
  0xaf   :  { %1597 = vmatpush.bf16.msra.mxu2 %v4636_v36  ;;  %1572 = vmatpush.bf16.msrb.mxu3 %v4500_v43  ;;  %v6014_v17 = vld [vmem:[#allocation2 + $0x4a4] sm:$0xf0] }
  0xb0   :  { %v4603_v18 = vld [vmem:[#allocation2 + $0x688] sm:$0xf]  ;;  %v4540_v25 = vor.u32 %v6014_v17, %v4539_v15  ;;  %v4448_v17 = vor.u32 %v5989_v8, %v4445_v10  ;;  %v5997_v8 = vld [vmem:[#allocation2 + $0x28c] sm:$0xf] }
  0xb1   :  { %1585 = vmatpush.bf16.msra.mxu0 %v4564_v49  ;;  %1560 = vmatpush.bf16.msrb.mxu1 %v4428_v52  ;;  %v6030_v19 = vld [vmem:[#allocation2 + $0x6a4] sm:$0xf0]  ;;  %v4477_v10 = vld [vmem:[#allocation2 + $0x2a8] sm:$0xf0] }
  0xb2   :  { %v4403_v21 = vld [vmem:[#allocation2 + $0x48] sm:$0xf]  ;;  %4392 = vmatmul.msk.bf16.vlgmr.msrb.gmra.mxu0 %vm737_vm0, %v6596_v48  ;;  %v4604_v26 = vor.u32 %v6030_v19, %v4603_v18  ;;  %v6005_v18 = vld [vmem:[#allocation2 + $0x38c] sm:$0xf] }
  0xb3   :  { %1598 = vmatpush.bf16.msra.mxu2 %v4628_v50  ;;  %1573 = vmatpush.bf16.msrb.mxu3 %v4492_v58  ;;  %v5980_v22 = vld [vmem:[#allocation2 + $0x64] sm:$0xf0]  ;;  %v4509_v19 = vld [vmem:[#allocation2 + $0x3a8] sm:$0xf0] }
  0xb4   :  { %v4467_v23 = vld [vmem:[#allocation2 + $0x248] sm:$0xf]  ;;  %v4404_v29 = vor.u32 %v5980_v22, %v4403_v21  ;;  %v5987_v21 = vld [vmem:[#allocation2 + $0x14c] sm:$0xf] }
  0xb5   :  { %1586 = vmatpush.bf16.msra.mxu0 %v4556_v0  ;;  %1561 = vmatpush.bf16.msrb.mxu1 %v4420_v3  ;;  %v5996_v24 = vld [vmem:[#allocation2 + $0x264] sm:$0xf0]  ;;  %v4456_v3 = vor.u32 %v5991_v51, %v4453_v55  ;;  %v4437_v22 = vld [vmem:[#allocation2 + $0x168] sm:$0xf0] }
  0xb6   :  { %v4531_v27 = vld [vmem:[#allocation2 + $0x448] sm:$0xf]  ;;  %v4468_v33 = vor.u32 %v5996_v24, %v4467_v23 }
  0xb7   :  { %1599 = vmatpush.bf16.msra.mxu2 %v4620_v1  ;;  %1574 = vmatpush.bf16.msrb.mxu3 %v4484_v7  ;;  %v6012_v28 = vld [vmem:[#allocation2 + $0x464] sm:$0xf0] }
  0xb8   :  { %v4595_v30 = vld [vmem:[#allocation2 + $0x648] sm:$0xf]  ;;  %v4532_v42 = vor.u32 %v6012_v28, %v4531_v27 }
  0xb9   :  { %1587 = vmatpush.bf16.msra.mxu0 %v4548_v13  ;;  %1562 = vmatpush.bf16.msrb.mxu1 %v4412_v16  ;;  %v6028_v31 = vld [vmem:[#allocation2 + $0x664] sm:$0xf0] }
  0xba   :  { %v4395_v32 = vld [vmem:[#allocation2 + $0x8] sm:$0xf]  ;;  %v4596_v43 = vor.u32 %v6028_v31, %v4595_v30  ;;  %v6003_v30 = vld [vmem:[#allocation2 + $0x34c] sm:$0xf] }
  0xbb   :  { %1600 = vmatpush.bf16.msra.mxu2 %v4612_v14  ;;  %1575 = vmatpush.bf16.msrb.mxu3 %v4476_v20  ;;  %v5978_v35 = vld [vmem:[#allocation2 + $0x24] sm:$0xf0]  ;;  %v4520_v14 = vor.u32 %v6007_v5, %v4517_v6  ;;  %v4501_v31 = vld [vmem:[#allocation2 + $0x368] sm:$0xf0] }
  0xbc   :  { %v4459_v36 = vld [vmem:[#allocation2 + $0x208] sm:$0xf]  ;;  %v4396_v47 = vor.u32 %v5978_v35, %v4395_v32  ;;  %v4429_v35 = vld [vmem:[#allocation2 + $0x128] sm:$0xf0] }
  0xbd   :  { %v5994_v37 = vld [vmem:[#allocation2 + $0x224] sm:$0xf0]  ;;  %1588 = vmatpush.bf16.msra.mxu0 %v4540_v25  ;;  %1563 = vmatpush.bf16.msrb.mxu1 %v4404_v29  ;;  %v4440_v29 = vor.u32 %v5987_v21, %v4437_v22  ;;  %v4581_v21 = vld [vmem:[#allocation2 + $0x5e8] sm:$0xf0] }
  0xbe   :  { %v4707_v38 = vld [vmem:[#allocation2 + $0x9c8] sm:$0xf]  ;;  %v4460_v52 = vor.u32 %v5994_v37, %v4459_v36  ;;  %v6039_v22 = vld [vmem:[#allocation2 + $0x7cc] sm:$0xf] }
  0xbf   :  { %v6056_v40 = vld [vmem:[#allocation2 + $0x9e4] sm:$0xf0]  ;;  %1601 = vmatpush.bf16.msra.mxu2 %v4604_v26  ;;  %1576 = vmatpush.bf16.msrb.mxu3 %v4468_v33  ;;  %v4512_v26 = vor.u32 %v6005_v18, %v4509_v19  ;;  %v5985_v33 = vld [vmem:[#allocation2 + $0x10c] sm:$0xf]  ;;  %v4480_v19 = vor.u32 %v5997_v8, %v4477_v10 }
  0xc0   :  { %v4771_v41 = vld [vmem:[#allocation2 + $0xbc8] sm:$0xf]  ;;  %v4708_v54 = vor.u32 %v6056_v40, %v4707_v38  ;;  %v4504_v40 = vor.u32 %v6003_v30, %v4501_v31  ;;  %v6033_v8 = vld [vmem:[#allocation2 + $0x70c] sm:$0xf] }
  0xc1   :  { %v6072_v44 = vld [vmem:[#allocation2 + $0xbe4] sm:$0xf0]  ;;  %1589 = vmatpush.bf16.msra.mxu0 %v4532_v42  ;;  %1564 = vmatpush.bf16.msrb.mxu1 %v4396_v47  ;;  %v5983_v47 = vld [vmem:[#allocation2 + $0xcc] sm:$0xf] }
  0xc2   :  { %v4523_v45 = vld [vmem:[#allocation2 + $0x408] sm:$0xf]  ;;  %v4772_v59 = vor.u32 %v6072_v44, %v4771_v41  ;;  %v6001_v44 = vld [vmem:[#allocation2 + $0x30c] sm:$0xf] }
  0xc3   :  { %v6010_v46 = vld [vmem:[#allocation2 + $0x424] sm:$0xf0]  ;;  %1602 = vmatpush.bf16.msra.mxu2 %v4596_v43  ;;  %1577 = vmatpush.bf16.msrb.mxu3 %v4460_v52  ;;  %v4432_v43 = vor.u32 %v5985_v33, %v4429_v35  ;;  %v4709_v33 = vld [vmem:[#allocation2 + $0x9e8] sm:$0xf0] }
  0xc4   :  { %v4587_v49 = vld [vmem:[#allocation2 + $0x608] sm:$0xf]  ;;  %v4524_v63 = vor.u32 %v6010_v46, %v4523_v45  ;;  %1565 = vmatmul.bf16.vlgmr.msrb.gmra.mxu1 %v6583_v57  ;;  %v4493_v45 = vld [vmem:[#allocation2 + $0x328] sm:$0xf0] }
  0xc5   :  { %v6026_v50 = vld [vmem:[#allocation2 + $0x624] sm:$0xf0]  ;;  %1609 = vmatpush.bf16.msra.mxu1 %v4708_v54  ;;  %v4496_v54 = vor.u32 %v6001_v44, %v4493_v45  ;;  %v4461_v44 = vld [vmem:[#allocation2 + $0x228] sm:$0xf0] }
  0xc6   :  { %v4779_v56 = vld [vmem:[#allocation2 + $0xc08] sm:$0xf]  ;;  %v4588_v0 = vor.u32 %v6026_v50, %v4587_v49  ;;  %1590 = vmatpush.bf16.msra.mxu0 %v4524_v63  ;;  %1578 = vmatmul.bf16.vlgmr.msrb.gmra.mxu3 %v6589_v9  ;;  %v4421_v49 = vld [vmem:[#allocation2 + $0xe8] sm:$0xf0] }
  0xc7   :  { %v6074_v58 = vld [vmem:[#allocation2 + $0xc24] sm:$0xf0]  ;;  %1622 = vmatpush.bf16.msra.mxu3 %v4772_v59  ;;  %v5999_v59 = vld [vmem:[#allocation2 + $0x2cc] sm:$0xf] }
  0xc8   :  { %v4699_v61 = vld [vmem:[#allocation2 + $0x988] sm:$0xf]  ;;  %v4780_v4 = vor.u32 %v6074_v58, %v4779_v56  ;;  %1603 = vmatpush.bf16.msra.mxu2 %v4588_v0  ;;  %v4424_v58 = vor.u32 %v5983_v47, %v4421_v49  ;;  %v5981_v63 = vld [vmem:[#allocation2 + $0x8c] sm:$0xf] }
  0xc9   :  { %v6054_v62 = vld [vmem:[#allocation2 + $0x9a4] sm:$0xf0]  ;;  %1591 = vmatmul.bf16.vlgmr.msra.gmra.mxu0 %v6581_v53  ;;  %v4413_v0 = vld [vmem:[#allocation2 + $0xa8] sm:$0xf0] }
  0xca   :  { %v4763_v1 = vld [vmem:[#allocation2 + $0xb88] sm:$0xf]  ;;  %v4700_v7 = vor.u32 %v6054_v62, %v4699_v61  ;;  %1642 = vmatpush.bf16.msrb.mxu0 %v4780_v4  ;;  %v4485_v61 = vld [vmem:[#allocation2 + $0x2e8] sm:$0xf0] }
  0xcb   :  { %v6070_v2 = vld [vmem:[#allocation2 + $0xba4] sm:$0xf0]  ;;  %1604 = vmatmul.bf16.vlgmr.msra.gmra.mxu2 %v6585_v60  ;;  %v4488_v4 = vor.u32 %v5999_v59, %v4485_v61  ;;  %v4773_v47 = vld [vmem:[#allocation2 + $0xbe8] sm:$0xf0] }
  0xcc   :  { %v4764_v11 = vor.u32 %v6070_v2, %v4763_v1  ;;  %v4691_v12 = vld [vmem:[#allocation2 + $0x948] sm:$0xf]  ;;  %1648 = vmatpush.bf16.msrb.mxu2 %v4456_v3  ;;  %1610 = vmatpush.bf16.msra.mxu1 %v4700_v7  ;;  %v4416_v7 = vor.u32 %v5981_v63, %v4413_v0  ;;  %v6035_v59 = vld [vmem:[#allocation2 + $0x74c] sm:$0xf] }
  0xcd   :  { %v6052_v13 = vld [vmem:[#allocation2 + $0x964] sm:$0xf0]  ;;  %v4629_v61 = vld [vmem:[#allocation2 + $0x768] sm:$0xf0] }
  0xce   :  { %v4755_v15 = vld [vmem:[#allocation2 + $0xb48] sm:$0xf]  ;;  %v4692_v20 = vor.u32 %v6052_v13, %v4691_v12  ;;  %1623 = vmatpush.bf16.msra.mxu3 %v4764_v11  ;;  %1661 = vmatpush.bf16.msra.mxu0 %v4520_v14  ;;  %v5979_v12 = vld [vmem:[#allocation2 + $0x4c] sm:$0xf] }
  0xcf   :  { %v6068_v16 = vld [vmem:[#allocation2 + $0xb64] sm:$0xf0]  ;;  %v4405_v13 = vld [vmem:[#allocation2 + $0x68] sm:$0xf0] }
  0xd0   :  { %v4756_v23 = vor.u32 %v6068_v16, %v4755_v15  ;;  %v4683_v24 = vld [vmem:[#allocation2 + $0x908] sm:$0xf]  ;;  %1649 = vmatpush.bf16.msrb.mxu2 %v4448_v17  ;;  %1611 = vmatpush.bf16.msra.mxu1 %v4692_v20  ;;  %v6023_v20 = vld [vmem:[#allocation2 + $0x5cc] sm:$0xf] }
  0xd1   :  { %v6050_v25 = vld [vmem:[#allocation2 + $0x924] sm:$0xf0]  ;;  %v4584_v31 = vor.u32 %v6023_v20, %v4581_v21  ;;  %v6069_v63 = vld [vmem:[#allocation2 + $0xb8c] sm:$0xf] }
  0xd2   :  { %v4747_v27 = vld [vmem:[#allocation2 + $0xb08] sm:$0xf]  ;;  %v4684_v32 = vor.u32 %v6050_v25, %v4683_v24  ;;  %1624 = vmatpush.bf16.msra.mxu3 %v4756_v23  ;;  %1662 = vmatpush.bf16.msra.mxu0 %v4512_v26  ;;  %v4408_v23 = vor.u32 %v5979_v12, %v4405_v13  ;;  %v4645_v24 = vld [vmem:[#allocation2 + $0x7e8] sm:$0xf0] }
  0xd3   :  { %v6066_v28 = vld [vmem:[#allocation2 + $0xb24] sm:$0xf0]  ;;  %v5995_v25 = vld [vmem:[#allocation2 + $0x24c] sm:$0xf]  ;;  %v4648_v35 = vor.u32 %v6039_v22, %v4645_v24 }
  0xd4   :  { %v4748_v36 = vor.u32 %v6066_v28, %v4747_v27  ;;  %v4675_v37 = vld [vmem:[#allocation2 + $0x8c8] sm:$0xf]  ;;  %1650 = vmatpush.bf16.msrb.mxu2 %v4440_v29  ;;  %1612 = vmatpush.bf16.msra.mxu1 %v4684_v32  ;;  %v4469_v26 = vld [vmem:[#allocation2 + $0x268] sm:$0xf0] }
  0xd5   :  { %v6048_v38 = vld [vmem:[#allocation2 + $0x8e4] sm:$0xf0]  ;;  %v5977_v28 = vld [vmem:[#allocation2 + $0xc] sm:$0xf] }
  0xd6   :  { %v4739_v41 = vld [vmem:[#allocation2 + $0xac8] sm:$0xf]  ;;  %v4676_v46 = vor.u32 %v6048_v38, %v4675_v37  ;;  %1625 = vmatpush.bf16.msra.mxu3 %v4748_v36  ;;  %1663 = vmatpush.bf16.msra.mxu0 %v4504_v40  ;;  %v4397_v29 = vld [vmem:[#allocation2 + $0x28] sm:$0xf0]  ;;  %v4472_v36 = vor.u32 %v5995_v25, %v4469_v26 }
  0xd7   :  { %v6064_v42 = vld [vmem:[#allocation2 + $0xae4] sm:$0xf0]  ;;  %v6055_v32 = vld [vmem:[#allocation2 + $0x9cc] sm:$0xf] }
  0xd8   :  { %v4740_v50 = vor.u32 %v6064_v42, %v4739_v41  ;;  %v4667_v51 = vld [vmem:[#allocation2 + $0x888] sm:$0xf]  ;;  %1651 = vmatpush.bf16.msrb.mxu2 %v4432_v43  ;;  %1613 = vmatpush.bf16.msra.mxu1 %v4676_v46  ;;  %v6021_v37 = vld [vmem:[#allocation2 + $0x58c] sm:$0xf]  ;;  %v4400_v41 = vor.u32 %v5977_v28, %v4397_v29  ;;  %v4712_v45 = vor.u32 %v6055_v32, %v4709_v33 }
  0xd9   :  { %v6046_v52 = vld [vmem:[#allocation2 + $0x8a4] sm:$0xf0]  ;;  %4785 = vmatmul.msk.bf16.vlgmr.msrb.gmra.mxu0 %vm737_vm0, %v6596_v48  ;;  %v4573_v38 = vld [vmem:[#allocation2 + $0x5a8] sm:$0xf0] }
  0xda   :  { %v4731_v55 = vld [vmem:[#allocation2 + $0xa88] sm:$0xf]  ;;  %v4668_v62 = vor.u32 %v6046_v52, %v4667_v51  ;;  %1626 = vmatpush.bf16.msra.mxu3 %v4740_v50  ;;  %1664 = vmatpush.bf16.msra.mxu0 %v4496_v54  ;;  %v6037_v40 = vld [vmem:[#allocation2 + $0x78c] sm:$0xf]  ;;  %v4576_v49 = vor.u32 %v6021_v37, %v4573_v38 }
  0xdb   :  { %v6062_v56 = vld [vmem:[#allocation2 + $0xaa4] sm:$0xf0]  ;;  %v4637_v42 = vld [vmem:[#allocation2 + $0x7a8] sm:$0xf0] }
  0xdc   :  { %v4732_v1 = vor.u32 %v6062_v56, %v4731_v55  ;;  %v4659_v2 = vld [vmem:[#allocation2 + $0x848] sm:$0xf]  ;;  %1652 = vmatpush.bf16.msrb.mxu2 %v4424_v58  ;;  %1614 = vmatpush.bf16.msra.mxu1 %v4668_v62  ;;  %v5993_v43 = vld [vmem:[#allocation2 + $0x20c] sm:$0xf]  ;;  %v4640_v52 = vor.u32 %v6037_v40, %v4637_v42 }
  0xdd   :  { %v6044_v3 = vld [vmem:[#allocation2 + $0x864] sm:$0xf0]  ;;  %v6071_v46 = vld [vmem:[#allocation2 + $0xbcc] sm:$0xf]  ;;  %v4464_v54 = vor.u32 %v5993_v43, %v4461_v44 }
  0xde   :  { %v4723_v5 = vld [vmem:[#allocation2 + $0xa48] sm:$0xf]  ;;  %v4660_v11 = vor.u32 %v6044_v3, %v4659_v2  ;;  %1627 = vmatpush.bf16.msra.mxu3 %v4732_v1  ;;  %1665 = vmatpush.bf16.msra.mxu0 %v4488_v4  ;;  %v6053_v50 = vld [vmem:[#allocation2 + $0x98c] sm:$0xf]  ;;  %v4776_v58 = vor.u32 %v6071_v46, %v4773_v47  ;;  %v4632_v4 = vor.u32 %v6035_v59, %v4629_v61  ;;  %v6633_v46 = vld [vmem:[#allocation4] sm:$0x3] }
  0xdf   :  { %v6060_v6 = vld [vmem:[#allocation2 + $0xa64] sm:$0xf0]  ;;  %v4701_v51 = vld [vmem:[#allocation2 + $0x9a8] sm:$0xf0] }
  0xe0   :  { %v4651_v14 = vld [vmem:[#allocation2 + $0x808] sm:$0xf]  ;;  %v4724_v15 = vor.u32 %v6060_v6, %v4723_v5  ;;  %1653 = vmatpush.bf16.msrb.mxu2 %v4416_v7  ;;  %1615 = vmatpush.bf16.msra.mxu1 %v4660_v11  ;;  %v6019_v55 = vld [vmem:[#allocation2 + $0x54c] sm:$0xf]  ;;  %v4704_v62 = vor.u32 %v6053_v50, %v4701_v51 }
  0xe1   :  { %v6042_v16 = vld [vmem:[#allocation2 + $0x824] sm:$0xf0]  ;;  %v4565_v56 = vld [vmem:[#allocation2 + $0x568] sm:$0xf0]  ;;  %v6631_v42 = vpop.f32.mrf.mxu2 }
  0xe2   :  { %v4715_v17 = vld [vmem:[#allocation2 + $0xa08] sm:$0xf]  ;;  %v4652_v27 = vor.u32 %v6042_v16, %v4651_v14  ;;  %1628 = vmatpush.bf16.msra.mxu3 %v4724_v15  ;;  %1666 = vmatpush.bf16.msra.mxu0 %v4480_v19  ;;  %v4765_v0 = vld [vmem:[#allocation2 + $0xba8] sm:$0xf0]  ;;  %v4568_v1 = vor.u32 %v6019_v55, %v4565_v56 }
  0xe3   :  { %v6058_v18 = vld [vmem:[#allocation2 + $0xa24] sm:$0xf0]  ;;  %v6051_v2 = vld [vmem:[#allocation2 + $0x94c] sm:$0xf]  ;;  %v4768_v7 = vor.u32 %v6069_v63, %v4765_v0 }
  0xe4   :  { %v4716_v30 = vor.u32 %v6058_v18, %v4715_v17  ;;  %1654 = vmatpush.bf16.msrb.mxu2 %v4408_v23  ;;  %1616 = vmatpush.bf16.msra.mxu1 %v4652_v27  ;;  %v4693_v3 = vld [vmem:[#allocation2 + $0x968] sm:$0xf0]  ;;  %v6627_v23 = vpop.f32.mrf.mxu0 }
  0xe5   :  { %v6017_v5 = vld [vmem:[#allocation2 + $0x50c] sm:$0xf]  ;;  %v4696_v11 = vor.u32 %v6051_v2, %v4693_v3 }
  0xe6   :  { %1629 = vmatpush.bf16.msra.mxu3 %v4716_v30  ;;  %1667 = vmatpush.bf16.msra.mxu0 %v4472_v36  ;;  %v4557_v6 = vld [vmem:[#allocation2 + $0x528] sm:$0xf0] }
  0xe7   :  { %1617 = vmatmul.bf16.vlgmr.msra.gmra.mxu1 %v6603_v34  ;;  %v4621_v10 = vld [vmem:[#allocation2 + $0x728] sm:$0xf0]  ;;  %v4560_v14 = vor.u32 %v6017_v5, %v4557_v6 }
  0xe8   :  { %1674 = vmatpush.bf16.msrb.mxu1 %v4584_v31  ;;  %1655 = vmatpush.bf16.msrb.mxu2 %v4400_v41  ;;  %v6067_v12 = vld [vmem:[#allocation2 + $0xb4c] sm:$0xf]  ;;  %v4624_v17 = vor.u32 %v6033_v8, %v4621_v10 }
  0xe9   :  { %1630 = vmatmul.bf16.vlgmr.msra.gmra.mxu3 %v6605_v39  ;;  %v4757_v13 = vld [vmem:[#allocation2 + $0xb68] sm:$0xf0] }
  0xea   :  { %1687 = vmatpush.bf16.msrb.mxu3 %v4648_v35  ;;  %1668 = vmatpush.bf16.msra.mxu0 %v4464_v54  ;;  %v6049_v15 = vld [vmem:[#allocation2 + $0x90c] sm:$0xf]  ;;  %v4760_v20 = vor.u32 %v6067_v12, %v4757_v13  ;;  %v6629_v35 = vpop.f32.mrf.mxu1 }
  0xeb   :  { %1656 = vmatmul.bf16.vlgmr.msrb.gmra.mxu2 %v6583_v57  ;;  %v4685_v16 = vld [vmem:[#allocation2 + $0x928] sm:$0xf0] }
  0xec   :  { %1700 = vmatpush.bf16.msra.mxu2 %v4712_v45  ;;  %1675 = vmatpush.bf16.msrb.mxu1 %v4576_v49  ;;  %v6015_v18 = vld [vmem:[#allocation2 + $0x4cc] sm:$0xf]  ;;  %v4688_v24 = vor.u32 %v6049_v15, %v4685_v16  ;;  %v6635_v49 = vpop.f32.mrf.mxu3  ;;  %v752_v56 = vpop.f32.mrf.mxu0 }
  0xed   :  { %1669 = vmatmul.bf16.vlgmr.msra.gmra.mxu0 %v6589_v9  ;;  %v4549_v19 = vld [vmem:[#allocation2 + $0x4e8] sm:$0xf0]  ;;  %v778_v15 = vpop.f32.mrf.mxu2  ;;  %v5963_v56 = vld [vmem:[#allocation6 + $0x10] sm:$0xff] }
  0xee   :  { %1688 = vmatpush.bf16.msrb.mxu3 %v4640_v52  ;;  %1713 = vmatpush.bf16.msrb.mxu0 %v4776_v58  ;;  %v6031_v21 = vld [vmem:[#allocation2 + $0x6cc] sm:$0xf]  ;;  %v4552_v27 = vor.u32 %v6015_v18, %v4549_v19 }
  0xef   :  { %v4613_v22 = vld [vmem:[#allocation2 + $0x6e8] sm:$0xf0] }
  0xf0   :  { %1701 = vmatpush.bf16.msra.mxu2 %v4704_v62  ;;  %1676 = vmatpush.bf16.msrb.mxu1 %v4568_v1  ;;  %v6065_v25 = vld [vmem:[#allocation2 + $0xb0c] sm:$0xf]  ;;  %v4616_v30 = vor.u32 %v6031_v21, %v4613_v22  ;;  %v219_v62 = vperm.slane %v6633_v46, 0 }
  0xf1   :  { %v4749_v26 = vld [vmem:[#allocation2 + $0xb28] sm:$0xf0] }
  0xf2   :  { %1689 = vmatpush.bf16.msrb.mxu3 %v4632_v4  ;;  %1714 = vmatpush.bf16.msrb.mxu0 %v4768_v7  ;;  %v6047_v28 = vld [vmem:[#allocation2 + $0x8cc] sm:$0xf]  ;;  %v4752_v33 = vor.u32 %v6065_v25, %v4749_v26  ;;  %v765_v8 = vpop.f32.mrf.mxu1  ;;  %v751_v22 = vadd.f32 %v6627_v23, %v219_v62  ;;  %v5967_v23 = vld [vmem:[#allocation6 + $0x30] sm:$0xff]  ;;  %v5972_v62 = vld [vmem:[#allocation6 + $0x58] sm:$0xff] }
  0xf3   :  { %v4677_v29 = vld [vmem:[#allocation2 + $0x8e8] sm:$0xf0] }
  0xf4   :  { %1702 = vmatpush.bf16.msra.mxu2 %v4696_v11  ;;  %1677 = vmatpush.bf16.msrb.mxu1 %v4560_v14  ;;  %v6013_v31 = vld [vmem:[#allocation2 + $0x48c] sm:$0xf]  ;;  %v4680_v38 = vor.u32 %v6047_v28, %v4677_v29  ;;  %v791_v21 = vpop.f32.mrf.mxu3  ;;  %v5968_v28 = vld [vmem:[#allocation6 + $0x38] sm:$0xff]  ;;  %v764_v29 = vadd.f32 %v6629_v35, %v751_v22 }
  0xf5   :  { %v4541_v32 = vld [vmem:[#allocation2 + $0x4a8] sm:$0xf0]  ;;  %v5976_v35 = vld [vmem:[#allocation6 + $0x78] sm:$0xff] }
  0xf6   :  { %1690 = vmatpush.bf16.msrb.mxu3 %v4624_v17  ;;  %1715 = vmatpush.bf16.msrb.mxu0 %v4760_v20  ;;  %v6029_v36 = vld [vmem:[#allocation2 + $0x68c] sm:$0xf]  ;;  %v4544_v43 = vor.u32 %v6013_v31, %v4541_v32  ;;  %v828_v31 = vpop.f32.mrf.mxu2  ;;  %v777_v32 = vadd.f32 %v6631_v42, %v764_v29  ;;  %v6078_v29 = vld [vmem:[#allocation6 + $0x98] sm:$0xff] }
  0xf7   :  { %v4605_v37 = vld [vmem:[#allocation2 + $0x6a8] sm:$0xf0] }
  0xf8   :  { %1703 = vmatpush.bf16.msra.mxu2 %v4688_v24  ;;  %v6063_v40 = vld [vmem:[#allocation2 + $0xacc] sm:$0xf]  ;;  %1678 = vmatpush.bf16.msrb.mxu1 %v4552_v27  ;;  %v4608_v47 = vor.u32 %v6029_v36, %v4605_v37  ;;  %v790_v36 = vadd.f32 %v6635_v49, %v777_v32 }
  0xf9   :  { %v4741_v41 = vld [vmem:[#allocation2 + $0xae8] sm:$0xf0] }
  0xfa   :  { %v6045_v44 = vld [vmem:[#allocation2 + $0x88c] sm:$0xf]  ;;  %1691 = vmatpush.bf16.msrb.mxu3 %v4616_v30  ;;  %1716 = vmatpush.bf16.msrb.mxu0 %v4752_v33  ;;  %v4744_v52 = vor.u32 %v6063_v40, %v4741_v41  ;;  %v5966_v33 = vld [vmem:[#allocation6 + $0x28] sm:$0xff] }
  0xfb   :  { %v4669_v45 = vld [vmem:[#allocation2 + $0x8a8] sm:$0xf0] }
  0xfc   :  { %v6011_v50 = vld [vmem:[#allocation2 + $0x44c] sm:$0xf]  ;;  %1704 = vmatpush.bf16.msra.mxu2 %v4680_v38  ;;  %v4672_v58 = vor.u32 %v6045_v44, %v4669_v45  ;;  %1679 = vmatpush.bf16.msrb.mxu1 %v4544_v43  ;;  %v5975_v38 = vld [vmem:[#allocation6 + $0x70] sm:$0xff] }
  0xfd   :  { %v4533_v51 = vld [vmem:[#allocation2 + $0x468] sm:$0xf0] }
  0xfe   :  { %v6027_v54 = vld [vmem:[#allocation2 + $0x64c] sm:$0xf]  ;;  %v4536_v63 = vor.u32 %v6011_v50, %v4533_v51  ;;  %1692 = vmatpush.bf16.msrb.mxu3 %v4608_v47  ;;  %1717 = vmatpush.bf16.msrb.mxu0 %v4744_v52  ;;  %v802_v37 = vpop.f32.mrf.mxu0  ;;  %v830_v44 = vpop.f32.mrf.mxu2  ;;  %v5964_v47 = vld [vmem:[#allocation6 + $0x18] sm:$0xff]  ;;  %v5974_v50 = vld [vmem:[#allocation6 + $0x68] sm:$0xff] }
  0xff   :  { %v4597_v55 = vld [vmem:[#allocation2 + $0x668] sm:$0xf0]  ;;  %v803_v40 = vadd.f32 %v802_v37, %v790_v36 }
 0x100   :  { %v6061_v59 = vld [vmem:[#allocation2 + $0xa8c] sm:$0xf]  ;;  %v4600_v2 = vor.u32 %v6027_v54, %v4597_v55  ;;  %1705 = vmatpush.bf16.msra.mxu2 %v4672_v58  ;;  %1680 = vmatpush.bf16.msrb.mxu1 %v4536_v63  ;;  %v815_v41 = vpop.f32.mrf.mxu1 }
 0x101   :  { %v4733_v61 = vld [vmem:[#allocation2 + $0xaa8] sm:$0xf0]  ;;  %v816_v45 = vadd.f32 %v815_v41, %v803_v40  ;;  %v6089_v41 = vld [vmem:[#allocation6 + $0xf0] sm:$0xff] }
 0x102   :  { %v6043_v0 = vld [vmem:[#allocation2 + $0x84c] sm:$0xf]  ;;  %v4736_v6 = vor.u32 %v6061_v59, %v4733_v61  ;;  %1693 = vmatpush.bf16.msrb.mxu3 %v4600_v2  ;;  %v5962_v61 = vld [vmem:[#allocation6 + $0x8] sm:$0xff]  ;;  %v5971_v2 = vld [vmem:[#allocation6 + $0x50] sm:$0xff] }
 0x103   :  { %v4661_v1 = vld [vmem:[#allocation2 + $0x868] sm:$0xf0]  ;;  %v829_v42 = vadd.f32 %v828_v31, %v816_v45  ;;  %v6077_v31 = vld [vmem:[#allocation6 + $0x90] sm:$0xff]  ;;  %v6106_v45 = vld [vmem:[#allocation2 + $0x1ec] sm:$0xf0] }
 0x104   :  { %v6009_v3 = vld [vmem:[#allocation2 + $0x40c] sm:$0xf]  ;;  %v4664_v12 = vor.u32 %v6043_v0, %v4661_v1  ;;  %1718 = vmatpush.bf16.msrb.mxu0 %v4736_v6  ;;  %v5970_v6 = vld [vmem:[#allocation6 + $0x48] sm:$0xff] }
 0x105   :  { %v4525_v4 = vld [vmem:[#allocation2 + $0x428] sm:$0xf0]  ;;  %v923_v51 = vpack.c.bf16 %v829_v42, %v829_v42  ;;  %v841_v49 = vpop.f32.mrf.mxu3 }
 0x106   :  { %v6025_v5 = vld [vmem:[#allocation2 + $0x60c] sm:$0xf]  ;;  %v4528_v16 = vor.u32 %v6009_v3, %v4525_v4  ;;  %1706 = vmatpush.bf16.msra.mxu2 %v4664_v12  ;;  %v804_v52 = vpop.f32.mrf.mxu0  ;;  %v220_v4 = vperm.slane %v6633_v46, 1 }
 0x107   :  { %v4589_v7 = vld [vmem:[#allocation2 + $0x628] sm:$0xf0]  ;;  %v925_v55 = vunpack.c.l.bf16 %v923_v51  ;;  %v6104_v51 = vld [vmem:[#allocation2 + $0x1ac] sm:$0xf0] }
 0x108   :  { %v6073_v10 = vld [vmem:[#allocation2 + $0xc0c] sm:$0xf]  ;;  %v4592_v19 = vor.u32 %v6025_v5, %v4589_v7  ;;  %1681 = vmatpush.bf16.msrb.mxu1 %v4528_v16  ;;  %v817_v58 = vpop.f32.mrf.mxu1  ;;  %v842_v7 = vadd.f32 %v841_v49, %v220_v4  ;;  %v4949_v4 = vld [vmem:[#allocation2 + $0x110] sm:$0xf] }
 0x109   :  { %v4781_v11 = vld [vmem:[#allocation2 + $0xc28] sm:$0xf0]  ;;  %6339 = vtanh.f32 %v925_v55  ;;  %v6102_v58 = vld [vmem:[#allocation2 + $0x16c] sm:$0xf0] }
 0x10a   :  { %v6059_v13 = vld [vmem:[#allocation2 + $0xa4c] sm:$0xf]  ;;  %v4784_v20 = vor.u32 %v6073_v10, %v4781_v11  ;;  %1694 = vmatpush.bf16.msrb.mxu3 %v4592_v19  ;;  %v854_v59 = vpop.f32.mrf.mxu2 }
 0x10b   :  { %v4725_v14 = vld [vmem:[#allocation2 + $0xa68] sm:$0xf0]  ;;  %1682 = vmatmul.bf16.vlgmr.msrb.gmra.mxu1 %v6581_v53  ;;  %v855_v10 = vadd.f32 %v854_v59, %v842_v7 }
 0x10c   :  { %v6041_v17 = vld [vmem:[#allocation2 + $0x80c] sm:$0xf]  ;;  %v4728_v24 = vor.u32 %v6059_v13, %v4725_v14  ;;  %1733 = vmatpush.bf16.msra.mxu1 %v4784_v20  ;;  %v6082_v13 = vld [vmem:[#allocation6 + $0xb8] sm:$0xff]  ;;  %v6080_v20 = vld [vmem:[#allocation6 + $0xa8] sm:$0xff] }
 0x10d   :  { %v4653_v18 = vld [vmem:[#allocation2 + $0x828] sm:$0xf0]  ;;  %1695 = vmatmul.bf16.vlgmr.msrb.gmra.mxu3 %v6585_v60  ;;  %v843_v63 = vpop.f32.mrf.mxu3 }
 0x10e   :  { %v4656_v25 = vor.u32 %v6041_v17, %v4653_v18  ;;  %v6057_v26 = vld [vmem:[#allocation2 + $0xa0c] sm:$0xf]  ;;  %1719 = vmatpush.bf16.msrb.mxu0 %v4728_v24  ;;  %1875 = vmatpush.bf16.msra.mxu3 %v6082_v13  ;;  %v6081_v18 = vld [vmem:[#allocation6 + $0xb0] sm:$0xff]  ;;  %v6653_v63 = vld [vmem:[#allocation4 + $0x2] sm:$0x3] }
 0x10f   :  { %v4717_v27 = vld [vmem:[#allocation2 + $0xa28] sm:$0xf0]  ;;  %v6340_v3 = vpop.eup %6339  ;;  %v6085_v13 = vld [vmem:[#allocation6 + $0xd0] sm:$0xff] }
 0x110   :  { %v4720_v30 = vor.u32 %v6057_v26, %v4717_v27  ;;  %1707 = vmatpush.bf16.msra.mxu2 %v4656_v25  ;;  %v5965_v43 = vld [vmem:[#allocation6 + $0x20] sm:$0xff]  ;;  %v929_v5 = vpack.c.bf16 %v6340_v3, %v6340_v3 }
 0x111   :  { %v5973_v54 = vld [vmem:[#allocation6 + $0x60] sm:$0xff] }
 0x112   :  { %1720 = vmatpush.bf16.msrb.mxu0 %v4720_v30  ;;  %v5961_v0 = vld [vmem:[#allocation6] sm:$0xff]  ;;  %v856_v1 = vpop.f32.mrf.mxu2  ;;  %1876 = vmatpush.bf16.msra.mxu3 %v6081_v18 }
 0x113   :  { %1708 = vmatmul.bf16.vlgmr.msra.gmra.mxu2 %v6603_v34  ;;  %v5969_v8 = vld [vmem:[#allocation6 + $0x40] sm:$0xff]  ;;  %v6138_v1 = vld [vmem:[#allocation2 + $0x5ec] sm:$0xf0] }
 0x114   :  { %1997 = vmatpush.bf16.msrb.mxu2 %v5968_v28  ;;  %v6079_v24 = vld [vmem:[#allocation6 + $0xa0] sm:$0xff] }
 0x115   :  { %1721 = vmatmul.bf16.vlgmr.msrb.gmra.mxu0 %v6605_v39  ;;  %v6075_v40 = vld [vmem:[#allocation6 + $0x80] sm:$0xff] }
 0x116   :  { %2010 = vmatpush.bf16.msra.mxu0 %v5976_v35  ;;  %1877 = vmatpush.bf16.msra.mxu3 %v6080_v20  ;;  %v6090_v35 = vld [vmem:[#allocation6 + $0xf8] sm:$0xff]  ;;  %v6087_v55 = vld [vmem:[#allocation6 + $0xe0] sm:$0xff]  ;;  %v6154_v20 = vld [vmem:[#allocation2 + $0x7ec] sm:$0xf0] }
 0x117   :  { %1888 = vmatpush.bf16.msrb.mxu1 %v6090_v35  ;;  %v6132_v35 = vld [vmem:[#allocation2 + $0x52c] sm:$0xf0] }
 0x118   :  { %1998 = vmatpush.bf16.msrb.mxu2 %v5967_v23 }
 0x11a   :  { %2011 = vmatpush.bf16.msra.mxu0 %v5975_v38  ;;  %1878 = vmatpush.bf16.msra.mxu3 %v6079_v24  ;;  %v5085_v24 = vld [vmem:[#allocation2 + $0x550] sm:$0xf] }
 0x11b   :  { %4786 = vmatmul.msk.bf16.vlgmr.msra.gmra.mxu1 %vm737_vm0, %v6596_v48 }
 0x11c   :  { %1999 = vmatpush.bf16.msrb.mxu2 %v5966_v33  ;;  %v6076_v33 = vld [vmem:[#allocation6 + $0x88] sm:$0xff]  ;;  %1889 = vmatpush.bf16.msrb.mxu1 %v6089_v41 }
 0x11d   :  { %v4925_v41 = vld [vmem:[#allocation2 + $0x50] sm:$0xf] }
 0x11e   :  { %2012 = vmatpush.bf16.msra.mxu0 %v5974_v50  ;;  %1879 = vmatpush.bf16.msra.mxu3 %v6078_v29  ;;  %v4965_v50 = vld [vmem:[#allocation2 + $0x190] sm:$0xf] }
 0x11f   :  { %v867_v11 = vpop.f32.mrf.mxu0  ;;  %v4966_v49 = vor.u32 %v6104_v51, %v4965_v50 }
 0x120   :  { %2000 = vmatpush.bf16.msrb.mxu2 %v5965_v43  ;;  %v868_v12 = vadd.f32 %v867_v11, %v855_v10  ;;  %v4973_v43 = vld [vmem:[#allocation2 + $0x1d0] sm:$0xf] }
 0x121   :  { %v880_v14 = vpop.f32.mrf.mxu1  ;;  %v4974_v42 = vor.u32 %v6106_v45, %v4973_v43  ;;  %v5093_v10 = vld [vmem:[#allocation2 + $0x590] sm:$0xf] }
 0x122   :  { %2013 = vmatpush.bf16.msra.mxu0 %v5973_v54  ;;  %v881_v15 = vadd.f32 %v880_v14, %v868_v12  ;;  %1880 = vmatpush.bf16.msra.mxu3 %v6077_v31  ;;  %v6136_v11 = vld [vmem:[#allocation2 + $0x5ac] sm:$0xf0] }
 0x123   :  { %v5094_v14 = vor.u32 %v6136_v11, %v5093_v10  ;;  %v6152_v31 = vld [vmem:[#allocation2 + $0x7ac] sm:$0xf0] }
 0x124   :  { %2001 = vmatpush.bf16.msrb.mxu2 %v5964_v47  ;;  %v6088_v47 = vld [vmem:[#allocation6 + $0xe8] sm:$0xff] }
 0x125   :  { %1890 = vmatpush.bf16.msrb.mxu1 %v6088_v47  ;;  %v6094_v43 = vld [vmem:[#allocation2 + $0x6c] sm:$0xf0] }
 0x126   :  { %2014 = vmatpush.bf16.msra.mxu0 %v5972_v62  ;;  %1881 = vmatpush.bf16.msra.mxu3 %v6076_v33  ;;  %v5077_v33 = vld [vmem:[#allocation2 + $0x510] sm:$0xf] }
 0x127   :  { %v869_v16 = vpop.f32.mrf.mxu0  ;;  %v5037_v45 = vld [vmem:[#allocation2 + $0x3d0] sm:$0xf] }
 0x128   :  { %2002 = vmatpush.bf16.msrb.mxu2 %v5963_v56  ;;  %v4957_v56 = vld [vmem:[#allocation2 + $0x150] sm:$0xf] }
 0x129   :  { %v893_v17 = vpop.f32.mrf.mxu3  ;;  %v882_v21 = vpop.f32.mrf.mxu1  ;;  %v4958_v62 = vor.u32 %v6102_v58, %v4957_v56  ;;  %1891 = vmatpush.bf16.msrb.mxu1 %v6087_v55  ;;  %v6098_v16 = vld [vmem:[#allocation2 + $0xec] sm:$0xf0] }
 0x12a   :  { %2015 = vmatpush.bf16.msra.mxu0 %v5971_v2  ;;  %v894_v46 = vadd.f32 %v893_v17, %v881_v15  ;;  %1882 = vmatpush.bf16.msra.mxu3 %v6075_v40  ;;  %v6086_v2 = vld [vmem:[#allocation6 + $0xd8] sm:$0xff]  ;;  %v4941_v15 = vld [vmem:[#allocation2 + $0xd0] sm:$0xf]  ;;  %v5078_v40 = vor.u32 %v6132_v35, %v5077_v33 }
 0x12b   :  { %v4942_v18 = vor.u32 %v6098_v16, %v4941_v15  ;;  %v5149_v47 = vld [vmem:[#allocation2 + $0x750] sm:$0xf] }
 0x12c   :  { %2003 = vmatpush.bf16.msrb.mxu2 %v5962_v61  ;;  %v5069_v55 = vld [vmem:[#allocation2 + $0x4d0] sm:$0xf] }
 0x12d   :  { %v906_v19 = vpop.f32.mrf.mxu2  ;;  %1892 = vmatpush.bf16.msrb.mxu1 %v6086_v2  ;;  %v6130_v56 = vld [vmem:[#allocation2 + $0x4ec] sm:$0xf0] }
 0x12e   :  { %2016 = vmatpush.bf16.msra.mxu0 %v5970_v6  ;;  %v907_v22 = vadd.f32 %v906_v19, %v894_v46  ;;  %2617 = vmatpush.bf16.msrb.mxu3 %v4974_v42  ;;  %v5165_v19 = vld [vmem:[#allocation2 + $0x7d0] sm:$0xf]  ;;  %v5070_v58 = vor.u32 %v6130_v56, %v5069_v55 }
 0x12f   :  { %v919_v25 = vpop.f32.mrf.mxu0  ;;  %v5166_v21 = vor.u32 %v6154_v20, %v5165_v19  ;;  %v6122_v42 = vld [vmem:[#allocation2 + $0x3ec] sm:$0xf0] }
 0x130   :  { %2004 = vmatpush.bf16.msrb.mxu2 %v5961_v0  ;;  %v920_v27 = vadd.f32 %v919_v25, %v907_v22  ;;  %v5101_v0 = vld [vmem:[#allocation2 + $0x5d0] sm:$0xf] }
 0x131   :  { %v895_v26 = vpop.f32.mrf.mxu3  ;;  %v5102_v3 = vor.u32 %v6138_v1, %v5101_v0  ;;  %1893 = vmatpush.bf16.msrb.mxu1 %v6085_v13  ;;  %v6084_v22 = vld [vmem:[#allocation6 + $0xc8] sm:$0xff] }
 0x132   :  { %2017 = vmatpush.bf16.msra.mxu0 %v5969_v8  ;;  %v924_v30 = vpack.c.bf16 %v920_v27, %v920_v27  ;;  %2618 = vmatpush.bf16.msrb.mxu3 %v4966_v49  ;;  %v1063_v8 = vperm.slane %v6653_v63, 0  ;;  %v6134_v25 = vld [vmem:[#allocation2 + $0x56c] sm:$0xf0] }
 0x133   :  { %2005 = vmatmul.bf16.vlgmr.msrb.gmra.mxu2 %v929_v5  ;;  %v6100_v5 = vld [vmem:[#allocation2 + $0x12c] sm:$0xf0]  ;;  %v5086_v26 = vor.u32 %v6134_v25, %v5085_v24 }
 0x134   :  { %v926_v23 = vunpack.c.l.bf16 %v924_v30  ;;  %v4950_v7 = vor.u32 %v6100_v5, %v4949_v4  ;;  %2643 = vmatpush.bf16.msra.mxu2 %v5102_v3  ;;  %v4933_v27 = vld [vmem:[#allocation2 + $0x90] sm:$0xf] }
 0x135   :  { %v908_v28 = vpop.f32.mrf.mxu2  ;;  %1894 = vmatpush.bf16.msrb.mxu1 %v6084_v22  ;;  %v6150_v49 = vld [vmem:[#allocation2 + $0x76c] sm:$0xf0] }
 0x136   :  { %6341 = vtanh.f32 %v926_v23  ;;  %2619 = vmatpush.bf16.msrb.mxu3 %v4958_v62  ;;  %v6096_v28 = vld [vmem:[#allocation2 + $0xac] sm:$0xf0]  ;;  %2656 = vmatpush.bf16.msrb.mxu0 %v5166_v21 }
 0x137   :  { %v921_v32 = vpop.f32.mrf.mxu0  ;;  %v4934_v29 = vor.u32 %v6096_v28, %v4933_v27  ;;  %v5157_v23 = vld [vmem:[#allocation2 + $0x790] sm:$0xf] }
 0x138   :  { %2644 = vmatpush.bf16.msra.mxu2 %v5094_v14  ;;  %v5158_v32 = vor.u32 %v6152_v31, %v5157_v23  ;;  %v6092_v62 = vld [vmem:[#allocation2 + $0x2c] sm:$0xf0] }
 0x139   :  { %v5029_v0 = vld [vmem:[#allocation2 + $0x390] sm:$0xf] }
 0x13a   :  { %2620 = vmatpush.bf16.msrb.mxu3 %v4950_v7  ;;  %2657 = vmatpush.bf16.msrb.mxu0 %v5158_v32  ;;  %v6120_v2 = vld [vmem:[#allocation2 + $0x3ac] sm:$0xf0] }
 0x13b   :  { %v5141_v4 = vld [vmem:[#allocation2 + $0x710] sm:$0xf] }
 0x13c   :  { %v6342_v36 = vpop.eup %6341  ;;  %2645 = vmatpush.bf16.msra.mxu2 %v5086_v26  ;;  %v6148_v5 = vld [vmem:[#allocation2 + $0x72c] sm:$0xf0] }
 0x13d   :  { %v930_v37 = vpack.c.bf16 %v6342_v36, %v6342_v36  ;;  %v5061_v7 = vld [vmem:[#allocation2 + $0x490] sm:$0xf] }
 0x13e   :  { %2621 = vmatpush.bf16.msrb.mxu3 %v4942_v18  ;;  %v5021_v14 = vld [vmem:[#allocation2 + $0x350] sm:$0xf] }
 0x13f   :  { %2018 = vmatmul.bf16.vlgmr.msra.gmra.mxu0 %v930_v37  ;;  %v6083_v37 = vld [vmem:[#allocation6 + $0xc0] sm:$0xff]  ;;  %v6118_v15 = vld [vmem:[#allocation2 + $0x36c] sm:$0xf0] }
 0x140   :  { %1895 = vmatpush.bf16.msrb.mxu1 %v6083_v37  ;;  %2646 = vmatpush.bf16.msra.mxu2 %v5078_v40  ;;  %v5133_v18 = vld [vmem:[#allocation2 + $0x6d0] sm:$0xf] }
 0x141   :  { %v1566_v44 = vpop.f32.mrf.mxu1  ;;  %v6146_v19 = vld [vmem:[#allocation2 + $0x6ec] sm:$0xf0] }
 0x142   :  { %v1567_v46 = vadd.f32 %v1566_v44, %v1063_v8  ;;  %2622 = vmatpush.bf16.msrb.mxu3 %v4934_v29  ;;  %v4926_v44 = vor.u32 %v6094_v43, %v4925_v41  ;;  %v6128_v8 = vld [vmem:[#allocation2 + $0x4ac] sm:$0xf0]  ;;  %v5134_v20 = vor.u32 %v6146_v19, %v5133_v18 }
 0x143   :  { %v5062_v13 = vor.u32 %v6128_v8, %v5061_v7  ;;  %v5053_v21 = vld [vmem:[#allocation2 + $0x450] sm:$0xf] }
 0x144   :  { %2647 = vmatpush.bf16.msra.mxu2 %v5070_v58  ;;  %v6126_v22 = vld [vmem:[#allocation2 + $0x46c] sm:$0xf0] }
 0x145   :  { %v5054_v26 = vor.u32 %v6126_v22, %v5053_v21  ;;  %v5013_v27 = vld [vmem:[#allocation2 + $0x310] sm:$0xf]  ;;  %v4967_v21 = vld [vmem:[#allocation2 + $0x1b0] sm:$0xf0] }
 0x146   :  { %v6649_v38 = vpop.f32.mrf.mxu0  ;;  %2623 = vmatpush.bf16.msrb.mxu3 %v4926_v44  ;;  %v6116_v28 = vld [vmem:[#allocation2 + $0x32c] sm:$0xf0]  ;;  %v6117_v22 = vld [vmem:[#allocation2 + $0x354] sm:$0xf] }
 0x147   :  { %v5014_v29 = vor.u32 %v6116_v28, %v5013_v27  ;;  %v5125_v23 = vld [vmem:[#allocation2 + $0x690] sm:$0xf]  ;;  %v5023_v27 = vld [vmem:[#allocation2 + $0x370] sm:$0xf0] }
 0x148   :  { %2648 = vmatpush.bf16.msra.mxu2 %v5062_v13  ;;  %v6144_v31 = vld [vmem:[#allocation2 + $0x6ac] sm:$0xf0]  ;;  %v5031_v13 = vld [vmem:[#allocation2 + $0x3b0] sm:$0xf0] }
 0x149   :  { %v1579_v52 = vpop.f32.mrf.mxu3  ;;  %v1568_v61 = vpop.f32.mrf.mxu1  ;;  %v5126_v32 = vor.u32 %v6144_v31, %v5125_v23  ;;  %v5045_v33 = vld [vmem:[#allocation2 + $0x410] sm:$0xf]  ;;  %v5026_v31 = vor.u32 %v6117_v22, %v5023_v27  ;;  %v6093_v27 = vld [vmem:[#allocation2 + $0x54] sm:$0xf] }
 0x14a   :  { %v1580_v30 = vadd.f32 %v1579_v52, %v1567_v46  ;;  %v5038_v52 = vor.u32 %v6122_v42, %v5037_v45  ;;  %v4917_v61 = vld [vmem:[#allocation2 + $0x10] sm:$0xf] }
 0x14b   :  { %v4918_v1 = vor.u32 %v6092_v62, %v4917_v61  ;;  %v6124_v35 = vld [vmem:[#allocation2 + $0x42c] sm:$0xf0] }
 0x14c   :  { %v1593_v50 = vadd.f32 %v6649_v38, %v1580_v30  ;;  %2630 = vmatpush.bf16.msra.mxu1 %v5038_v52  ;;  %v5030_v38 = vor.u32 %v6120_v2, %v5029_v0  ;;  %2649 = vmatpush.bf16.msra.mxu2 %v5054_v26  ;;  %v5046_v40 = vor.u32 %v6124_v35, %v5045_v33  ;;  %v6114_v41 = vld [vmem:[#allocation2 + $0x2ec] sm:$0xf0]  ;;  %v6121_v52 = vld [vmem:[#allocation2 + $0x3d4] sm:$0xf] }
 0x14d   :  { %2624 = vmatpush.bf16.msrb.mxu3 %v4918_v1  ;;  %v5117_v45 = vld [vmem:[#allocation2 + $0x650] sm:$0xf]  ;;  %v6101_v35 = vld [vmem:[#allocation2 + $0x154] sm:$0xf] }
 0x14e   :  { %v1594_v54 = vpop.f32.mrf.mxu0  ;;  %v6651_v59 = vpop.f32.mrf.mxu2  ;;  %v6142_v42 = vld [vmem:[#allocation2 + $0x66c] sm:$0xf0] }
 0x14f   :  { %v5150_v54 = vor.u32 %v6150_v49, %v5149_v47  ;;  %v1606_v3 = vadd.f32 %v6651_v59, %v1593_v50  ;;  %v5301_v47 = vld [vmem:[#allocation2 + $0xc10] sm:$0xf]  ;;  %v5118_v50 = vor.u32 %v6142_v42, %v5117_v45  ;;  %v5039_v49 = vld [vmem:[#allocation2 + $0x3f0] sm:$0xf0] }
 0x150   :  { %2631 = vmatpush.bf16.msra.mxu1 %v5030_v38  ;;  %2650 = vmatpush.bf16.msra.mxu2 %v5046_v40  ;;  %v5042_v56 = vor.u32 %v6121_v52, %v5039_v49  ;;  %v4997_v58 = vld [vmem:[#allocation2 + $0x290] sm:$0xf]  ;;  %v6099_v42 = vld [vmem:[#allocation2 + $0x114] sm:$0xf] }
 0x151   :  { %v1581_v6 = vpop.f32.mrf.mxu3  ;;  %2658 = vmatpush.bf16.msrb.mxu0 %v5150_v54  ;;  %v6112_v61 = vld [vmem:[#allocation2 + $0x2ac] sm:$0xf0]  ;;  %v5007_v49 = vld [vmem:[#allocation2 + $0x2f0] sm:$0xf0] }
 0x152   :  { %v5142_v6 = vor.u32 %v6148_v5, %v5141_v4  ;;  %v5229_v62 = vld [vmem:[#allocation2 + $0x9d0] sm:$0xf]  ;;  %v4998_v1 = vor.u32 %v6112_v61, %v4997_v58  ;;  %v6105_v4 = vld [vmem:[#allocation2 + $0x1d4] sm:$0xf] }
 0x153   :  { %v6170_v0 = vld [vmem:[#allocation2 + $0x9ec] sm:$0xf0]  ;;  %2651 = vmatmul.bf16.vlgmr.msra.gmra.mxu2 %v6581_v53  ;;  %v4975_v5 = vld [vmem:[#allocation2 + $0x1f0] sm:$0xf0] }
 0x154   :  { %v5109_v2 = vld [vmem:[#allocation2 + $0x610] sm:$0xf]  ;;  %v5230_v8 = vor.u32 %v6170_v0, %v5229_v62 }
 0x155   :  { %2659 = vmatpush.bf16.msrb.mxu0 %v5142_v6  ;;  %v6119_v6 = vld [vmem:[#allocation2 + $0x394] sm:$0xf]  ;;  %v5221_v18 = vld [vmem:[#allocation2 + $0x990] sm:$0xf] }
 0x156   :  { %v6656_v12 = vpop.f32.mrf.mxu0  ;;  %v1607_v17 = vpop.f32.mrf.mxu2  ;;  %v4981_v28 = vld [vmem:[#allocation2 + $0x210] sm:$0xf] }
 0x157   :  { %v5022_v17 = vor.u32 %v6118_v15, %v5021_v14  ;;  %v4989_v14 = vld [vmem:[#allocation2 + $0x250] sm:$0xf] }
 0x158   :  { %v6110_v15 = vld [vmem:[#allocation2 + $0x26c] sm:$0xf0] }
 0x159   :  { %2632 = vmatpush.bf16.msra.mxu1 %v5022_v17  ;;  %2660 = vmatpush.bf16.msrb.mxu0 %v5134_v20  ;;  %v1064_v17 = vperm.slane %v6653_v63, 1  ;;  %v4990_v19 = vor.u32 %v6110_v15, %v4989_v14  ;;  %v6103_v20 = vld [vmem:[#allocation2 + $0x194] sm:$0xf]  ;;  %v6166_v23 = vld [vmem:[#allocation2 + $0x96c] sm:$0xf0] }
 0x15a   :  { %v4970_v26 = vor.u32 %v6103_v20, %v4967_v21  ;;  %v6162_v58 = vld [vmem:[#allocation2 + $0x8ec] sm:$0xf0]  ;;  %v6095_v14 = vld [vmem:[#allocation2 + $0x94] sm:$0xf] }
 0x15b   :  { %v4935_v15 = vld [vmem:[#allocation2 + $0xb0] sm:$0xf0]  ;;  %v6158_v20 = vld [vmem:[#allocation2 + $0x86c] sm:$0xf0] }
 0x15d   :  { %2633 = vmatpush.bf16.msra.mxu1 %v5014_v29  ;;  %2661 = vmatpush.bf16.msrb.mxu0 %v5126_v32  ;;  %v6108_v29 = vld [vmem:[#allocation2 + $0x22c] sm:$0xf0] }
 0x15e   :  { %v1646_v36 = vpop.f32.mrf.mxu0  ;;  %v4982_v32 = vor.u32 %v6108_v29, %v4981_v28  ;;  %v4927_v28 = vld [vmem:[#allocation2 + $0x70] sm:$0xf0] }
 0x15f   :  { %v6107_v29 = vld [vmem:[#allocation2 + $0x214] sm:$0xf] }
 0x161   :  { %2662 = vmatpush.bf16.msrb.mxu0 %v5118_v50  ;;  %v6113_v50 = vld [vmem:[#allocation2 + $0x2d4] sm:$0xf] }
 0x162   :  { %v5010_v61 = vor.u32 %v6113_v50, %v5007_v49  ;;  %v6183_v49 = vld [vmem:[#allocation2 + $0xb94] sm:$0xf] }
 0x164   :  { %v1618_v51 = vpop.f32.mrf.mxu1 }
 0x165   :  { %v1619_v10 = vadd.f32 %v1618_v51, %v1606_v3  ;;  %v6188_v51 = vld [vmem:[#allocation2 + $0xc2c] sm:$0xf0] }
 0x166   :  { %v5302_v55 = vor.u32 %v6188_v51, %v5301_v47  ;;  %v6140_v3 = vld [vmem:[#allocation2 + $0x62c] sm:$0xf0]  ;;  %v4951_v47 = vld [vmem:[#allocation2 + $0x130] sm:$0xf0] }
 0x167   :  { %v5110_v38 = vor.u32 %v6140_v3, %v5109_v2  ;;  %v4954_v52 = vor.u32 %v6099_v42, %v4951_v47  ;;  %v4943_v2 = vld [vmem:[#allocation2 + $0xf0] sm:$0xf0] }
 0x168   :  { %2702 = vmatpush.bf16.msrb.mxu2 %v5302_v55  ;;  %v6111_v3 = vld [vmem:[#allocation2 + $0x294] sm:$0xf] }
 0x169   :  { %2663 = vmatpush.bf16.msrb.mxu0 %v5110_v38 }
 0x16a   :  { %v6660_v11 = vpop.f32.mrf.mxu0 }
 0x16b   :  { %5307 = vmatmul.msk.bf16.vlgmr.msrb.gmra.mxu2 %vm737_vm0, %v6596_v48 }
 0x16c   :  { %v1631_v16 = vpop.f32.mrf.mxu3  ;;  %v1620_v46 = vpop.f32.mrf.mxu1  ;;  %2721 = vmatpush.bf16.msra.mxu2 %v5042_v56  ;;  %2664 = vmatmul.bf16.vlgmr.msrb.gmra.mxu0 %v6585_v60  ;;  %v5197_v56 = vld [vmem:[#allocation2 + $0x8d0] sm:$0xf] }
 0x16d   :  { %v1632_v59 = vadd.f32 %v1631_v16, %v1619_v10  ;;  %v4978_v10 = vor.u32 %v6105_v4, %v4975_v5  ;;  %v5034_v46 = vor.u32 %v6119_v6, %v5031_v13  ;;  %v5198_v4 = vor.u32 %v6162_v58, %v5197_v56  ;;  %v4999_v6 = vld [vmem:[#allocation2 + $0x2b0] sm:$0xf0] }
 0x16e   :  { %v6663_v25 = vpop.f32.mrf.mxu2  ;;  %v5287_v56 = vld [vmem:[#allocation2 + $0xbb0] sm:$0xf0] }
 0x16f   :  { %v1645_v24 = vadd.f32 %v6656_v12, %v1632_v59  ;;  %v5005_v12 = vld [vmem:[#allocation2 + $0x2d0] sm:$0xf]  ;;  %2708 = vmatpush.bf16.msra.mxu0 %v4978_v10  ;;  %v1658_v63 = vadd.f32 %v6663_v25, %v1064_v17  ;;  %v5002_v10 = vor.u32 %v6111_v3, %v4999_v6  ;;  %v6135_v58 = vld [vmem:[#allocation2 + $0x594] sm:$0xf] }
 0x170   :  { %v5006_v44 = vor.u32 %v6114_v41, %v5005_v12  ;;  %v6168_v59 = vld [vmem:[#allocation2 + $0x9ac] sm:$0xf0]  ;;  %2722 = vmatpush.bf16.msra.mxu2 %v5034_v46  ;;  %v5015_v41 = vld [vmem:[#allocation2 + $0x330] sm:$0xf0] }
 0x171   :  { %v1739_v30 = vpack.c.bf16 %v1645_v24, %v1645_v24  ;;  %v5222_v24 = vor.u32 %v6168_v59, %v5221_v18  ;;  %v5205_v25 = vld [vmem:[#allocation2 + $0x910] sm:$0xf]  ;;  %v4938_v18 = vor.u32 %v6095_v14, %v4935_v15  ;;  %v4991_v59 = vld [vmem:[#allocation2 + $0x270] sm:$0xf0] }
 0x172   :  { %v1672_v37 = vpop.f32.mrf.mxu0  ;;  %2634 = vmatpush.bf16.msra.mxu1 %v5006_v44  ;;  %v6164_v44 = vld [vmem:[#allocation2 + $0x92c] sm:$0xf0]  ;;  %v5279_v6 = vld [vmem:[#allocation2 + $0xb70] sm:$0xf0] }
 0x173   :  { %v1741_v36 = vunpack.c.l.bf16 %v1739_v30  ;;  %v5213_v30 = vld [vmem:[#allocation2 + $0x950] sm:$0xf]  ;;  %2709 = vmatpush.bf16.msra.mxu0 %v4970_v26  ;;  %v6115_v37 = vld [vmem:[#allocation2 + $0x314] sm:$0xf]  ;;  %v5206_v51 = vor.u32 %v6164_v44, %v5205_v25 }
 0x174   :  { %v1633_v43 = vpop.f32.mrf.mxu3  ;;  %2723 = vmatpush.bf16.msra.mxu2 %v5026_v31  ;;  %v5214_v40 = vor.u32 %v6166_v23, %v5213_v30  ;;  %v5018_v45 = vor.u32 %v6115_v37, %v5015_v41  ;;  %v4930_v31 = vor.u32 %v6093_v27, %v4927_v28  ;;  %v6156_v37 = vld [vmem:[#allocation2 + $0x82c] sm:$0xf0]  ;;  %v5103_v25 = vld [vmem:[#allocation2 + $0x5f0] sm:$0xf0] }
 0x175   :  { %6343 = vtanh.f32 %v1741_v36  ;;  %v4959_v36 = vld [vmem:[#allocation2 + $0x170] sm:$0xf0]  ;;  %v1671_v43 = vadd.f32 %v6660_v11, %v1658_v63  ;;  %v5293_v3 = vld [vmem:[#allocation2 + $0xbd0] sm:$0xf] }
 0x176   :  { %v1659_v54 = vpop.f32.mrf.mxu2  ;;  %2635 = vmatpush.bf16.msra.mxu1 %v4998_v1  ;;  %v4962_v12 = vor.u32 %v6101_v35, %v4959_v36  ;;  %v6097_v1 = vld [vmem:[#allocation2 + $0xd4] sm:$0xf]  ;;  %v5173_v36 = vld [vmem:[#allocation2 + $0x810] sm:$0xf] }
 0x177   :  { %v4946_v5 = vor.u32 %v6097_v1, %v4943_v2  ;;  %v5295_v35 = vld [vmem:[#allocation2 + $0xbf0] sm:$0xf0]  ;;  %v5174_v47 = vor.u32 %v6156_v37, %v5173_v36 }
 0x178   :  { %2710 = vmatpush.bf16.msra.mxu0 %v4962_v12  ;;  %2724 = vmatpush.bf16.msra.mxu2 %v5018_v45  ;;  %v6091_v44 = vld [vmem:[#allocation2 + $0x14] sm:$0xf] }
 0x179   :  { %v4919_v45 = vld [vmem:[#allocation2 + $0x30] sm:$0xf0] }
 0x17a   :  { %2636 = vmatpush.bf16.msra.mxu1 %v4990_v19  ;;  %v5181_v19 = vld [vmem:[#allocation2 + $0x850] sm:$0xf]  ;;  %v4922_v50 = vor.u32 %v6091_v44, %v4919_v45  ;;  %v5223_v1 = vld [vmem:[#allocation2 + $0x9b0] sm:$0xf0] }
 0x17b   :  { %v6344_v7 = vpop.eup %6343  ;;  %v5182_v23 = vor.u32 %v6158_v20, %v5181_v19  ;;  %v6181_v2 = vld [vmem:[#allocation2 + $0xb54] sm:$0xf]  ;;  %v5269_v44 = vld [vmem:[#allocation2 + $0xb10] sm:$0xf] }
 0x17c   :  { %v1745_v16 = vpack.c.bf16 %v6344_v7, %v6344_v7  ;;  %2711 = vmatpush.bf16.msra.mxu0 %v4954_v52  ;;  %2725 = vmatpush.bf16.msra.mxu2 %v5010_v61  ;;  %v5189_v7 = vld [vmem:[#allocation2 + $0x890] sm:$0xf]  ;;  %v5231_v52 = vld [vmem:[#allocation2 + $0x9f0] sm:$0xf0] }
 0x17d   :  { %v5095_v61 = vld [vmem:[#allocation2 + $0x5b0] sm:$0xf0]  ;;  %v6180_v45 = vld [vmem:[#allocation2 + $0xb2c] sm:$0xf0] }
 0x17e   :  { %1883 = vmatmul.bf16.vlgmr.msra.gmra.mxu3 %v1745_v16  ;;  %2637 = vmatpush.bf16.msra.mxu1 %v4982_v32  ;;  %v6109_v16 = vld [vmem:[#allocation2 + $0x254] sm:$0xf] }
 0x17f   :  { %2669 = vmatpush.bf16.msra.mxu3 %v5230_v8  ;;  %v6160_v8 = vld [vmem:[#allocation2 + $0x8ac] sm:$0xf0]  ;;  %v4994_v21 = vor.u32 %v6109_v16, %v4991_v59  ;;  %v4983_v32 = vld [vmem:[#allocation2 + $0x230] sm:$0xf0] }
 0x180   :  { %2712 = vmatpush.bf16.msra.mxu0 %v4946_v5  ;;  %2726 = vmatpush.bf16.msra.mxu2 %v5002_v10  ;;  %v5190_v17 = vor.u32 %v6160_v8, %v5189_v7  ;;  %v6133_v7 = vld [vmem:[#allocation2 + $0x554] sm:$0xf]  ;;  %v5282_v10 = vor.u32 %v6181_v2, %v5279_v6  ;;  %v5285_v59 = vld [vmem:[#allocation2 + $0xb90] sm:$0xf] }
 0x181   :  { %v5087_v8 = vld [vmem:[#allocation2 + $0x570] sm:$0xf0] }
 0x182   :  { %v6165_v15 = vld [vmem:[#allocation2 + $0x954] sm:$0xf]  ;;  %v5090_v19 = vor.u32 %v6133_v7, %v5087_v8 }
 0x183   :  { %2670 = vmatpush.bf16.msra.mxu3 %v5222_v24  ;;  %v5215_v16 = vld [vmem:[#allocation2 + $0x970] sm:$0xf0] }
 0x184   :  { %2713 = vmatpush.bf16.msra.mxu0 %v4938_v18  ;;  %2727 = vmatpush.bf16.msra.mxu2 %v4994_v21  ;;  %v5218_v20 = vor.u32 %v6165_v15, %v5215_v16  ;;  %v5271_v21 = vld [vmem:[#allocation2 + $0xb30] sm:$0xf0] }
 0x185   :  { %v6163_v28 = vld [vmem:[#allocation2 + $0x914] sm:$0xf] }
 0x186   :  { %v5071_v36 = vld [vmem:[#allocation2 + $0x4f0] sm:$0xf0] }
 0x187   :  { %2671 = vmatpush.bf16.msra.mxu3 %v5214_v40  ;;  %v4986_v40 = vor.u32 %v6107_v29, %v4983_v32  ;;  %v5207_v29 = vld [vmem:[#allocation2 + $0x930] sm:$0xf0] }
 0x188   :  { %v1683_v33 = vpop.f32.mrf.mxu1  ;;  %2714 = vmatpush.bf16.msra.mxu0 %v4930_v31  ;;  %v5210_v32 = vor.u32 %v6163_v28, %v5207_v29  ;;  %v6125_v2 = vld [vmem:[#allocation2 + $0x454] sm:$0xf] }
 0x189   :  { %v1684_v54 = vadd.f32 %v1683_v33, %v1671_v43  ;;  %v6185_v33 = vld [vmem:[#allocation2 + $0xbd4] sm:$0xf]  ;;  %2728 = vmatpush.bf16.msra.mxu2 %v4986_v40 }
 0x18a   :  { %v5298_v12 = vor.u32 %v6185_v33, %v5295_v35  ;;  %v6137_v43 = vld [vmem:[#allocation2 + $0x5d4] sm:$0xf] }
 0x18b   :  { %2672 = vmatpush.bf16.msra.mxu3 %v5206_v51  ;;  %v6169_v51 = vld [vmem:[#allocation2 + $0x9d4] sm:$0xf] }
 0x18c   :  { %2715 = vmatpush.bf16.msra.mxu0 %v4922_v50  ;;  %2729 = vmatmul.bf16.vlgmr.msra.gmra.mxu2 %v6589_v9  ;;  %v5263_v33 = vld [vmem:[#allocation2 + $0xaf0] sm:$0xf0] }
 0x18d   :  { %2773 = vmatpush.bf16.msrb.mxu2 %v5298_v12  ;;  %v6129_v35 = vld [vmem:[#allocation2 + $0x4d4] sm:$0xf] }
 0x18e   :  { %2625 = vmatmul.bf16.vlgmr.msrb.gmra.mxu3 %v6583_v57  ;;  %v6161_v12 = vld [vmem:[#allocation2 + $0x8d4] sm:$0xf] }
 0x18f   :  { %2673 = vmatpush.bf16.msra.mxu3 %v5198_v4  ;;  %v5098_v4 = vor.u32 %v6135_v58, %v5095_v61  ;;  %2716 = vmatmul.bf16.vlgmr.msra.gmra.mxu0 %v6583_v57  ;;  %v5255_v50 = vld [vmem:[#allocation2 + $0xab0] sm:$0xf0]  ;;  %v5261_v61 = vld [vmem:[#allocation2 + $0xad0] sm:$0xf] }
 0x190   :  { %v1696_v11 = vpop.f32.mrf.mxu3  ;;  %v1685_v0 = vpop.f32.mrf.mxu1  ;;  %v6173_v58 = vld [vmem:[#allocation2 + $0xa54] sm:$0xf] }
 0x191   :  { %v1697_v62 = vadd.f32 %v1696_v11, %v1684_v54  ;;  %v5106_v54 = vor.u32 %v6137_v43, %v5103_v25  ;;  %v5290_v11 = vor.u32 %v6183_v49, %v5287_v56  ;;  %v6167_v0 = vld [vmem:[#allocation2 + $0x994] sm:$0xf] }
 0x192   :  { %v1722_v55 = vpop.f32.mrf.mxu0  ;;  %v5226_v5 = vor.u32 %v6167_v0, %v5223_v1  ;;  %v6175_v43 = vld [vmem:[#allocation2 + $0xa94] sm:$0xf] }
 0x193   :  { %2674 = vmatpush.bf16.msra.mxu3 %v5190_v17  ;;  %2774 = vmatpush.bf16.msrb.mxu2 %v5290_v11  ;;  %v6179_v17 = vld [vmem:[#allocation2 + $0xb14] sm:$0xf]  ;;  %v5258_v49 = vor.u32 %v6175_v43, %v5255_v50  ;;  %v6178_v11 = vld [vmem:[#allocation2 + $0xaec] sm:$0xf0] }
 0x194   :  { %v5191_v56 = vld [vmem:[#allocation2 + $0x8b0] sm:$0xf0] }
 0x195   :  { %v5247_v1 = vld [vmem:[#allocation2 + $0xa70] sm:$0xf0] }
 0x196   :  { %v1709_v38 = vpop.f32.mrf.mxu2  ;;  %v5183_v6 = vld [vmem:[#allocation2 + $0x870] sm:$0xf0] }
 0x197   :  { %v1710_v13 = vadd.f32 %v1709_v38, %v1697_v62  ;;  %2675 = vmatpush.bf16.msra.mxu3 %v5182_v23  ;;  %v6186_v38 = vld [vmem:[#allocation2 + $0xbec] sm:$0xf0]  ;;  %2775 = vmatpush.bf16.msrb.mxu2 %v5282_v10  ;;  %v6171_v7 = vld [vmem:[#allocation2 + $0xa14] sm:$0xf] }
 0x198   :  { %v1698_v22 = vpop.f32.mrf.mxu3  ;;  %v1735_v26 = vpop.f32.mrf.mxu1  ;;  %v5294_v14 = vor.u32 %v6186_v38, %v5293_v3  ;;  %v6182_v23 = vld [vmem:[#allocation2 + $0xb6c] sm:$0xf0]  ;;  %v5055_v3 = vld [vmem:[#allocation2 + $0x470] sm:$0xf0]  ;;  %v5250_v38 = vor.u32 %v6173_v58, %v5247_v1 }
 0x199   :  { %v1723_v24 = vadd.f32 %v1722_v55, %v1710_v13  ;;  %v5234_v55 = vor.u32 %v6169_v51, %v5231_v52  ;;  %v6131_v22 = vld [vmem:[#allocation2 + $0x514] sm:$0xf]  ;;  %v5253_v10 = vld [vmem:[#allocation2 + $0xa90] sm:$0xf] }
 0x19a   :  { %v1724_v46 = vpop.f32.mrf.mxu0  ;;  %v6127_v51 = vld [vmem:[#allocation2 + $0x494] sm:$0xf] }
 0x19b   :  { %v1736_v63 = vadd.f32 %v1735_v26, %v1723_v24  ;;  %2760 = vmatpush.bf16.msrb.mxu0 %v5234_v55  ;;  %2676 = vmatpush.bf16.msra.mxu3 %v5174_v47  ;;  %v6184_v46 = vld [vmem:[#allocation2 + $0xbac] sm:$0xf0]  ;;  %v5079_v24 = vld [vmem:[#allocation2 + $0x530] sm:$0xf0]  ;;  %v5274_v26 = vor.u32 %v6179_v17, %v5271_v21 }
 0x19c   :  { %v5286_v27 = vor.u32 %v6184_v46, %v5285_v59  ;;  %v5082_v31 = vor.u32 %v6131_v22, %v5079_v24  ;;  %v5063_v52 = vld [vmem:[#allocation2 + $0x4b0] sm:$0xf0]  ;;  %v5245_v24 = vld [vmem:[#allocation2 + $0xa50] sm:$0xf] }
 0x19d   :  { %v1740_v41 = vpack.c.bf16 %v1736_v63, %v1736_v63  ;;  %2776 = vmatpush.bf16.msrb.mxu2 %v5274_v26  ;;  %v6177_v63 = vld [vmem:[#allocation2 + $0xad4] sm:$0xf]  ;;  %v6174_v26 = vld [vmem:[#allocation2 + $0xa6c] sm:$0xf0] }
 0x19e   :  { %v1711_v30 = vpop.f32.mrf.mxu2  ;;  %2677 = vmatmul.bf16.vlgmr.msra.gmra.mxu3 %v6603_v34  ;;  %v5266_v37 = vor.u32 %v6177_v63, %v5263_v33  ;;  %v6159_v55 = vld [vmem:[#allocation2 + $0x894] sm:$0xf]  ;;  %v5246_v63 = vor.u32 %v6174_v26, %v5245_v24  ;;  %v5415_v24 = vld [vmem:[#allocation2 + $0x158] sm:$0xf] }
 0x19f   :  { %v1742_v42 = vunpack.c.l.bf16 %v1740_v41  ;;  %2734 = vmatpush.bf16.msrb.mxu3 %v5106_v54  ;;  %2761 = vmatpush.bf16.msrb.mxu0 %v5226_v5  ;;  %v5277_v30 = vld [vmem:[#allocation2 + $0xb50] sm:$0xf]  ;;  %v5199_v41 = vld [vmem:[#allocation2 + $0x8f0] sm:$0xf0]  ;;  %v5270_v54 = vor.u32 %v6180_v45, %v5269_v44  ;;  %v5194_v0 = vor.u32 %v6159_v55, %v5191_v56  ;;  %v6216_v26 = vld [vmem:[#allocation2 + $0x174] sm:$0xf0] }
 0x1a0   :  { %v1737_v62 = vpop.f32.mrf.mxu1  ;;  %v5278_v40 = vor.u32 %v6182_v23, %v5277_v30  ;;  %v5202_v47 = vor.u32 %v6161_v12, %v5199_v41  ;;  %v6157_v5 = vld [vmem:[#allocation2 + $0x854] sm:$0xf]  ;;  %v5237_v30 = vld [vmem:[#allocation2 + $0xa10] sm:$0xf] }
 0x1a1   :  { %6345 = vtanh.f32 %v1742_v42  ;;  %2777 = vmatpush.bf16.msrb.mxu2 %v5266_v37  ;;  %v5074_v42 = vor.u32 %v6129_v35, %v5071_v36  ;;  %v5066_v62 = vor.u32 %v6127_v51, %v5063_v52  ;;  %v5186_v15 = vor.u32 %v6157_v5, %v5183_v6  ;;  %v5239_v16 = vld [vmem:[#allocation2 + $0xa30] sm:$0xf0]  ;;  %v6172_v23 = vld [vmem:[#allocation2 + $0xa2c] sm:$0xf0]  ;;  %v6196_v5 = vld [vmem:[#allocation6 + $0x138] sm:$0xff] }
 0x1a2   :  { %v6123_v17 = vld [vmem:[#allocation2 + $0x414] sm:$0xf]  ;;  %v5242_v59 = vor.u32 %v6171_v7, %v5239_v16  ;;  %v5238_v33 = vor.u32 %v6172_v23, %v5237_v30 }
 0x1a3   :  { %2735 = vmatpush.bf16.msrb.mxu3 %v5098_v4  ;;  %2762 = vmatpush.bf16.msrb.mxu0 %v5218_v20  ;;  %v5262_v4 = vor.u32 %v6178_v11, %v5261_v61  ;;  %v6187_v46 = vld [vmem:[#allocation2 + $0xc14] sm:$0xf] }
 0x1a4   :  { %v6155_v21 = vld [vmem:[#allocation2 + $0x814] sm:$0xf] }
 0x1a5   :  { %2778 = vmatpush.bf16.msrb.mxu2 %v5258_v49  ;;  %v5175_v22 = vld [vmem:[#allocation2 + $0x830] sm:$0xf0] }
 0x1a6   :  { %v5178_v28 = vor.u32 %v6155_v21, %v5175_v22  ;;  %v6151_v36 = vld [vmem:[#allocation2 + $0x794] sm:$0xf]  ;;  %v6193_v22 = vld [vmem:[#allocation6 + $0x120] sm:$0xff] }
 0x1a7   :  { %v6346_v13 = vpop.eup %6345  ;;  %2736 = vmatpush.bf16.msrb.mxu3 %v5090_v19  ;;  %2763 = vmatpush.bf16.msrb.mxu0 %v5210_v32  ;;  %v5303_v19 = vld [vmem:[#allocation2 + $0xc30] sm:$0xf0] }
 0x1a8   :  { %v1746_v18 = vpack.c.bf16 %v6346_v13, %v6346_v13  ;;  %v6176_v13 = vld [vmem:[#allocation2 + $0xaac] sm:$0xf0]  ;;  %v5306_v29 = vor.u32 %v6187_v46, %v5303_v19  ;;  %v5167_v32 = vld [vmem:[#allocation2 + $0x7f0] sm:$0xf0]  ;;  %v6218_v46 = vld [vmem:[#allocation2 + $0x1b4] sm:$0xf0] }
 0x1a9   :  { %2779 = vmatpush.bf16.msrb.mxu2 %v5250_v38  ;;  %v5254_v20 = vor.u32 %v6176_v13, %v5253_v10  ;;  %v5159_v37 = vld [vmem:[#allocation2 + $0x7b0] sm:$0xf0]  ;;  %v5431_v10 = vld [vmem:[#allocation2 + $0x1d8] sm:$0xf] }
 0x1aa   :  { %1896 = vmatmul.bf16.vlgmr.msrb.gmra.mxu1 %v1746_v18  ;;  %v5047_v18 = vld [vmem:[#allocation2 + $0x430] sm:$0xf0]  ;;  %v6220_v13 = vld [vmem:[#allocation2 + $0x1f4] sm:$0xf0] }
 0x1ab   :  { %2682 = vmatpush.bf16.msrb.mxu1 %v5294_v14  ;;  %2737 = vmatpush.bf16.msrb.mxu3 %v5082_v31  ;;  %v5058_v14 = vor.u32 %v6125_v2, %v5055_v3  ;;  %v6153_v31 = vld [vmem:[#allocation2 + $0x7d4] sm:$0xf] }
 0x1ac   :  { %2764 = vmatpush.bf16.msrb.mxu0 %v5202_v47  ;;  %v5170_v35 = vor.u32 %v6153_v31, %v5167_v32  ;;  %v6149_v12 = vld [vmem:[#allocation2 + $0x754] sm:$0xf]  ;;  %v6192_v31 = vld [vmem:[#allocation6 + $0x118] sm:$0xff]  ;;  %v5407_v32 = vld [vmem:[#allocation2 + $0x118] sm:$0xf] }
 0x1ad   :  { %2780 = vmatpush.bf16.msrb.mxu2 %v5242_v59  ;;  %v5151_v41 = vld [vmem:[#allocation2 + $0x770] sm:$0xf0]  ;;  %v6203_v59 = vld [vmem:[#allocation6 + $0x170] sm:$0xff] }
 0x1ae   :  { %v5154_v43 = vor.u32 %v6149_v12, %v5151_v41  ;;  %v6147_v44 = vld [vmem:[#allocation2 + $0x714] sm:$0xf]  ;;  %v6212_v12 = vld [vmem:[#allocation2 + $0xf4] sm:$0xf0] }
 0x1af   :  { %2683 = vmatpush.bf16.msrb.mxu1 %v5286_v27  ;;  %2738 = vmatpush.bf16.msrb.mxu3 %v5074_v42  ;;  %v5050_v27 = vor.u32 %v6123_v17, %v5047_v18  ;;  %v5143_v45 = vld [vmem:[#allocation2 + $0x730] sm:$0xf0]  ;;  %v5423_v18 = vld [vmem:[#allocation2 + $0x198] sm:$0xf] }
 0x1b0   :  { %2765 = vmatpush.bf16.msrb.mxu0 %v5194_v0  ;;  %2781 = vmatmul.bf16.vlgmr.msrb.gmra.mxu2 %v6605_v39  ;;  %v5146_v47 = vor.u32 %v6147_v44, %v5143_v45  ;;  %v6145_v50 = vld [vmem:[#allocation2 + $0x6d4] sm:$0xf]  ;;  %v6702_v45 = vld [vmem:[#allocation4 + $0x4] sm:$0x3] }
 0x1b1   :  { %v5135_v51 = vld [vmem:[#allocation2 + $0x6f0] sm:$0xf0] }
 0x1b2   :  { %v5138_v52 = vor.u32 %v6145_v50, %v5135_v51  ;;  %v6143_v49 = vld [vmem:[#allocation2 + $0x694] sm:$0xf]  ;;  %v5495_v50 = vld [vmem:[#allocation2 + $0x3d8] sm:$0xf] }
 0x1b3   :  { %2684 = vmatpush.bf16.msrb.mxu1 %v5278_v40  ;;  %2739 = vmatpush.bf16.msrb.mxu3 %v5066_v62  ;;  %v5162_v40 = vor.u32 %v6151_v36, %v5159_v37  ;;  %v6141_v58 = vld [vmem:[#allocation2 + $0x654] sm:$0xf]  ;;  %v6191_v37 = vld [vmem:[#allocation6 + $0x110] sm:$0xff] }
 0x1b4   :  { %2766 = vmatpush.bf16.msrb.mxu0 %v5186_v15  ;;  %v5119_v61 = vld [vmem:[#allocation2 + $0x670] sm:$0xf0]  ;;  %v5432_v15 = vor.u32 %v6220_v13, %v5431_v10  ;;  %v6236_v51 = vld [vmem:[#allocation2 + $0x3f4] sm:$0xf0] }
 0x1b5   :  { %v5122_v11 = vor.u32 %v6141_v58, %v5119_v61  ;;  %v6139_v62 = vld [vmem:[#allocation2 + $0x614] sm:$0xf]  ;;  %v6210_v58 = vld [vmem:[#allocation2 + $0xb4] sm:$0xf0]  ;;  %v2123_v61 = vperm.slane %v6702_v45, 0 }
 0x1b6   :  { %v6676_v25 = vpop.f32.mrf.mxu2  ;;  %v5111_v0 = vld [vmem:[#allocation2 + $0x630] sm:$0xf0] }
 0x1b7   :  { %2685 = vmatpush.bf16.msrb.mxu1 %v5270_v54  ;;  %2740 = vmatpush.bf16.msrb.mxu3 %v5058_v14  ;;  %v5127_v54 = vld [vmem:[#allocation2 + $0x6b0] sm:$0xf0]  ;;  %v5114_v1 = vor.u32 %v6139_v62, %v5111_v0  ;;  %v6204_v14 = vld [vmem:[#allocation6 + $0x178] sm:$0xff]  ;;  %v5487_v0 = vld [vmem:[#allocation2 + $0x398] sm:$0xf] }
 0x1b8   :  { %2767 = vmatpush.bf16.msrb.mxu0 %v5178_v28  ;;  %v5130_v56 = vor.u32 %v6143_v49, %v5127_v54  ;;  %v6194_v17 = vld [vmem:[#allocation6 + $0x128] sm:$0xff]  ;;  %v5416_v28 = vor.u32 %v6216_v26, %v5415_v24  ;;  %v5496_v49 = vor.u32 %v6236_v51, %v5495_v50  ;;  %v5623_v26 = vld [vmem:[#allocation2 + $0x7d8] sm:$0xf] }
 0x1b9   :  { %v6198_v13 = vld [vmem:[#allocation6 + $0x148] sm:$0xff] }
 0x1ba   :  { %2638 = vmatmul.bf16.vlgmr.msra.gmra.mxu1 %v6589_v9  ;;  %3569 = vmatpush.bf16.msra.mxu2 %v5496_v49 }
 0x1bb   :  { %2686 = vmatpush.bf16.msrb.mxu1 %v5262_v4  ;;  %2741 = vmatpush.bf16.msrb.mxu3 %v5050_v27  ;;  %v6202_v27 = vld [vmem:[#allocation6 + $0x168] sm:$0xff] }
 0x1bc   :  { %2768 = vmatmul.bf16.vlgmr.msrb.gmra.mxu0 %v6603_v34  ;;  %v6683_v42 = vpop.f32.mrf.mxu0 }
 0x1bd   :  { %3556 = vmatpush.bf16.msra.mxu0 %v5432_v15 }
 0x1be   :  { %v2008_v8 = vpop.f32.mrf.mxu2  ;;  %2742 = vmatmul.bf16.vlgmr.msrb.gmra.mxu3 %v6581_v53 }
 0x1bf   :  { %2687 = vmatpush.bf16.msrb.mxu1 %v5254_v20  ;;  %2793 = vmatpush.bf16.msra.mxu3 %v5306_v29  ;;  %v6195_v8 = vld [vmem:[#allocation6 + $0x130] sm:$0xff]  ;;  %v5424_v20 = vor.u32 %v6218_v46, %v5423_v18 }
 0x1c0   :  { %v6232_v18 = vld [vmem:[#allocation2 + $0x374] sm:$0xf0] }
 0x1c1   :  { %3557 = vmatpush.bf16.msra.mxu0 %v5424_v20  ;;  %v5375_v20 = vld [vmem:[#allocation2 + $0x18] sm:$0xf] }
 0x1c3   :  { %2688 = vmatpush.bf16.msrb.mxu1 %v5246_v63  ;;  %2948 = vmatpush.bf16.msrb.mxu3 %v6204_v14 }
 0x1c4   :  { %v2021_v55 = vpop.f32.mrf.mxu0 }
 0x1c5   :  { %3558 = vmatpush.bf16.msra.mxu0 %v5416_v28  ;;  %v6190_v55 = vld [vmem:[#allocation6 + $0x108] sm:$0xff] }
 0x1c7   :  { %2689 = vmatpush.bf16.msrb.mxu1 %v5238_v33  ;;  %2949 = vmatpush.bf16.msrb.mxu3 %v6203_v59  ;;  %v6214_v33 = vld [vmem:[#allocation2 + $0x134] sm:$0xf0] }
 0x1c8   :  { %v5408_v36 = vor.u32 %v6214_v33, %v5407_v32 }
 0x1ca   :  { %2690 = vmatmul.bf16.vlgmr.msrb.gmra.mxu1 %v6605_v39  ;;  %3559 = vmatpush.bf16.msra.mxu0 %v5408_v36  ;;  %v6266_v36 = vld [vmem:[#allocation2 + $0x7b4] sm:$0xf0] }
 0x1cb   :  { %2747 = vmatpush.bf16.msra.mxu1 %v5170_v35  ;;  %2950 = vmatpush.bf16.msrb.mxu3 %v6202_v27  ;;  %v6201_v35 = vld [vmem:[#allocation6 + $0x160] sm:$0xff]  ;;  %v5687_v27 = vld [vmem:[#allocation2 + $0x9d8] sm:$0xf] }
 0x1ce   :  { %5308 = vmatmul.msk.bf16.vlgmr.msra.gmra.mxu3 %vm737_vm0, %v6596_v48 }
 0x1cf   :  { %2748 = vmatpush.bf16.msra.mxu1 %v5162_v40  ;;  %2951 = vmatpush.bf16.msrb.mxu3 %v6201_v35  ;;  %v5399_v40 = vld [vmem:[#allocation2 + $0xd8] sm:$0xf] }
 0x1d0   :  { %v5400_v44 = vor.u32 %v6212_v12, %v5399_v40  ;;  %v5615_v35 = vld [vmem:[#allocation2 + $0x798] sm:$0xf] }
 0x1d1   :  { %v5616_v40 = vor.u32 %v6266_v36, %v5615_v35  ;;  %v6282_v12 = vld [vmem:[#allocation2 + $0x9b4] sm:$0xf0] }
 0x1d2   :  { %3560 = vmatpush.bf16.msra.mxu0 %v5400_v44  ;;  %v6228_v44 = vld [vmem:[#allocation2 + $0x2f4] sm:$0xf0] }
 0x1d3   :  { %2749 = vmatpush.bf16.msra.mxu1 %v5154_v43  ;;  %v6200_v43 = vld [vmem:[#allocation6 + $0x158] sm:$0xff]  ;;  %v5439_v35 = vld [vmem:[#allocation2 + $0x218] sm:$0xf] }
 0x1d4   :  { %2952 = vmatpush.bf16.msrb.mxu3 %v6200_v43  ;;  %v5463_v43 = vld [vmem:[#allocation2 + $0x2d8] sm:$0xf] }
 0x1d5   :  { %v5464_v49 = vor.u32 %v6228_v44, %v5463_v43  ;;  %v6222_v36 = vld [vmem:[#allocation2 + $0x234] sm:$0xf0] }
 0x1d6   :  { %v6688_v2 = vpop.f32.mrf.mxu2  ;;  %v5543_v43 = vld [vmem:[#allocation2 + $0x558] sm:$0xf] }
 0x1d7   :  { %2750 = vmatpush.bf16.msra.mxu1 %v5146_v47  ;;  %v6248_v44 = vld [vmem:[#allocation2 + $0x574] sm:$0xf0] }
 0x1db   :  { %2751 = vmatpush.bf16.msra.mxu1 %v5138_v52 }
 0x1de   :  { %v2654_v38 = vpop.f32.mrf.mxu2 }
 0x1df   :  { %2752 = vmatpush.bf16.msra.mxu1 %v5130_v56  ;;  %v5391_v56 = vld [vmem:[#allocation2 + $0x98] sm:$0xf]  ;;  %v6189_v38 = vld [vmem:[#allocation6 + $0x100] sm:$0xff] }
 0x1e0   :  { %v5392_v62 = vor.u32 %v6210_v58, %v5391_v56  ;;  %v5607_v58 = vld [vmem:[#allocation2 + $0x758] sm:$0xf] }
 0x1e2   :  { %3561 = vmatpush.bf16.msra.mxu0 %v5392_v62  ;;  %v6280_v62 = vld [vmem:[#allocation2 + $0x974] sm:$0xf0] }
 0x1e3   :  { %2753 = vmatpush.bf16.msra.mxu1 %v5122_v11  ;;  %v6199_v11 = vld [vmem:[#allocation6 + $0x150] sm:$0xff] }
 0x1e4   :  { %2953 = vmatpush.bf16.msrb.mxu3 %v6199_v11  ;;  %v5671_v11 = vld [vmem:[#allocation2 + $0x958] sm:$0xf] }
 0x1e7   :  { %2754 = vmatpush.bf16.msra.mxu1 %v5114_v1  ;;  %v6234_v1 = vld [vmem:[#allocation2 + $0x3b4] sm:$0xf0] }
 0x1e8   :  { %2954 = vmatpush.bf16.msrb.mxu3 %v6198_v13 }
 0x1e9   :  { %v6692_v7 = vpop.f32.mrf.mxu0 }
 0x1ea   :  { %2755 = vmatmul.bf16.vlgmr.msra.gmra.mxu1 %v6585_v60 }
 0x1eb   :  { %2935 = vmatpush.bf16.msrb.mxu1 %v6196_v5  ;;  %v6208_v5 = vld [vmem:[#allocation2 + $0x74] sm:$0xf0] }
 0x1ee   :  { %v6694_v16 = vpop.f32.mrf.mxu2 }
 0x1ef   :  { %2936 = vmatpush.bf16.msrb.mxu1 %v6195_v8 }
 0x1f1   :  { %v2667_v21 = vpop.f32.mrf.mxu0 }
 0x1f2   :  { %v6206_v21 = vld [vmem:[#allocation2 + $0x34] sm:$0xf0] }
 0x1f3   :  { %2937 = vmatpush.bf16.msrb.mxu1 %v6194_v17  ;;  %v5479_v17 = vld [vmem:[#allocation2 + $0x358] sm:$0xf]  ;;  %v5376_v24 = vor.u32 %v6206_v21, %v5375_v20 }
 0x1f4   :  { %v5480_v46 = vor.u32 %v6232_v18, %v5479_v17  ;;  %v5663_v17 = vld [vmem:[#allocation2 + $0x918] sm:$0xf] }
 0x1f5   :  { %v6224_v20 = vld [vmem:[#allocation2 + $0x274] sm:$0xf0] }
 0x1f6   :  { %v2706_v63 = vpop.f32.mrf.mxu2 }
 0x1f7   :  { %2938 = vmatpush.bf16.msrb.mxu1 %v6193_v22  ;;  %v5471_v63 = vld [vmem:[#allocation2 + $0x318] sm:$0xf] }
 0x1fb   :  { %2939 = vmatpush.bf16.msrb.mxu1 %v6192_v31  ;;  %v6230_v31 = vld [vmem:[#allocation2 + $0x334] sm:$0xf0] }
 0x1fc   :  { %v5472_v33 = vor.u32 %v6230_v31, %v5471_v63  ;;  %v6260_v63 = vld [vmem:[#allocation2 + $0x6f4] sm:$0xf0] }
 0x1fd   :  { %v5655_v31 = vld [vmem:[#allocation2 + $0x8d8] sm:$0xf] }
 0x1ff   :  { %2940 = vmatpush.bf16.msrb.mxu1 %v6191_v37  ;;  %v5679_v37 = vld [vmem:[#allocation2 + $0x998] sm:$0xf] }
 0x200   :  { %v5680_v51 = vor.u32 %v6282_v12, %v5679_v37  ;;  %v5440_v12 = vor.u32 %v6222_v36, %v5439_v35  ;;  %v6235_v35 = vld [vmem:[#allocation2 + $0x3dc] sm:$0xf] }
 0x201   :  { %v1884_v3 = vpop.f32.mrf.mxu3  ;;  %v5497_v36 = vld [vmem:[#allocation2 + $0x3f8] sm:$0xf0] }
 0x203   :  { %2941 = vmatpush.bf16.msrb.mxu1 %v6190_v55 }
 0x207   :  { %2942 = vmatpush.bf16.msrb.mxu1 %v6189_v38 }
 0x209   :  { %v1886_v4 = vpop.f32.mrf.mxu3 }
 0x20a   :  { %v5383_v4 = vld [vmem:[#allocation2 + $0x58] sm:$0xf] }
 0x20b   :  { %v5384_v14 = vor.u32 %v6208_v5, %v5383_v4  ;;  %v5559_v4 = vld [vmem:[#allocation2 + $0x5d8] sm:$0xf] }
 0x20c   :  { %v6700_v41 = vpop.f32.mrf.mxu0  ;;  %v6252_v5 = vld [vmem:[#allocation2 + $0x5f4] sm:$0xf0] }
 0x20d   :  { %3562 = vmatpush.bf16.msra.mxu0 %v5384_v14  ;;  %v5599_v14 = vld [vmem:[#allocation2 + $0x718] sm:$0xf] }
 0x20f   :  { %v6704_v52 = vpop.f32.mrf.mxu2 }
 0x211   :  { %v6690_v6 = vpop.f32.mrf.mxu3  ;;  %3563 = vmatpush.bf16.msra.mxu0 %v5376_v24 }
 0x212   :  { %v2627_v8 = vadd.f32 %v6690_v6, %v2123_v61  ;;  %v6268_v6 = vld [vmem:[#allocation2 + $0x7f4] sm:$0xf0] }
 0x213   :  { %v5624_v28 = vor.u32 %v6268_v6, %v5623_v26  ;;  %v6264_v61 = vld [vmem:[#allocation2 + $0x774] sm:$0xf0] }
 0x214   :  { %v2719_v10 = vpop.f32.mrf.mxu0  ;;  %3564 = vmatmul.bf16.vlgmr.msra.gmra.mxu0 %v6583_v57  ;;  %v5551_v26 = vld [vmem:[#allocation2 + $0x598] sm:$0xf] }
 0x215   :  { %v6250_v6 = vld [vmem:[#allocation2 + $0x5b4] sm:$0xf0] }
 0x217   :  { %v2732_v59 = vpop.f32.mrf.mxu2 }
 0x219   :  { %v2628_v19 = vpop.f32.mrf.mxu3 }
 0x21a   :  { %v6197_v19 = vld [vmem:[#allocation6 + $0x140] sm:$0xff] }
 0x21b   :  { %2955 = vmatpush.bf16.msrb.mxu3 %v6197_v19  ;;  %v5447_v19 = vld [vmem:[#allocation2 + $0x258] sm:$0xf] }
 0x21c   :  { %v5448_v24 = vor.u32 %v6224_v20, %v5447_v19  ;;  %v6244_v19 = vld [vmem:[#allocation2 + $0x4f4] sm:$0xf0] }
 0x21d   :  { %v5735_v20 = vld [vmem:[#allocation2 + $0xb58] sm:$0xf] }
 0x21f   :  { %3595 = vmatpush.bf16.msra.mxu3 %v5624_v28 }
 0x221   :  { %v6698_v23 = vpop.f32.mrf.mxu3 }
 0x223   :  { %3596 = vmatpush.bf16.msra.mxu3 %v5616_v40 }
 0x227   :  { %v1897_v29 = vpop.f32.mrf.mxu1 }
 0x228   :  { %v6696_v30 = vadd.f32 %v1897_v29, %v1884_v3  ;;  %v5488_v3 = vor.u32 %v6234_v1, %v5487_v0  ;;  %v6284_v29 = vld [vmem:[#allocation2 + $0x9f4] sm:$0xf0] }
 0x229   :  { %v2680_v54 = vpop.f32.mrf.mxu3  ;;  %v5688_v32 = vor.u32 %v6284_v29, %v5687_v27  ;;  %v5455_v0 = vld [vmem:[#allocation2 + $0x298] sm:$0xf]  ;;  %v5552_v27 = vor.u32 %v6250_v6, %v5551_v26 }
 0x22a   :  { %3570 = vmatpush.bf16.msra.mxu2 %v5488_v3  ;;  %v6226_v1 = vld [vmem:[#allocation2 + $0x2b4] sm:$0xf0]  ;;  %v5672_v3 = vor.u32 %v6280_v62, %v5671_v11 }
 0x22b   :  { %3608 = vmatpush.bf16.msrb.mxu0 %v5688_v32  ;;  %v5456_v38 = vor.u32 %v6226_v1, %v5455_v0  ;;  %v5591_v29 = vld [vmem:[#allocation2 + $0x6d8] sm:$0xf] }
 0x22c   :  { %v5592_v32 = vor.u32 %v6260_v63, %v5591_v29  ;;  %v5647_v11 = vld [vmem:[#allocation2 + $0x898] sm:$0xf] }
 0x22d   :  { %v6274_v0 = vld [vmem:[#allocation2 + $0x8b4] sm:$0xf0] }
 0x22e   :  { %3571 = vmatpush.bf16.msra.mxu2 %v5480_v46  ;;  %v6278_v46 = vld [vmem:[#allocation2 + $0x934] sm:$0xf0]  ;;  %v5648_v1 = vor.u32 %v6274_v0, %v5647_v11 }
 0x22f   :  { %v1899_v47 = vpop.f32.mrf.mxu1  ;;  %3609 = vmatpush.bf16.msrb.mxu0 %v5680_v51  ;;  %v5544_v51 = vor.u32 %v6248_v44, %v5543_v43  ;;  %v5567_v26 = vld [vmem:[#allocation2 + $0x618] sm:$0xf] }
 0x230   :  { %v6254_v6 = vld [vmem:[#allocation2 + $0x634] sm:$0xf0] }
 0x231   :  { %v5727_v43 = vld [vmem:[#allocation2 + $0xb18] sm:$0xf] }
 0x232   :  { %3572 = vmatpush.bf16.msra.mxu2 %v5472_v33  ;;  %v6276_v33 = vld [vmem:[#allocation2 + $0x8f4] sm:$0xf0] }
 0x233   :  { %v6712_v55 = vpop.f32.mrf.mxu2  ;;  %3610 = vmatpush.bf16.msrb.mxu0 %v5672_v3  ;;  %v5656_v40 = vor.u32 %v6276_v33, %v5655_v31  ;;  %v5535_v3 = vld [vmem:[#allocation2 + $0x518] sm:$0xf]  ;;  %v2124_v33 = vperm.slane %v6702_v45, 1  ;;  %v5489_v45 = vld [vmem:[#allocation2 + $0x3b8] sm:$0xf0] }
 0x236   :  { %3573 = vmatpush.bf16.msra.mxu2 %v5464_v49  ;;  %v6300_v49 = vld [vmem:[#allocation2 + $0xbf4] sm:$0xf0] }
 0x237   :  { %v2639_v15 = vpop.f32.mrf.mxu1 }
 0x238   :  { %v2640_v22 = vadd.f32 %v2639_v15, %v2627_v8  ;;  %v5560_v8 = vor.u32 %v6252_v5, %v5559_v4  ;;  %v6262_v15 = vld [vmem:[#allocation2 + $0x734] sm:$0xf0] }
 0x239   :  { %v6709_v50 = vpop.f32.mrf.mxu0  ;;  %v5600_v59 = vor.u32 %v6262_v15, %v5599_v14  ;;  %v5743_v4 = vld [vmem:[#allocation2 + $0xb98] sm:$0xf] }
 0x23a   :  { %v2653_v47 = vadd.f32 %v6688_v2, %v2640_v22  ;;  %v5608_v2 = vor.u32 %v6264_v61, %v5607_v58  ;;  %3574 = vmatpush.bf16.msra.mxu2 %v5456_v38  ;;  %3582 = vmatpush.bf16.msra.mxu1 %v5560_v8  ;;  %v5664_v22 = vor.u32 %v6278_v46, %v5663_v17  ;;  %v5583_v58 = vld [vmem:[#allocation2 + $0x698] sm:$0xf] }
 0x23b   :  { %v6258_v61 = vld [vmem:[#allocation2 + $0x6b4] sm:$0xf0] }
 0x23c   :  { %v2666_v56 = vadd.f32 %v6692_v7, %v2653_v47  ;;  %3597 = vmatpush.bf16.msra.mxu3 %v5608_v2  ;;  %3611 = vmatpush.bf16.msrb.mxu0 %v5664_v22  ;;  %v5751_v47 = vld [vmem:[#allocation2 + $0xbd8] sm:$0xf]  ;;  %v5584_v62 = vor.u32 %v6258_v61, %v5583_v58 }
 0x23d   :  { %v6246_v38 = vld [vmem:[#allocation2 + $0x534] sm:$0xf0] }
 0x23e   :  { %v2679_v10 = vadd.f32 %v6698_v23, %v2666_v56  ;;  %v2784_v23 = vpop.f32.mrf.mxu2  ;;  %3575 = vmatpush.bf16.msra.mxu2 %v5448_v24  ;;  %3583 = vmatpush.bf16.msra.mxu1 %v5552_v27  ;;  %v5752_v56 = vor.u32 %v6300_v49, %v5751_v47  ;;  %v5536_v5 = vor.u32 %v6246_v38, %v5535_v3  ;;  %v6298_v8 = vld [vmem:[#allocation2 + $0xbb4] sm:$0xf0]  ;;  %v5481_v3 = vld [vmem:[#allocation2 + $0x378] sm:$0xf0] }
 0x23f   :  { %v2641_v54 = vpop.f32.mrf.mxu1  ;;  %v5744_v14 = vor.u32 %v6298_v8, %v5743_v4  ;;  %v5639_v17 = vld [vmem:[#allocation2 + $0x858] sm:$0xf]  ;;  %v5568_v27 = vor.u32 %v6254_v6, %v5567_v26 }
 0x240   :  { %3598 = vmatpush.bf16.msra.mxu3 %v5600_v59  ;;  %3612 = vmatpush.bf16.msrb.mxu0 %v5656_v40  ;;  %v5527_v59 = vld [vmem:[#allocation2 + $0x4d8] sm:$0xf] }
 0x241   :  { %v6716_v13 = vpop.f32.mrf.mxu3  ;;  %v2771_v7 = vpop.f32.mrf.mxu0  ;;  %v5528_v22 = vor.u32 %v6244_v19, %v5527_v59  ;;  %v5631_v23 = vld [vmem:[#allocation2 + $0x818] sm:$0xf] }
 0x242   :  { %3576 = vmatpush.bf16.msra.mxu2 %v5440_v12  ;;  %3584 = vmatpush.bf16.msra.mxu1 %v5544_v51  ;;  %v6256_v7 = vld [vmem:[#allocation2 + $0x674] sm:$0xf0]  ;;  %v2718_v51 = vadd.f32 %v6700_v41, %v2124_v33  ;;  %v6231_v41 = vld [vmem:[#allocation2 + $0x35c] sm:$0xf] }
 0x243   :  { %v5519_v40 = vld [vmem:[#allocation2 + $0x498] sm:$0xf]  ;;  %v5484_v38 = vor.u32 %v6231_v41, %v5481_v3  ;;  %v6245_v41 = vld [vmem:[#allocation2 + $0x51c] sm:$0xf] }
 0x244   :  { %3599 = vmatpush.bf16.msra.mxu3 %v5592_v32  ;;  %3613 = vmatpush.bf16.msrb.mxu0 %v5648_v1  ;;  %v6242_v12 = vld [vmem:[#allocation2 + $0x4b4] sm:$0xf0]  ;;  %v2731_v0 = vadd.f32 %v6704_v52, %v2718_v51  ;;  %v5473_v52 = vld [vmem:[#allocation2 + $0x338] sm:$0xf0] }
 0x245   :  { %3577 = vmatmul.bf16.vlgmr.msra.gmra.mxu2 %v6589_v9  ;;  %v5520_v44 = vor.u32 %v6242_v12, %v5519_v40  ;;  %v6294_v47 = vld [vmem:[#allocation2 + $0xb34] sm:$0xf0]  ;;  %v5553_v40 = vld [vmem:[#allocation2 + $0x5b8] sm:$0xf0] }
 0x246   :  { %3621 = vmatpush.bf16.msrb.mxu2 %v5752_v56  ;;  %3585 = vmatpush.bf16.msra.mxu1 %v5536_v5  ;;  %v5728_v49 = vor.u32 %v6294_v47, %v5727_v43  ;;  %v5511_v56 = vld [vmem:[#allocation2 + $0x458] sm:$0xf]  ;;  %v6267_v12 = vld [vmem:[#allocation2 + $0x7dc] sm:$0xf] }
 0x247   :  { %v2691_v18 = vpop.f32.mrf.mxu1  ;;  %v6240_v58 = vld [vmem:[#allocation2 + $0x474] sm:$0xf0]  ;;  %v5625_v47 = vld [vmem:[#allocation2 + $0x7f8] sm:$0xf0] }
 0x248   :  { %v2692_v21 = vadd.f32 %v2691_v18, %v2679_v10  ;;  %3600 = vmatpush.bf16.msra.mxu3 %v5584_v62  ;;  %v5575_v10 = vld [vmem:[#allocation2 + $0x658] sm:$0xf]  ;;  %v5628_v51 = vor.u32 %v6267_v12, %v5625_v47  ;;  %v5537_v3 = vld [vmem:[#allocation2 + $0x538] sm:$0xf0] }
 0x249   :  { %v2745_v54 = vpop.f32.mrf.mxu3  ;;  %v5576_v15 = vor.u32 %v6256_v7, %v5575_v10  ;;  %v6272_v18 = vld [vmem:[#allocation2 + $0x874] sm:$0xf0]  ;;  %v5593_v12 = vld [vmem:[#allocation2 + $0x6f8] sm:$0xf0] }
 0x24a   :  { %v2705_v28 = vadd.f32 %v6694_v16, %v2692_v21  ;;  %v5640_v46 = vor.u32 %v6272_v18, %v5639_v17  ;;  %v6296_v21 = vld [vmem:[#allocation2 + $0xb74] sm:$0xf0]  ;;  %3622 = vmatpush.bf16.msrb.mxu2 %v5744_v14  ;;  %3586 = vmatpush.bf16.msra.mxu1 %v5528_v22  ;;  %v2744_v14 = vadd.f32 %v6716_v13, %v2731_v0  ;;  %v6229_v18 = vld [vmem:[#allocation2 + $0x31c] sm:$0xf] }
 0x24b   :  { %v5736_v24 = vor.u32 %v6296_v21, %v5735_v20  ;;  %v5719_v61 = vld [vmem:[#allocation2 + $0xad8] sm:$0xf]  ;;  %v5561_v13 = vld [vmem:[#allocation2 + $0x5f8] sm:$0xf0] }
 0x24c   :  { %v2799_v37 = vpack.c.bf16 %v2705_v28, %v2705_v28  ;;  %3601 = vmatpush.bf16.msra.mxu3 %v5576_v15  ;;  %v6270_v28 = vld [vmem:[#allocation2 + $0x834] sm:$0xf0]  ;;  %3614 = vmatpush.bf16.msrb.mxu0 %v5640_v46  ;;  %v5476_v46 = vor.u32 %v6229_v18, %v5473_v52  ;;  %v5449_v0 = vld [vmem:[#allocation2 + $0x278] sm:$0xf0] }
 0x24d   :  { %v5632_v31 = vor.u32 %v6270_v28, %v5631_v23  ;;  %v6292_v62 = vld [vmem:[#allocation2 + $0xaf4] sm:$0xf0]  ;;  %v6251_v23 = vld [vmem:[#allocation2 + $0x5dc] sm:$0xf] }
 0x24e   :  { %v2801_v16 = vunpack.c.l.bf16 %v2799_v37  ;;  %3623 = vmatpush.bf16.msrb.mxu2 %v5736_v24  ;;  %v5500_v37 = vor.u32 %v6235_v35, %v5497_v36  ;;  %3587 = vmatpush.bf16.msra.mxu1 %v5520_v44  ;;  %v5720_v1 = vor.u32 %v6292_v62, %v5719_v61  ;;  %v5503_v4 = vld [vmem:[#allocation2 + $0x418] sm:$0xf]  ;;  %v6227_v28 = vld [vmem:[#allocation2 + $0x2dc] sm:$0xf] }
 0x24f   :  { %v2693_v2 = vpop.f32.mrf.mxu1  ;;  %v6238_v5 = vld [vmem:[#allocation2 + $0x434] sm:$0xf0]  ;;  %v6223_v62 = vld [vmem:[#allocation2 + $0x25c] sm:$0xf] }
 0x250   :  { %6347 = vtanh.f32 %v2801_v16  ;;  %3602 = vmatpush.bf16.msra.mxu3 %v5568_v27  ;;  %3615 = vmatpush.bf16.msrb.mxu0 %v5632_v31  ;;  %v6233_v16 = vld [vmem:[#allocation2 + $0x39c] sm:$0xf]  ;;  %v5512_v2 = vor.u32 %v6240_v58, %v5511_v56  ;;  %v5711_v8 = vld [vmem:[#allocation2 + $0xa98] sm:$0xf]  ;;  %v5504_v10 = vor.u32 %v6238_v5, %v5503_v4  ;;  %v5564_v27 = vor.u32 %v6251_v23, %v5561_v13 }
 0x251   :  { %v6720_v63 = vpop.f32.mrf.mxu3  ;;  %v5492_v54 = vor.u32 %v6233_v16, %v5489_v45  ;;  %v6290_v7 = vld [vmem:[#allocation2 + $0xab4] sm:$0xf0]  ;;  %v5465_v31 = vld [vmem:[#allocation2 + $0x2f8] sm:$0xf0] }
 0x252   :  { %3624 = vmatpush.bf16.msrb.mxu2 %v5728_v49  ;;  %3588 = vmatpush.bf16.msra.mxu1 %v5512_v2  ;;  %v5712_v15 = vor.u32 %v6290_v7, %v5711_v8  ;;  %v5703_v19 = vld [vmem:[#allocation2 + $0xa58] sm:$0xf]  ;;  %v5468_v35 = vor.u32 %v6227_v28, %v5465_v31  ;;  %v6225_v49 = vld [vmem:[#allocation2 + $0x29c] sm:$0xf]  ;;  %v5540_v8 = vor.u32 %v6245_v41, %v5537_v3 }
 0x253   :  { %3616 = vmatmul.bf16.vlgmr.msrb.gmra.mxu0 %v6603_v34  ;;  %v6288_v20 = vld [vmem:[#allocation2 + $0xa74] sm:$0xf0]  ;;  %v5457_v16 = vld [vmem:[#allocation2 + $0x2b8] sm:$0xf0] }
 0x254   :  { %3660 = vmatpush.bf16.msra.mxu0 %v5500_v37  ;;  %v5704_v21 = vor.u32 %v6288_v20, %v5703_v19  ;;  %v5759_v22 = vld [vmem:[#allocation2 + $0xc18] sm:$0xf]  ;;  %v5460_v45 = vor.u32 %v6225_v49, %v5457_v16  ;;  %v6247_v56 = vld [vmem:[#allocation2 + $0x55c] sm:$0xf] }
 0x255   :  { %v6302_v24 = vld [vmem:[#allocation2 + $0xc34] sm:$0xf0]  ;;  %v5545_v58 = vld [vmem:[#allocation2 + $0x578] sm:$0xf0] }
 0x256   :  { %v6348_v29 = vpop.eup %6347  ;;  %3625 = vmatpush.bf16.msrb.mxu2 %v5720_v1  ;;  %3589 = vmatpush.bf16.msra.mxu1 %v5504_v10  ;;  %v5760_v6 = vor.u32 %v6302_v24, %v5759_v22  ;;  %v6286_v33 = vld [vmem:[#allocation2 + $0xa34] sm:$0xf0]  ;;  %v5548_v61 = vor.u32 %v6247_v56, %v5545_v58  ;;  %v5452_v1 = vor.u32 %v6223_v62, %v5449_v0  ;;  %v6219_v4 = vld [vmem:[#allocation2 + $0x1dc] sm:$0xf] }
 0x257   :  { %v2805_v32 = vpack.c.bf16 %v6348_v29, %v6348_v29  ;;  %v5433_v5 = vld [vmem:[#allocation2 + $0x1f8] sm:$0xf0] }
 0x258   :  { %3661 = vmatpush.bf16.msra.mxu0 %v5492_v54  ;;  %v5609_v10 = vld [vmem:[#allocation2 + $0x778] sm:$0xf0] }
 0x259   :  { %2943 = vmatmul.bf16.vlgmr.msrb.gmra.mxu1 %v2805_v32  ;;  %v2797_v11 = vpop.f32.mrf.mxu3  ;;  %v5695_v32 = vld [vmem:[#allocation2 + $0xa18] sm:$0xf]  ;;  %v6299_v18 = vld [vmem:[#allocation2 + $0xbdc] sm:$0xf] }
 0x25a   :  { %3626 = vmatpush.bf16.msrb.mxu2 %v5712_v15  ;;  %3641 = vmatpush.bf16.msrb.mxu1 %v5760_v6  ;;  %v5696_v36 = vor.u32 %v6286_v33, %v5695_v32  ;;  %v5617_v11 = vld [vmem:[#allocation2 + $0x7b8] sm:$0xf0] }
 0x25b   :  { %v5441_v15 = vld [vmem:[#allocation2 + $0x238] sm:$0xf0] }
 0x25c   :  { %3662 = vmatpush.bf16.msra.mxu0 %v5484_v38  ;;  %v6263_v38 = vld [vmem:[#allocation2 + $0x75c] sm:$0xf] }
 0x25d   :  { %v5612_v7 = vor.u32 %v6263_v38, %v5609_v10  ;;  %v5753_v52 = vld [vmem:[#allocation2 + $0xbf8] sm:$0xf0] }
 0x25e   :  { %3627 = vmatpush.bf16.msrb.mxu2 %v5704_v21  ;;  %v5756_v19 = vor.u32 %v6299_v18, %v5753_v52  ;;  %v6243_v20 = vld [vmem:[#allocation2 + $0x4dc] sm:$0xf] }
 0x25f   :  { %v5529_v21 = vld [vmem:[#allocation2 + $0x4f8] sm:$0xf0] }
 0x260   :  { %3663 = vmatpush.bf16.msra.mxu0 %v5476_v46  ;;  %v5436_v46 = vor.u32 %v6219_v4, %v5433_v5  ;;  %v6261_v22 = vld [vmem:[#allocation2 + $0x71c] sm:$0xf]  ;;  %v5532_v23 = vor.u32 %v6243_v20, %v5529_v21 }
 0x261   :  { %v5425_v6 = vld [vmem:[#allocation2 + $0x1b8] sm:$0xf0] }
 0x262   :  { %3628 = vmatpush.bf16.msrb.mxu2 %v5696_v36  ;;  %v5601_v13 = vld [vmem:[#allocation2 + $0x738] sm:$0xf0] }
 0x263   :  { %v6297_v28 = vld [vmem:[#allocation2 + $0xb9c] sm:$0xf] }
 0x264   :  { %3664 = vmatpush.bf16.msra.mxu0 %v5468_v35  ;;  %v6241_v33 = vld [vmem:[#allocation2 + $0x49c] sm:$0xf] }
 0x265   :  { %3629 = vmatmul.bf16.vlgmr.msrb.gmra.mxu2 %v6605_v39  ;;  %v5521_v35 = vld [vmem:[#allocation2 + $0x4b8] sm:$0xf0] }
 0x266   :  { %3686 = vmatpush.bf16.msra.mxu2 %v5628_v51  ;;  %v6259_v36 = vld [vmem:[#allocation2 + $0x6dc] sm:$0xf] }
 0x267   :  { %v2756_v17 = vpop.f32.mrf.mxu1  ;;  %v5737_v47 = vld [vmem:[#allocation2 + $0xb78] sm:$0xf0] }
 0x268   :  { %v2757_v59 = vadd.f32 %v2756_v17, %v2744_v14  ;;  %3665 = vmatpush.bf16.msra.mxu0 %v5460_v45  ;;  %v6221_v14 = vld [vmem:[#allocation2 + $0x21c] sm:$0xf] }
 0x269   :  { %3590 = vmatmul.bf16.vlgmr.msra.gmra.mxu1 %v6581_v53  ;;  %v5444_v17 = vor.u32 %v6221_v14, %v5441_v15  ;;  %v6239_v49 = vld [vmem:[#allocation2 + $0x45c] sm:$0xf] }
 0x26a   :  { %v2770_v26 = vadd.f32 %v6709_v50, %v2757_v59  ;;  %3673 = vmatpush.bf16.msra.mxu1 %v5564_v27  ;;  %v6249_v50 = vld [vmem:[#allocation2 + $0x59c] sm:$0xf]  ;;  %v5604_v27 = vor.u32 %v6261_v22, %v5601_v13 }
 0x26b   :  { %v5556_v44 = vor.u32 %v6249_v50, %v5553_v40  ;;  %v5417_v50 = vld [vmem:[#allocation2 + $0x178] sm:$0xf0]  ;;  %v5524_v40 = vor.u32 %v6241_v33, %v5521_v35 }
 0x26c   :  { %v2783_v29 = vadd.f32 %v6712_v55, %v2770_v26  ;;  %3666 = vmatpush.bf16.msra.mxu0 %v5452_v1  ;;  %v6217_v26 = vld [vmem:[#allocation2 + $0x19c] sm:$0xf] }
 0x26d   :  { %v5428_v32 = vor.u32 %v6217_v26, %v5425_v6  ;;  %v5513_v16 = vld [vmem:[#allocation2 + $0x478] sm:$0xf0] }
 0x26e   :  { %v2796_v37 = vadd.f32 %v6720_v63, %v2783_v29  ;;  %3674 = vmatpush.bf16.msra.mxu1 %v5556_v44  ;;  %v6265_v63 = vld [vmem:[#allocation2 + $0x79c] sm:$0xf]  ;;  %v5516_v58 = vor.u32 %v6239_v49, %v5513_v16 }
 0x26f   :  { %v2758_v43 = vpop.f32.mrf.mxu1  ;;  %v5620_v2 = vor.u32 %v6265_v63, %v5617_v11  ;;  %v5745_v29 = vld [vmem:[#allocation2 + $0xbb8] sm:$0xf0] }
 0x270   :  { %v2800_v55 = vpack.c.bf16 %v2796_v37, %v2796_v37  ;;  %3667 = vmatpush.bf16.msra.mxu0 %v5444_v17  ;;  %v5748_v31 = vor.u32 %v6297_v28, %v5745_v29  ;;  %v6215_v37 = vld [vmem:[#allocation2 + $0x15c] sm:$0xf]  ;;  %v5596_v43 = vor.u32 %v6259_v36, %v5593_v12 }
 0x271   :  { %3687 = vmatpush.bf16.msra.mxu2 %v5620_v2  ;;  %v6295_v44 = vld [vmem:[#allocation2 + $0xb5c] sm:$0xf]  ;;  %v5420_v51 = vor.u32 %v6215_v37, %v5417_v50 }
 0x272   :  { %v2802_v54 = vunpack.c.l.bf16 %v2800_v55  ;;  %3675 = vmatpush.bf16.msra.mxu1 %v5548_v61  ;;  %v5740_v55 = vor.u32 %v6295_v44, %v5737_v47  ;;  %v6257_v45 = vld [vmem:[#allocation2 + $0x69c] sm:$0xf] }
 0x273   :  { %3668 = vmatmul.bf16.vlgmr.msra.gmra.mxu0 %v6589_v9  ;;  %v5409_v56 = vld [vmem:[#allocation2 + $0x138] sm:$0xf0] }
 0x274   :  { %6349 = vtanh.f32 %v2802_v54  ;;  %3712 = vmatpush.bf16.msrb.mxu0 %v5756_v19  ;;  %v6213_v54 = vld [vmem:[#allocation2 + $0x11c] sm:$0xf] }
 0x275   :  { %3688 = vmatpush.bf16.msra.mxu2 %v5612_v7  ;;  %v5585_v63 = vld [vmem:[#allocation2 + $0x6b8] sm:$0xf0]  ;;  %v5412_v62 = vor.u32 %v6213_v54, %v5409_v56 }
 0x276   :  { %3676 = vmatpush.bf16.msra.mxu1 %v5540_v8  ;;  %v5588_v61 = vor.u32 %v6257_v45, %v5585_v63  ;;  %v6293_v11 = vld [vmem:[#allocation2 + $0xb1c] sm:$0xf] }
 0x277   :  { %v5729_v9 = vld [vmem:[#allocation2 + $0xb38] sm:$0xf0] }
 0x278   :  { %3713 = vmatpush.bf16.msrb.mxu0 %v5748_v31  ;;  %v5732_v2 = vor.u32 %v6293_v11, %v5729_v9  ;;  %v6237_v0 = vld [vmem:[#allocation2 + $0x41c] sm:$0xf] }
 0x279   :  { %5765 = vmatmul.msk.bf16.vlgmr.msrb.gmra.mxu1 %vm737_vm0, %v6596_v48  ;;  %3689 = vmatpush.bf16.msra.mxu2 %v5604_v27  ;;  %v5505_v1 = vld [vmem:[#allocation2 + $0x438] sm:$0xf0] }
 0x27a   :  { %v6350_v59 = vpop.eup %6349  ;;  %3677 = vmatpush.bf16.msra.mxu1 %v5532_v23  ;;  %v6255_v41 = vld [vmem:[#allocation2 + $0x65c] sm:$0xf]  ;;  %v5508_v4 = vor.u32 %v6237_v0, %v5505_v1 }
 0x27b   :  { %v2806_v24 = vpack.c.bf16 %v6350_v59, %v6350_v59  ;;  %v6211_v3 = vld [vmem:[#allocation2 + $0xdc] sm:$0xf] }
 0x27c   :  { %3714 = vmatpush.bf16.msrb.mxu0 %v5740_v55  ;;  %v5401_v38 = vld [vmem:[#allocation2 + $0xf8] sm:$0xf0] }
 0x27d   :  { %2956 = vmatmul.bf16.vlgmr.msrb.gmra.mxu3 %v2806_v24  ;;  %3690 = vmatpush.bf16.msra.mxu2 %v5596_v43  ;;  %v5577_v5 = vld [vmem:[#allocation2 + $0x678] sm:$0xf0]  ;;  %v5404_v15 = vor.u32 %v6211_v3, %v5401_v38 }
 0x27e   :  { %3647 = vmatpush.bf16.msrb.mxu3 %v5436_v46  ;;  %3678 = vmatpush.bf16.msra.mxu1 %v5524_v40  ;;  %v5580_v8 = vor.u32 %v6255_v41, %v5577_v5  ;;  %v6291_v10 = vld [vmem:[#allocation2 + $0xadc] sm:$0xf] }
 0x27f   :  { %v5721_v7 = vld [vmem:[#allocation2 + $0xaf8] sm:$0xf0] }
 0x280   :  { %3715 = vmatpush.bf16.msrb.mxu0 %v5732_v2  ;;  %v5724_v14 = vor.u32 %v6291_v10, %v5721_v7  ;;  %v6253_v17 = vld [vmem:[#allocation2 + $0x61c] sm:$0xf]  ;;  %v6308_v10 = vld [vmem:[#allocation6 + $0x1a8] sm:$0xff] }
 0x281   :  { %3691 = vmatpush.bf16.msra.mxu2 %v5588_v61  ;;  %v5569_v18 = vld [vmem:[#allocation2 + $0x638] sm:$0xf0] }
 0x282   :  { %3648 = vmatpush.bf16.msrb.mxu3 %v5428_v32  ;;  %3679 = vmatpush.bf16.msra.mxu1 %v5516_v58  ;;  %v6209_v52 = vld [vmem:[#allocation2 + $0x9c] sm:$0xf]  ;;  %v5572_v46 = vor.u32 %v6253_v17, %v5569_v18  ;;  %v6307_v17 = vld [vmem:[#allocation6 + $0x1a0] sm:$0xff] }
 0x283   :  { %v5393_v59 = vld [vmem:[#allocation2 + $0xb8] sm:$0xf0] }
 0x284   :  { %3716 = vmatpush.bf16.msrb.mxu0 %v5724_v14  ;;  %v6289_v19 = vld [vmem:[#allocation2 + $0xa9c] sm:$0xf]  ;;  %v5396_v22 = vor.u32 %v6209_v52, %v5393_v59  ;;  %v6306_v52 = vld [vmem:[#allocation6 + $0x198] sm:$0xff] }
 0x285   :  { %3692 = vmatpush.bf16.msra.mxu2 %v5580_v8  ;;  %v5713_v20 = vld [vmem:[#allocation2 + $0xab8] sm:$0xf0] }
 0x286   :  { %3649 = vmatpush.bf16.msrb.mxu3 %v5420_v51  ;;  %3680 = vmatpush.bf16.msra.mxu1 %v5508_v4  ;;  %v5716_v21 = vor.u32 %v6289_v19, %v5713_v20  ;;  %v6207_v24 = vld [vmem:[#allocation2 + $0x5c] sm:$0xf]  ;;  %v6310_v4 = vld [vmem:[#allocation6 + $0x1b8] sm:$0xff]  ;;  %v2007_v19 = vadd.f32 %v6676_v25, %v6696_v30  ;;  %v6304_v20 = vld [vmem:[#allocation6 + $0x188] sm:$0xff] }
 0x287   :  { %v5385_v26 = vld [vmem:[#allocation2 + $0x78] sm:$0xf0] }
 0x288   :  { %3717 = vmatpush.bf16.msrb.mxu0 %v5716_v21  ;;  %v6287_v6 = vld [vmem:[#allocation2 + $0xa5c] sm:$0xf]  ;;  %v5388_v27 = vor.u32 %v6207_v24, %v5385_v26  ;;  %v2020_v26 = vadd.f32 %v6683_v42, %v2007_v19 }
 0x289   :  { %3681 = vmatmul.bf16.vlgmr.msra.gmra.mxu1 %v6581_v53  ;;  %3693 = vmatpush.bf16.msra.mxu2 %v5572_v46  ;;  %v5705_v23 = vld [vmem:[#allocation2 + $0xa78] sm:$0xf0] }
 0x28a   :  { %3650 = vmatpush.bf16.msrb.mxu3 %v5412_v62  ;;  %v5708_v13 = vor.u32 %v6287_v6, %v5705_v23  ;;  %v6205_v28 = vld [vmem:[#allocation2 + $0x1c] sm:$0xf] }
 0x28b   :  { %v5377_v29 = vld [vmem:[#allocation2 + $0x38] sm:$0xf0] }
 0x28c   :  { %3694 = vmatmul.bf16.vlgmr.msra.gmra.mxu2 %v6585_v60  ;;  %v6283_v31 = vld [vmem:[#allocation2 + $0x9dc] sm:$0xf]  ;;  %3718 = vmatpush.bf16.msrb.mxu0 %v5708_v13  ;;  %v5380_v40 = vor.u32 %v6205_v28, %v5377_v29  ;;  %v6303_v13 = vld [vmem:[#allocation6 + $0x180] sm:$0xff] }
 0x28d   :  { %3603 = vmatmul.bf16.vlgmr.msra.gmra.mxu3 %v6585_v60  ;;  %v6301_v32 = vld [vmem:[#allocation2 + $0xc1c] sm:$0xf]  ;;  %3874 = vmatpush.bf16.msrb.mxu2 %v6310_v4 }
 0x28e   :  { %3651 = vmatpush.bf16.msrb.mxu3 %v5404_v15  ;;  %v5761_v33 = vld [vmem:[#allocation2 + $0xc38] sm:$0xf0] }
 0x28f   :  { %v5689_v53 = vld [vmem:[#allocation2 + $0x9f8] sm:$0xf0]  ;;  %v5764_v35 = vor.u32 %v6301_v32, %v5761_v33  ;;  %v6318_v33 = vld [vmem:[#allocation6 + $0x1f8] sm:$0xff] }
 0x290   :  { %v6285_v36 = vld [vmem:[#allocation2 + $0xa1c] sm:$0xf]  ;;  %v5692_v12 = vor.u32 %v6283_v31, %v5689_v53 }
 0x291   :  { %v5697_v37 = vld [vmem:[#allocation2 + $0xa38] sm:$0xf0]  ;;  %3732 = vmatpush.bf16.msrb.mxu1 %v5764_v35  ;;  %v3565_v0 = vpop.f32.mrf.mxu0 }
 0x292   :  { %3652 = vmatpush.bf16.msrb.mxu3 %v5396_v22  ;;  %v5700_v50 = vor.u32 %v6285_v36, %v5697_v37  ;;  %v6281_v43 = vld [vmem:[#allocation2 + $0x99c] sm:$0xf]  ;;  %v3060_v22 = vld [vmem:[#allocation4 + $0x6] sm:$0x3]  ;;  %v6316_v36 = vld [vmem:[#allocation6 + $0x1e8] sm:$0xff] }
 0x293   :  { %v5681_v44 = vld [vmem:[#allocation2 + $0x9b8] sm:$0xf0] }
 0x294   :  { %3719 = vmatpush.bf16.msrb.mxu0 %v5700_v50  ;;  %v5684_v47 = vor.u32 %v6281_v43, %v5681_v44  ;;  %v6279_v60 = vld [vmem:[#allocation2 + $0x95c] sm:$0xf] }
 0x295   :  { %v5673_v55 = vld [vmem:[#allocation2 + $0x978] sm:$0xf0]  ;;  %3887 = vmatpush.bf16.msra.mxu1 %v6318_v33  ;;  %v6338_v33 = vld [vmem:[#allocation10] ss:$0 sm:$0xff] }
 0x296   :  { %3653 = vmatpush.bf16.msrb.mxu3 %v5388_v27  ;;  %v5676_v51 = vor.u32 %v6279_v60, %v5673_v55  ;;  %v6277_v49 = vld [vmem:[#allocation2 + $0x91c] sm:$0xf]  ;;  %v3062_v27 = vperm.slane %v3060_v22, 0 }
 0x297   :  { %3720 = vmatmul.bf16.vlgmr.msrb.gmra.mxu0 %v6605_v39  ;;  %v5665_v16 = vld [vmem:[#allocation2 + $0x938] sm:$0xf0] }
 0x298   :  { %v5668_v45 = vor.u32 %v6277_v49, %v5665_v16  ;;  %v6275_v54 = vld [vmem:[#allocation2 + $0x8dc] sm:$0xf]  ;;  %v3566_v31 = vadd.f32 %v3565_v0, %v3062_v27 }
 0x299   :  { %5766 = vmatmul.msk.bf16.vlgmr.msrb.gmra.mxu1 %vm737_vm0, %v6596_v48  ;;  %v5657_v56 = vld [vmem:[#allocation2 + $0x8f8] sm:$0xf0]  ;;  %v3567_v1 = vpop.f32.mrf.mxu0 }
 0x29a   :  { %3654 = vmatpush.bf16.msrb.mxu3 %v5380_v40  ;;  %v5660_v58 = vor.u32 %v6275_v54, %v5657_v56  ;;  %v6273_v63 = vld [vmem:[#allocation2 + $0x89c] sm:$0xf] }
 0x29b   :  { %v5649_v61 = vld [vmem:[#allocation2 + $0x8b8] sm:$0xf0] }
 0x29c   :  { %v5652_v39 = vor.u32 %v6273_v63, %v5649_v61  ;;  %v6271_v11 = vld [vmem:[#allocation2 + $0x85c] sm:$0xf]  ;;  %v6314_v63 = vld [vmem:[#allocation6 + $0x1d8] sm:$0xff] }
 0x29d   :  { %3655 = vmatmul.bf16.vlgmr.msrb.gmra.mxu3 %v6583_v57  ;;  %v5641_v9 = vld [vmem:[#allocation2 + $0x878] sm:$0xf0] }
 0x29e   :  { %3699 = vmatpush.bf16.msra.mxu3 %v5692_v12  ;;  %v5644_v57 = vor.u32 %v6271_v11, %v5641_v9  ;;  %v6269_v2 = vld [vmem:[#allocation2 + $0x81c] sm:$0xf] }
 0x29f   :  { %v5633_v48 = vld [vmem:[#allocation2 + $0x838] sm:$0xf0] }
 0x2a0   :  { %v5636_v62 = vor.u32 %v6269_v2, %v5633_v48  ;;  %v6309_v5 = vld [vmem:[#allocation6 + $0x1b0] sm:$0xff]  ;;  %v6312_v2 = vld [vmem:[#allocation6 + $0x1c8] sm:$0xff]  ;;  %v3063_v48 = vperm.slane %v3060_v22, 1 }
 0x2a1   :  { %3875 = vmatpush.bf16.msrb.mxu2 %v6309_v5  ;;  %v6305_v46 = vld [vmem:[#allocation6 + $0x190] sm:$0xff] }
 0x2a2   :  { %3700 = vmatpush.bf16.msra.mxu3 %v5684_v47  ;;  %v6317_v25 = vld [vmem:[#allocation6 + $0x1f0] sm:$0xff] }
 0x2a3   :  { %3888 = vmatpush.bf16.msra.mxu1 %v6317_v25  ;;  %v6313_v9 = vld [vmem:[#allocation6 + $0x1d0] sm:$0xff] }
 0x2a5   :  { %3876 = vmatpush.bf16.msrb.mxu2 %v6308_v10 }
 0x2a6   :  { %3701 = vmatpush.bf16.msra.mxu3 %v5676_v51 }
 0x2a7   :  { %3889 = vmatpush.bf16.msra.mxu1 %v6316_v36 }
 0x2a9   :  { %3877 = vmatpush.bf16.msrb.mxu2 %v6307_v17 }
 0x2aa   :  { %3702 = vmatpush.bf16.msra.mxu3 %v5668_v45  ;;  %v6315_v45 = vld [vmem:[#allocation6 + $0x1e0] sm:$0xff] }
 0x2ab   :  { %3890 = vmatpush.bf16.msra.mxu1 %v6315_v45 }
 0x2ad   :  { %3878 = vmatpush.bf16.msrb.mxu2 %v6306_v52  ;;  %v6325_v52 = vld [vmem:[#allocation9 + $0x30] sm:$0xff] }
 0x2ae   :  { %3703 = vmatpush.bf16.msra.mxu3 %v5660_v58 }
 0x2af   :  { %3891 = vmatpush.bf16.msra.mxu1 %v6314_v63 }
 0x2b1   :  { %3879 = vmatpush.bf16.msrb.mxu2 %v6305_v46  ;;  %v6322_v46 = vld [vmem:[#allocation9 + $0x18] sm:$0xff] }
 0x2b2   :  { %3704 = vmatpush.bf16.msra.mxu3 %v5652_v39 }
 0x2b3   :  { %3892 = vmatpush.bf16.msra.mxu1 %v6313_v9 }
 0x2b5   :  { %3880 = vmatpush.bf16.msrb.mxu2 %v6304_v20  ;;  %v6321_v20 = vld [vmem:[#allocation9 + $0x10] sm:$0xff] }
 0x2b6   :  { %3705 = vmatpush.bf16.msra.mxu3 %v5644_v57 }
 0x2b7   :  { %3893 = vmatpush.bf16.msra.mxu1 %v6312_v2 }
 0x2b9   :  { %3881 = vmatpush.bf16.msrb.mxu2 %v6303_v13 }
 0x2ba   :  { %3706 = vmatpush.bf16.msra.mxu3 %v5636_v62  ;;  %v6311_v62 = vld [vmem:[#allocation6 + $0x1c0] sm:$0xff] }
 0x2bb   :  { %3894 = vmatpush.bf16.msra.mxu1 %v6311_v62 }
 0x2bd   :  { %3707 = vmatmul.bf16.vlgmr.msra.gmra.mxu3 %v6603_v34 }
 0x2c8   :  { %v3578_v38 = vpop.f32.mrf.mxu2 }
 0x2c9   :  { %v3579_v30 = vadd.f32 %v3578_v38, %v3566_v31 }
 0x2d0   :  { %v3580_v7 = vpop.f32.mrf.mxu2  ;;  %v3617_v15 = vpop.f32.mrf.mxu0 }
 0x2d6   :  { %v2944_v41 = vpop.f32.mrf.mxu1 }
 0x2d8   :  { %v3619_v59 = vpop.f32.mrf.mxu0 }
 0x2d9   :  { %v6323_v59 = vld [vmem:[#allocation9 + $0x20] sm:$0xff] }
 0x2de   :  { %v2946_v3 = vpop.f32.mrf.mxu1 }
 0x2e6   :  { %v3591_v8 = vpop.f32.mrf.mxu1 }
 0x2e7   :  { %v3592_v37 = vadd.f32 %v3591_v8, %v3579_v30 }
 0x2e8   :  { %v3630_v18 = vpop.f32.mrf.mxu2 }
 0x2ee   :  { %v3593_v14 = vpop.f32.mrf.mxu1 }
 0x2f0   :  { %v3632_v21 = vpop.f32.mrf.mxu2  ;;  %v3669_v29 = vpop.f32.mrf.mxu0 }
 0x2f1   :  { %v6320_v21 = vld [vmem:[#allocation9 + $0x8] sm:$0xff] }
 0x2f6   :  { %v3643_v34 = vpop.f32.mrf.mxu1 }
 0x2f8   :  { %v3671_v35 = vpop.f32.mrf.mxu0 }
 0x2fe   :  { %v3645_v23 = vpop.f32.mrf.mxu1 }
 0x2ff   :  { %v6337_v23 = vld [vmem:[#allocation7] ss:$0 sm:$0xff] }
 0x300   :  { %v2957_v24 = vpop.f32.mrf.mxu3 }
 0x301   :  { %v2958_v6 = vadd.f32 %v2957_v24, %v2944_v41  ;;  %v6319_v24 = vld [vmem:[#allocation9] sm:$0xff] }
 0x303   :  { %v6746_v28 = vadd.f32 %v2958_v6, %v2020_v26 }
 0x306   :  { %v3682_v53 = vpop.f32.mrf.mxu1 }
 0x308   :  { %v2959_v32 = vpop.f32.mrf.mxu3 }
 0x30e   :  { %v3684_v40 = vpop.f32.mrf.mxu1 }
 0x30f   :  { %v3695_v44 = vpop.f32.mrf.mxu2 }
 0x310   :  { %v3604_v42 = vpop.f32.mrf.mxu3 }
 0x311   :  { %v3605_v50 = vadd.f32 %v3604_v42, %v3592_v37 }
 0x313   :  { %v3618_v12 = vadd.f32 %v3617_v15, %v3605_v50 }
 0x314   :  { %v3721_v55 = vpop.f32.mrf.mxu0 }
 0x315   :  { %v3631_v43 = vadd.f32 %v3630_v18, %v3618_v12  ;;  %v6326_v18 = vld [vmem:[#allocation9 + $0x38] sm:$0xff] }
 0x316   :  { %v3734_v49 = vpop.f32.mrf.mxu1  ;;  %3976 = vmatpush.bf16.msrb.mxu3 %v6326_v18 }
 0x317   :  { %v3644_v47 = vadd.f32 %v3643_v34, %v3631_v43  ;;  %v3697_v54 = vpop.f32.mrf.mxu2  ;;  %v6324_v34 = vld [vmem:[#allocation9 + $0x28] sm:$0xff] }
 0x318   :  { %v3606_v60 = vpop.f32.mrf.mxu3 }
 0x319   :  { %v3738_v51 = vpack.c.bf16 %v3644_v47, %v3644_v47 }
 0x31a   :  { %3977 = vmatpush.bf16.msrb.mxu3 %v6325_v52 }
 0x31b   :  { %v3740_v16 = vunpack.c.l.bf16 %v3738_v51 }
 0x31c   :  { %v3723_v58 = vpop.f32.mrf.mxu0 }
 0x31d   :  { %6351 = vtanh.f32 %v3740_v16 }
 0x31e   :  { %v3736_v61 = vpop.f32.mrf.mxu1  ;;  %3978 = vmatpush.bf16.msrb.mxu3 %v6324_v34 }
 0x320   :  { %v3656_v56 = vpop.f32.mrf.mxu3 }
 0x321   :  { %v3657_v0 = vadd.f32 %v3656_v56, %v3063_v48 }
 0x322   :  { %3979 = vmatpush.bf16.msrb.mxu3 %v6323_v59 }
 0x323   :  { %v6352_v39 = vpop.eup %6351  ;;  %v3670_v1 = vadd.f32 %v3669_v29, %v3657_v0 }
 0x324   :  { %v3744_v11 = vpack.c.bf16 %v6352_v39, %v6352_v39 }
 0x325   :  { %v3683_v41 = vadd.f32 %v3682_v53, %v3670_v1 }
 0x326   :  { %3882 = vmatmul.bf16.vlgmr.msrb.gmra.mxu2 %v3744_v11  ;;  %3980 = vmatpush.bf16.msrb.mxu3 %v6322_v46 }
 0x327   :  { %v3696_v3 = vadd.f32 %v3695_v44, %v3683_v41 }
 0x328   :  { %v3658_v57 = vpop.f32.mrf.mxu3 }
 0x32a   :  { %3981 = vmatpush.bf16.msrb.mxu3 %v6321_v20 }
 0x32e   :  { %3982 = vmatpush.bf16.msrb.mxu3 %v6320_v21 }
 0x332   :  { %3983 = vmatpush.bf16.msrb.mxu3 %v6319_v24 }
 0x340   :  { %v3708_v38 = vpop.f32.mrf.mxu3 }
 0x341   :  { %v3709_v4 = vadd.f32 %v3708_v38, %v3696_v3 }
 0x343   :  { %v3722_v5 = vadd.f32 %v3721_v55, %v3709_v4 }
 0x345   :  { %v3735_v8 = vadd.f32 %v3734_v49, %v3722_v5 }
 0x347   :  { %v3739_v10 = vpack.c.bf16 %v3735_v8, %v3735_v8 }
 0x348   :  { %v3710_v7 = vpop.f32.mrf.mxu3 }
 0x349   :  { %v3741_v14 = vunpack.c.l.bf16 %v3739_v10 }
 0x34b   :  { %6353 = vtanh.f32 %v3741_v14 }
 0x351   :  { %v6354_v15 = vpop.eup %6353 }
 0x352   :  { %v3745_v17 = vpack.c.bf16 %v6354_v15, %v6354_v15 }
 0x354   :  { %3895 = vmatmul.bf16.vlgmr.msra.gmra.mxu1 %v3745_v17 }
 0x3a9   :  { %v3883_v19 = vpop.f32.mrf.mxu2 }
 0x3b1   :  { %v3885_v22 = vpop.f32.mrf.mxu2 }
 0x3d1   :  { %v3896_v26 = vpop.f32.mrf.mxu1 }
 0x3d2   :  { %v3897_v6 = vadd.f32 %v3896_v26, %v3883_v19 }
 0x3d4   :  { %v3900_v13 = vadd.f32 %v3897_v6, %v6746_v28 }
 0x3d6   :  { %v3905_v27 = vadd.f32 %v6337_v23, %v3900_v13 }
 0x3d8   :  { %v3906_v29 = vmax.f32 %v3905_v27, 0.0 }
 0x3d9   :  { %v3898_v31 = vpop.f32.mrf.mxu1 }
 0x3da   :  { %v3907_v32 = vpack.c.bf16 %v3906_v29, %v3906_v29 }
 0x3dc   :  { %3984 = vmatmul.bf16.vlgmr.msrb.gmra.mxu3 %v3907_v32 }
 0x45f   :  { %v3985_v53 = vpop.f32.mrf.mxu3 }
 0x460   :  { %v3986_v25 = vadd.f32 %v6338_v33, %v3985_v53 }
 0x462   :  { %v3989_v30 = vpack.c.bf16 %v3986_v25, %v3986_v25 }
 0x464   :  { %3990 = vst [vmem:[%s6759_s7] sm:$0xf] %v3989_v30 }
 0x467   :  { %v3987_v35 = vpop.f32.mrf.mxu3 }
 0x468   :  { %3995 = vsyncpa [#allocation3], 1 }
 0x469   :  { %3996 = vsyncpa [#allocation5], 1 }
 0x46a   :  { %3997 = vsyncpa [#allocation8], 1 }
 0x46b   :  { %3998 = vsyncpa [#allocation11], 1 }

</bundles_post_ra>
